<compile_context>
chip_gen: v7x
topology: tpu7x:2x2x1
jax: 0.10.0
libtpu: 0.0.40
codegen_flags: <defaults>
</compile_context>

<pallas_src>
import jax
import jax.numpy as jnp
import numpy as np
from jax.experimental import pallas as pl
from jax.experimental.pallas import tpu as pltpu

_LRELU = 0.2
_BN_EPS = 1e-5
_OUT_LANES = 128   # lane-dense output block (score broadcast across lanes)

# conv1 output rows (ih) are streamed in this order: rows whose padded index
# (ih+1) is EVEN first, then the odd ones.  The kernel can then scatter the
# conv1 matmul output into the two parity scratches with two contiguous
# (unit-stride) block stores instead of a strided scatter.
_IH_ORDER = tuple(range(1, 14, 2)) + tuple(range(0, 14, 2))


# ----------------------------- fused Pallas kernel -----------------------------

def _make_netd_kernel(TB, ndf, nbt, n_valid_rows):
    """Kernel closure over static sizes.

    refs (in order):
      inputs : xrow (14*TB,128) bf16, w1g (128,16*ndf) bf16, w2r (16*ndf,2*ndf) bf16,
               w3v (49,2*ndf) f32, gamma (1,2*ndf) f32, beta (1,2*ndf) f32
      outputs: out (TB,128) f32   (score broadcast across lanes)
      scratch: h1e (8,TB,16*ndf) bf16, h1o (8,TB,16*ndf) bf16,
               y2s (nbt,49*TB,2*ndf) bf16, mom (2,2*ndf) f32
    """
    C = 2 * ndf
    K2 = 16 * ndf
    KW = 4 * ndf      # one conv2 kh-group = (kw, cin) = 4*ndf columns (=256 for ndf=64)

    def kernel(x_ref, w1_ref, w2_ref, w3_ref, g_ref, b_ref,
               out_ref, h1e_ref, h1o_ref, y2s_ref, mom_ref):
        conv_pass = pl.program_id(0)   # 0: convs + moment accumulation, 1: BN finalize
        bt = pl.program_id(1)          # batch tile (sequential! shared scratch)

        # ---------------- pass 0: conv1 -> LeakyReLU -> conv2, accumulate BN moments
        @pl.when(conv_pass == 0)
        def _pass0():
            @pl.when(bt == 0)
            def _init():
                mom_ref[...] = jnp.zeros_like(mom_ref)
                # conv2's top/bottom zero-padding rows of the h1 map; written once,
                # the interior rows are overwritten every batch tile.
                h1e_ref[0] = jnp.zeros((TB, K2), jnp.bfloat16)   # padded row 0
                h1o_ref[7] = jnp.zeros((TB, K2), jnp.bfloat16)   # padded row 15

            # conv1 as ONE lane-dense matmul: rows = (ih, b), K = 4x30 input strip
            # (padded to 128 lanes), N = 16 padded h1 columns x ndf channels.
            # Columns for padded iw 0 / 15 are all-zero -> output IS a width-padded
            # h1 row.  LeakyReLU(0.2) fused.
            pre1 = jnp.dot(x_ref[...], w1_ref[...],
                           preferred_element_type=jnp.float32)        # [14*TB, K2]
            h1 = jnp.maximum(pre1, _LRELU * pre1).astype(jnp.bfloat16)
            h1 = h1.reshape(14, TB, K2)                                # tile-aligned split
            # rows 0..6 : ih = 1,3,...,13 -> padded rows 2,4,...,14 (even scratch 1..7)
            # rows 7..13: ih = 0,2,...,12 -> padded rows 1,3,...,13 (odd scratch 0..6)
            h1e_ref[pl.ds(1, 7)] = h1[0:7]
            h1o_ref[pl.ds(0, 7)] = h1[7:14]

            # conv2: one matmul per kernel row kh (K = 4*ndf = kw x cin).  The im2col
            # for a kh-group is built from contiguous, 128-lane-aligned slices of the
            # parity scratches (lane offset 2*ow*ndf is a multiple of 128 for ndf=64).
            y2 = jnp.zeros((49 * TB, C), jnp.float32)
            for kh in range(4):
                src = h1e_ref if kh % 2 == 0 else h1o_ref
                base = kh // 2                                  # padded rows kh, kh+2, ...
                pieces = [src[pl.ds(base, 7), :, pl.ds(2 * ow * ndf, KW)]
                          for ow in range(7)]                   # each [7(oh), TB, KW]
                lhs = jnp.stack(pieces, axis=1).reshape(49 * TB, KW)   # rows (oh, ow, b)
                y2 = y2 + jnp.dot(lhs, w2_ref[pl.ds(kh * KW, KW), :],
                                  preferred_element_type=jnp.float32)  # [49*TB, C]

            # BatchNorm batch moments (global across tiles), fused (2,C) f32 scratch.
            s = jnp.sum(y2, axis=0, keepdims=True)
            q = jnp.sum(y2 * y2, axis=0, keepdims=True)
            mom_ref[...] += jnp.concatenate([s, q], axis=0)

            # cache pre-BN conv2 activations for pass 1 (bf16: halves VMEM vs f32)
            y2s_ref[bt] = y2.astype(jnp.bfloat16)
            # NOTE: out_ref is deliberately not written in pass 0; the output HBM
            # rows hold transient garbage until pass 1 rewrites every block.

        # ---------------- pass 1: BatchNorm -> LeakyReLU -> conv3 -> sigmoid
        @pl.when(conv_pass == 1)
        def _pass1():
            @pl.when(bt == 0)
            def _bn_prep():
                # hoisted: compute scale/shift once, reuse for every batch tile
                inv_n = 1.0 / float(n_valid_rows)
                m = mom_ref[...]
                mean = m[0:1] * inv_n
                var = m[1:2] * inv_n - mean * mean            # biased var (train BN)
                scale = g_ref[...] * jax.lax.rsqrt(var + _BN_EPS)
                shift = b_ref[...] - mean * scale
                mom_ref[...] = jnp.concatenate([scale, shift], axis=0)

            sc = mom_ref[...]
            scale, shift = sc[0:1], sc[1:2]
            y2 = y2s_ref[bt].astype(jnp.float32)              # [49*TB, C]
            z = y2 * scale + shift
            h2 = jnp.maximum(z, _LRELU * z)                   # LeakyReLU(0.2)
            # conv3 (7x7 full map, Cout=1) as a VPU multiply-reduce.  Rows are
            # (spatial, batch-in-tile) with TB % 8 == 0 -> tile-aligned reshape.
            h2 = h2.reshape(49, TB, C)
            t = jnp.sum(h2 * w3_ref[...][:, None, :], axis=0)     # [TB, C]
            logits = jnp.sum(t, axis=1, keepdims=True)            # [TB, 1]
            out_ref[...] = jnp.broadcast_to(jax.nn.sigmoid(logits),
                                            (TB, _OUT_LANES))     # lane-dense store

    return kernel


# ----------------------------- wrapper (layout prep + pallas_call) -----------------------------

def _pick_batch_tile(b_pad):
    # Larger tiles amortize the ~0.35us/grid-step overhead and the pass-1
    # scale/shift reload; TB<=64 keeps the conv2 im2col staging + h1 scratch
    # comfortably under the v7x 64 MiB VMEM cap.
    for tb in (64, 32, 16, 8):
        if b_pad % tb == 0:
            return tb
    return 8  # unreachable: b_pad is a multiple of 8


def _vmem_limit_bytes(TB, nbt, ndf):
    """Explicit scoped-VMEM budget (review: don't rely on the 16/32 MiB default)."""
    C, K2 = 2 * ndf, 16 * ndf
    bf16, f32 = 2, 4
    xrow_blk = 14 * TB * 128 * bf16
    weights = (128 * K2 + K2 * C) * bf16 + (49 * C + 2 * C) * f32
    out_blk = TB * _OUT_LANES * f32
    h1 = 2 * 8 * TB * K2 * bf16                    # parity scratches
    y2s = nbt * 49 * TB * C * bf16                 # cached conv2 activations
    # compiler-managed temporaries: conv1 f32 output, per-kh im2col staging, f32 y2
    temps = 14 * TB * K2 * f32 + 49 * TB * 4 * ndf * bf16 + 2 * 49 * TB * C * f32
    total = 2 * (xrow_blk + weights + out_blk) + h1 + y2s + temps
    return int(min(100 << 20, max(32 << 20, 2 * total)))


def netd_forward(x_nchw, params, ndf):
    """x_nchw: [B, 1, 28, 28] f32 -> [B] sigmoid scores (matches NetD.forward)."""
    w1, w2, w3, gamma, beta = params
    B = x_nchw.shape[0]
    C = 2 * ndf
    K2 = 16 * ndf

    B_pad = ((B + 7) // 8) * 8
    TB = _pick_batch_tile(B_pad)
    nbt = B_pad // TB

    # ---- the only batch-sized streamed tensor: conv1 row strips (~3.5 KiB/img) ----
    x_hw = x_nchw[:, 0, :, :]                                          # [B,28,28] (Cin=1)
    x_hw = jnp.pad(x_hw, ((0, B_pad - B), (0, 0), (0, 0)))             # zero pad images
    xp = jnp.pad(x_hw, ((0, 0), (1, 1), (1, 1)))                       # conv1 pad=1 -> [Bp,30,30]
    # one strip (4 input rows x 30 cols = 120 values) per conv1 output row ih,
    # ih ordered by the parity of its padded index (see _IH_ORDER)
    strips = jnp.stack([xp[:, 2 * ih:2 * ih + 4, :].reshape(B_pad, 120)
                        for ih in _IH_ORDER], axis=1)                  # [Bp, 14, 120]
    strips = jnp.pad(strips, ((0, 0), (0, 0), (0, 8)))                 # lane-pad -> 128
    xrow = (strips.reshape(nbt, TB, 14, 128)
                  .transpose(0, 2, 1, 3)                               # rows (tile, ih, b)
                  .reshape(nbt * 14 * TB, 128)
                  .astype(jnp.bfloat16))

    # ---- resident weights (O(weight-size) prep) ----
    # grouped conv1 weight: row = (kh, input col j) [120 real + 8 pad rows],
    # column = (padded h1 col iwp 0..15, cout).  Columns for iwp 0/15 are zero
    # (realize conv2's width padding); column block iwp=iw+1 holds w1 shifted
    # to input cols 2*iw..2*iw+3.
    w1khw = jnp.transpose(w1, (2, 3, 1, 0)).reshape(4, 4, ndf)         # [kh, kw, cout]
    zero_col = jnp.zeros((128, ndf), w1.dtype)
    cols = [zero_col]
    for iw in range(14):
        blk = jnp.pad(w1khw, ((0, 0), (2 * iw, 26 - 2 * iw), (0, 0)))  # [4, 30, ndf]
        cols.append(jnp.pad(blk.reshape(120, ndf), ((0, 8), (0, 0))))  # [128, ndf]
    cols.append(zero_col)
    w1g = jnp.concatenate(cols, axis=1).astype(jnp.bfloat16)           # [128, 16*ndf]

    w2r = jnp.transpose(w2, (2, 3, 1, 0)).reshape(K2, C).astype(jnp.bfloat16)  # rows (kh,kw,cin)
    w3v = jnp.transpose(w3, (2, 3, 1, 0)).reshape(49, C).astype(jnp.float32)   # rows (kh,kw)
    g2 = gamma.reshape(1, C).astype(jnp.float32)
    b2 = beta.reshape(1, C).astype(jnp.float32)

    kernel = _make_netd_kernel(TB, ndf, nbt, n_valid_rows=B * 49)

    out_padded = pl.pallas_call(
        kernel,
        out_shape=jax.ShapeDtypeStruct((B_pad, _OUT_LANES), jnp.float32),
        grid_spec=pltpu.PrefetchScalarGridSpec(
            num_scalar_prefetch=0,
            grid=(2, nbt),                       # (pass, batch tile)
            in_specs=[
                # streamed row strips: tiled in pass 0; pinned to the last block
                # fetched in pass 0 during pass 1 (unused there -> no extra DMA).
                pl.BlockSpec((14 * TB, 128),
                             lambda p, bt: ((1 - p) * bt + p * (nbt - 1), 0)),
                pl.BlockSpec((128, K2), lambda p, bt: (0, 0)),   # resident weights
                pl.BlockSpec((K2, C), lambda p, bt: (0, 0)),
                pl.BlockSpec((49, C), lambda p, bt: (0, 0)),
                pl.BlockSpec((1, C), lambda p, bt: (0, 0)),
                pl.BlockSpec((1, C), lambda p, bt: (0, 0)),
            ],
            out_specs=pl.BlockSpec((TB, _OUT_LANES), lambda p, bt: (bt, 0)),
            scratch_shapes=[
                pltpu.VMEM((8, TB, K2), jnp.bfloat16),          # h1, even padded rows
                pltpu.VMEM((8, TB, K2), jnp.bfloat16),          # h1, odd padded rows
                pltpu.VMEM((nbt, 49 * TB, C), jnp.bfloat16),    # cached conv2 activations
                pltpu.VMEM((2, C), jnp.float32),                # BN sum/ssq -> scale/shift
            ],
        ),
        # Both axes MUST stay sequential: pass 1 depends on pass 0's scratch, and
        # the bt axis carries the shared moment accumulators / y2 cache (flipping
        # it to parallel/core_parallel without per-core partials is a data race).
        compiler_params=pltpu.CompilerParams(
            dimension_semantics=("arbitrary", "arbitrary"),
            vmem_limit_bytes=_vmem_limit_bytes(TB, nbt, ndf)),
    )(xrow, w1g, w2r, w3v, g2, b2)

    return out_padded[:B, 0]                                           # .view(-1)


# ----------------------------- params & reference -----------------------------

def init_params(key, ndf):
    k1, k2, k3 = jax.random.split(key, 3)
    # PyTorch conv weights are OIHW; DCGAN-style deterministic init, bias-free convs.
    w1 = 0.02 * jax.random.normal(k1, (ndf, 1, 4, 4), jnp.float32)
    w2 = 0.02 * jax.random.normal(k2, (2 * ndf, ndf, 4, 4), jnp.float32)
    w3 = 0.02 * jax.random.normal(k3, (1, 2 * ndf, 7, 7), jnp.float32)
    gamma = jnp.ones((2 * ndf,), jnp.float32)   # BatchNorm2d default init
    beta = jnp.zeros((2 * ndf,), jnp.float32)
    return w1, w2, w3, gamma, beta


def ref_forward(x, w1, w2, w3, gamma, beta):
    dn = ('NCHW', 'OIHW', 'NCHW')
    h = jax.lax.conv_general_dilated(x, w1, (2, 2), [(1, 1), (1, 1)], dimension_numbers=dn)
    h = jnp.where(h > 0, h, _LRELU * h)
    h = jax.lax.conv_general_dilated(h, w2, (2, 2), [(1, 1), (1, 1)], dimension_numbers=dn)
    mean = h.mean(axis=(0, 2, 3), keepdims=True)
    var = jnp.square(h - mean).mean(axis=(0, 2, 3), keepdims=True)     # biased (train BN)
    h = (h - mean) * jax.lax.rsqrt(var + _BN_EPS)
    h = h * gamma.reshape(1, -1, 1, 1) + beta.reshape(1, -1, 1, 1)
    h = jnp.where(h > 0, h, _LRELU * h)
    h = jax.lax.conv_general_dilated(h, w3, (1, 1), [(0, 0), (0, 0)], dimension_numbers=dn)
    return jax.nn.sigmoid(h).reshape(-1)


if __name__ == "__main__":
    ndf = 64   # opt.ndf in the reference Config (2*ndf = 128 -> lane-dense conv2/conv3 path)
    B = 2
    key = jax.random.PRNGKey(0)
    kx, kp = jax.random.split(key)
    x = jax.random.normal(kx, (B, 1, 28, 28), jnp.float32)   # NCHW, MNIST-shaped
    params = init_params(kp, ndf)

    fwd = jax.jit(netd_forward, static_argnums=(2,))
    out = jax.block_until_ready(fwd(x, params, ndf))

    ref = np.asarray(ref_forward(x, *params))
    out_np = np.asarray(out)
    assert out_np.shape == (B,), f"bad output shape {out_np.shape}"
    # bf16 MXU operands + bf16-cached activations -> relaxed tolerance vs the f32
    # reference (sigmoid outputs; a layout/ordering bug would be orders larger).
    if not np.allclose(out_np, ref, atol=4e-2, rtol=0.0):
        raise AssertionError(
            f"mismatch: pallas={out_np} ref={ref} max|diff|={np.max(np.abs(out_np - ref))}")
    print("KERNEL_OK")
</pallas_src>

<mosaic_0001>
module attributes {stable_mosaic.version = 11 : i64} {
  func.func @kernel(%arg0: i32, %arg1: i32, %arg2: memref<112x128xbf16, #tpu.memory_space<vmem>>, %arg3: memref<128x1024xbf16, #tpu.memory_space<vmem>>, %arg4: memref<1024x128xbf16, #tpu.memory_space<vmem>>, %arg5: memref<49x128xf32, #tpu.memory_space<vmem>>, %arg6: memref<1x128xf32, #tpu.memory_space<vmem>>, %arg7: memref<1x128xf32, #tpu.memory_space<vmem>>, %arg8: memref<8x128xf32, #tpu.memory_space<vmem>>, %arg9: memref<8x8x1024xbf16, #tpu.memory_space<vmem>>, %arg10: memref<8x8x1024xbf16, #tpu.memory_space<vmem>>, %arg11: memref<1x392x128xbf16, #tpu.memory_space<vmem>>, %arg12: memref<2x128xf32, #tpu.memory_space<vmem>>) attributes {dimension_semantics = [#tpu.dimension_semantics<arbitrary>, #tpu.dimension_semantics<arbitrary>], iteration_bounds = array<i64: 2, 1>, scalar_prefetch = 0 : i64, scratch_operands = 4 : i64, tpu.core_type = #tpu.core_type<tc>, window_params = [{transform_indices = @transform_0, window_bounds = array<i64: 112, 128>}, {pipeline_mode = #tpu.pipeline_mode<synchronous>, transform_indices = @transform_1, window_bounds = array<i64: 128, 1024>}, {pipeline_mode = #tpu.pipeline_mode<synchronous>, transform_indices = @transform_2, window_bounds = array<i64: 1024, 128>}, {pipeline_mode = #tpu.pipeline_mode<synchronous>, transform_indices = @transform_3, window_bounds = array<i64: 49, 128>}, {pipeline_mode = #tpu.pipeline_mode<synchronous>, transform_indices = @transform_4, window_bounds = array<i64: 1, 128>}, {pipeline_mode = #tpu.pipeline_mode<synchronous>, transform_indices = @transform_5, window_bounds = array<i64: 1, 128>}, {transform_indices = @transform_6, window_bounds = array<i64: 8, 128>}]} {
    %c0_i32 = arith.constant 0 : i32
    %0 = arith.cmpi eq, %arg0, %c0_i32 : i32
    %1 = arith.extui %0 : i1 to i32
    %c0_i32_0 = arith.constant 0 : i32
    %2 = arith.cmpi ne, %1, %c0_i32_0 : i32
    scf.if %2 {
      %c0_i32_2 = arith.constant 0 : i32
      %6 = arith.cmpi eq, %arg1, %c0_i32_2 : i32
      %7 = arith.extui %6 : i1 to i32
      %c0_i32_3 = arith.constant 0 : i32
      %8 = arith.cmpi ne, %7, %c0_i32_3 : i32
      scf.if %8 {
        %cst_112 = arith.constant 0.000000e+00 : f32
        %112 = vector.broadcast %cst_112 : f32 to vector<2x128xf32>
        %c0_113 = arith.constant 0 : index
        %c0_114 = arith.constant 0 : index
        %113 = vector.load %arg12[%c0_113, %c0_114] : memref<2x128xf32, #tpu.memory_space<vmem>>, vector<2x128xf32>
        tpu.vector_store %arg12[%c0_113, %c0_114], %112 {strides = array<i32>} : memref<2x128xf32, #tpu.memory_space<vmem>>, vector<2x128xf32>,
        %cst_115 = arith.constant 0.000000e+00 : bf16
        %114 = vector.broadcast %cst_115 : bf16 to vector<8x1024xbf16>
        %c0_116 = arith.constant 0 : index
        %c0_117 = arith.constant 0 : index
        %c0_118 = arith.constant 0 : index
        %115 = vector.load %arg9[%c0_116, %c0_117, %c0_118] : memref<8x8x1024xbf16, #tpu.memory_space<vmem>>, vector<1x8x1024xbf16>
        %116 = vector.shape_cast %115 : vector<1x8x1024xbf16> to vector<8x1024xbf16>
        %117 = vector.shape_cast %114 : vector<8x1024xbf16> to vector<1x8x1024xbf16>
        tpu.vector_store %arg9[%c0_116, %c0_117, %c0_118], %117 {strides = array<i32>} : memref<8x8x1024xbf16, #tpu.memory_space<vmem>>, vector<1x8x1024xbf16>,
        %cst_119 = arith.constant 0.000000e+00 : bf16
        %118 = vector.broadcast %cst_119 : bf16 to vector<8x1024xbf16>
        %c7 = arith.constant 7 : index
        %c0_120 = arith.constant 0 : index
        %c0_121 = arith.constant 0 : index
        %119 = vector.load %arg10[%c7, %c0_120, %c0_121] : memref<8x8x1024xbf16, #tpu.memory_space<vmem>>, vector<1x8x1024xbf16>
        %120 = vector.shape_cast %119 : vector<1x8x1024xbf16> to vector<8x1024xbf16>
        %121 = vector.shape_cast %118 : vector<8x1024xbf16> to vector<1x8x1024xbf16>
        tpu.vector_store %arg10[%c7, %c0_120, %c0_121], %121 {strides = array<i32>} : memref<8x8x1024xbf16, #tpu.memory_space<vmem>>, vector<1x8x1024xbf16>,
      } else {
      }
      %c0 = arith.constant 0 : index
      %c0_4 = arith.constant 0 : index
      %9 = vector.load %arg2[%c0, %c0_4] : memref<112x128xbf16, #tpu.memory_space<vmem>>, vector<112x128xbf16>
      %c0_5 = arith.constant 0 : index
      %c0_6 = arith.constant 0 : index
      %10 = vector.load %arg3[%c0_5, %c0_6] : memref<128x1024xbf16, #tpu.memory_space<vmem>>, vector<128x1024xbf16>
      %cst = arith.constant dense<0.000000e+00> : vector<112x1024xf32>
      %11 = tpu.matmul %9, %10, %cst {dimension_numbers = #tpu.dot_dimension_numbers<[1], [0], [0], [1], [0, 0, 1, 1], [], []>} : vector<112x128xbf16>, vector<128x1024xbf16>, vector<112x1024xf32> -> vector<112x1024xf32>
      %cst_7 = arith.constant 2.000000e-01 : f32
      %12 = vector.broadcast %cst_7 : f32 to vector<112x1024xf32>
      %13 = arith.mulf %12, %11 : vector<112x1024xf32>
      %14 = arith.maximumf %11, %13 : vector<112x1024xf32>
      %15 = arith.truncf %14 : vector<112x1024xf32> to vector<112x1024xbf16>
      %16 = vector.shape_cast %15 : vector<112x1024xbf16> to vector<14x8x1024xbf16>
      %17 = vector.extract_strided_slice %16 {offsets = [0, 0, 0], sizes = [7, 8, 1024], strides = [1, 1, 1]} : vector<14x8x1024xbf16> to vector<7x8x1024xbf16>
      %c1 = arith.constant 1 : index
      %c0_8 = arith.constant 0 : index
      %c0_9 = arith.constant 0 : index
      %18 = vector.load %arg9[%c1, %c0_8, %c0_9] : memref<8x8x1024xbf16, #tpu.memory_space<vmem>>, vector<7x8x1024xbf16>
      tpu.vector_store %arg9[%c1, %c0_8, %c0_9], %17 {strides = array<i32>} : memref<8x8x1024xbf16, #tpu.memory_space<vmem>>, vector<7x8x1024xbf16>,
      %19 = vector.extract_strided_slice %16 {offsets = [7, 0, 0], sizes = [7, 8, 1024], strides = [1, 1, 1]} : vector<14x8x1024xbf16> to vector<7x8x1024xbf16>
      %c0_10 = arith.constant 0 : index
      %c0_11 = arith.constant 0 : index
      %c0_12 = arith.constant 0 : index
      %20 = vector.load %arg10[%c0_10, %c0_11, %c0_12] : memref<8x8x1024xbf16, #tpu.memory_space<vmem>>, vector<7x8x1024xbf16>
      tpu.vector_store %arg10[%c0_10, %c0_11, %c0_12], %19 {strides = array<i32>} : memref<8x8x1024xbf16, #tpu.memory_space<vmem>>, vector<7x8x1024xbf16>,
      %cst_13 = arith.constant 0.000000e+00 : f32
      %21 = vector.broadcast %cst_13 : f32 to vector<392x128xf32>
      %c0_14 = arith.constant 0 : index
      %c0_15 = arith.constant 0 : index
      %c0_16 = arith.constant 0 : index
      %22 = vector.load %arg9[%c0_14, %c0_15, %c0_16] : memref<8x8x1024xbf16, #tpu.memory_space<vmem>>, vector<7x8x256xbf16>
      %c0_17 = arith.constant 0 : index
      %c0_18 = arith.constant 0 : index
      %c128 = arith.constant 128 : index
      %23 = vector.load %arg9[%c0_17, %c0_18, %c128] : memref<8x8x1024xbf16, #tpu.memory_space<vmem>>, vector<7x8x256xbf16>
      %c0_19 = arith.constant 0 : index
      %c0_20 = arith.constant 0 : index
      %c256 = arith.constant 256 : index
      %24 = vector.load %arg9[%c0_19, %c0_20, %c256] : memref<8x8x1024xbf16, #tpu.memory_space<vmem>>, vector<7x8x256xbf16>
      %c0_21 = arith.constant 0 : index
      %c0_22 = arith.constant 0 : index
      %c384 = arith.constant 384 : index
      %25 = vector.load %arg9[%c0_21, %c0_22, %c384] : memref<8x8x1024xbf16, #tpu.memory_space<vmem>>, vector<7x8x256xbf16>
      %c0_23 = arith.constant 0 : index
      %c0_24 = arith.constant 0 : index
      %c512 = arith.constant 512 : index
      %26 = vector.load %arg9[%c0_23, %c0_24, %c512] : memref<8x8x1024xbf16, #tpu.memory_space<vmem>>, vector<7x8x256xbf16>
      %c0_25 = arith.constant 0 : index
      %c0_26 = arith.constant 0 : index
      %c640 = arith.constant 640 : index
      %27 = vector.load %arg9[%c0_25, %c0_26, %c640] : memref<8x8x1024xbf16, #tpu.memory_space<vmem>>, vector<7x8x256xbf16>
      %c0_27 = arith.constant 0 : index
      %c0_28 = arith.constant 0 : index
      %c768 = arith.constant 768 : index
      %28 = vector.load %arg9[%c0_27, %c0_28, %c768] : memref<8x8x1024xbf16, #tpu.memory_space<vmem>>, vector<7x8x256xbf16>
      %29 = vector.shape_cast %22 : vector<7x8x256xbf16> to vector<7x1x8x256xbf16>
      %30 = vector.shape_cast %23 : vector<7x8x256xbf16> to vector<7x1x8x256xbf16>
      %31 = vector.shape_cast %24 : vector<7x8x256xbf16> to vector<7x1x8x256xbf16>
      %32 = vector.shape_cast %25 : vector<7x8x256xbf16> to vector<7x1x8x256xbf16>
      %33 = vector.shape_cast %26 : vector<7x8x256xbf16> to vector<7x1x8x256xbf16>
      %34 = vector.shape_cast %27 : vector<7x8x256xbf16> to vector<7x1x8x256xbf16>
      %35 = vector.shape_cast %28 : vector<7x8x256xbf16> to vector<7x1x8x256xbf16>
      %36 = tpu.concatenate %29, %30, %31, %32, %33, %34, %35 in 1 : vector<7x1x8x256xbf16>, vector<7x1x8x256xbf16>, vector<7x1x8x256xbf16>, vector<7x1x8x256xbf16>, vector<7x1x8x256xbf16>, vector<7x1x8x256xbf16>, vector<7x1x8x256xbf16> -> vector<7x7x8x256xbf16>
      %37 = vector.shape_cast %36 : vector<7x7x8x256xbf16> to vector<392x256xbf16>
      %c0_29 = arith.constant 0 : index
      %c0_30 = arith.constant 0 : index
      %38 = vector.load %arg4[%c0_29, %c0_30] : memref<1024x128xbf16, #tpu.memory_space<vmem>>, vector<256x128xbf16>
      %cst_31 = arith.constant dense<0.000000e+00> : vector<392x128xf32>
      %39 = tpu.matmul %37, %38, %cst_31 {dimension_numbers = #tpu.dot_dimension_numbers<[1], [0], [0], [1], [0, 0, 1, 1], [], []>} : vector<392x256xbf16>, vector<256x128xbf16>, vector<392x128xf32> -> vector<392x128xf32>
      %40 = arith.addf %21, %39 : vector<392x128xf32>
      %c0_32 = arith.constant 0 : index
      %c0_33 = arith.constant 0 : index
      %c0_34 = arith.constant 0 : index
      %41 = vector.load %arg10[%c0_32, %c0_33, %c0_34] : memref<8x8x1024xbf16, #tpu.memory_space<vmem>>, vector<7x8x256xbf16>
      %c0_35 = arith.constant 0 : index
      %c0_36 = arith.constant 0 : index
      %c128_37 = arith.constant 128 : index
      %42 = vector.load %arg10[%c0_35, %c0_36, %c128_37] : memref<8x8x1024xbf16, #tpu.memory_space<vmem>>, vector<7x8x256xbf16>
      %c0_38 = arith.constant 0 : index
      %c0_39 = arith.constant 0 : index
      %c256_40 = arith.constant 256 : index
      %43 = vector.load %arg10[%c0_38, %c0_39, %c256_40] : memref<8x8x1024xbf16, #tpu.memory_space<vmem>>, vector<7x8x256xbf16>
      %c0_41 = arith.constant 0 : index
      %c0_42 = arith.constant 0 : index
      %c384_43 = arith.constant 384 : index
      %44 = vector.load %arg10[%c0_41, %c0_42, %c384_43] : memref<8x8x1024xbf16, #tpu.memory_space<vmem>>, vector<7x8x256xbf16>
      %c0_44 = arith.constant 0 : index
      %c0_45 = arith.constant 0 : index
      %c512_46 = arith.constant 512 : index
      %45 = vector.load %arg10[%c0_44, %c0_45, %c512_46] : memref<8x8x1024xbf16, #tpu.memory_space<vmem>>, vector<7x8x256xbf16>
      %c0_47 = arith.constant 0 : index
      %c0_48 = arith.constant 0 : index
      %c640_49 = arith.constant 640 : index
      %46 = vector.load %arg10[%c0_47, %c0_48, %c640_49] : memref<8x8x1024xbf16, #tpu.memory_space<vmem>>, vector<7x8x256xbf16>
      %c0_50 = arith.constant 0 : index
      %c0_51 = arith.constant 0 : index
      %c768_52 = arith.constant 768 : index
      %47 = vector.load %arg10[%c0_50, %c0_51, %c768_52] : memref<8x8x1024xbf16, #tpu.memory_space<vmem>>, vector<7x8x256xbf16>
      %48 = vector.shape_cast %41 : vector<7x8x256xbf16> to vector<7x1x8x256xbf16>
      %49 = vector.shape_cast %42 : vector<7x8x256xbf16> to vector<7x1x8x256xbf16>
      %50 = vector.shape_cast %43 : vector<7x8x256xbf16> to vector<7x1x8x256xbf16>
      %51 = vector.shape_cast %44 : vector<7x8x256xbf16> to vector<7x1x8x256xbf16>
      %52 = vector.shape_cast %45 : vector<7x8x256xbf16> to vector<7x1x8x256xbf16>
      %53 = vector.shape_cast %46 : vector<7x8x256xbf16> to vector<7x1x8x256xbf16>
      %54 = vector.shape_cast %47 : vector<7x8x256xbf16> to vector<7x1x8x256xbf16>
      %55 = tpu.concatenate %48, %49, %50, %51, %52, %53, %54 in 1 : vector<7x1x8x256xbf16>, vector<7x1x8x256xbf16>, vector<7x1x8x256xbf16>, vector<7x1x8x256xbf16>, vector<7x1x8x256xbf16>, vector<7x1x8x256xbf16>, vector<7x1x8x256xbf16> -> vector<7x7x8x256xbf16>
      %56 = vector.shape_cast %55 : vector<7x7x8x256xbf16> to vector<392x256xbf16>
      %c256_53 = arith.constant 256 : index
      %c0_54 = arith.constant 0 : index
      %57 = vector.load %arg4[%c256_53, %c0_54] : memref<1024x128xbf16, #tpu.memory_space<vmem>>, vector<256x128xbf16>
      %cst_55 = arith.constant dense<0.000000e+00> : vector<392x128xf32>
      %58 = tpu.matmul %56, %57, %cst_55 {dimension_numbers = #tpu.dot_dimension_numbers<[1], [0], [0], [1], [0, 0, 1, 1], [], []>} : vector<392x256xbf16>, vector<256x128xbf16>, vector<392x128xf32> -> vector<392x128xf32>
      %59 = arith.addf %40, %58 : vector<392x128xf32>
      %c1_56 = arith.constant 1 : index
      %c0_57 = arith.constant 0 : index
      %c0_58 = arith.constant 0 : index
      %60 = vector.load %arg9[%c1_56, %c0_57, %c0_58] : memref<8x8x1024xbf16, #tpu.memory_space<vmem>>, vector<7x8x256xbf16>
      %c1_59 = arith.constant 1 : index
      %c0_60 = arith.constant 0 : index
      %c128_61 = arith.constant 128 : index
      %61 = vector.load %arg9[%c1_59, %c0_60, %c128_61] : memref<8x8x1024xbf16, #tpu.memory_space<vmem>>, vector<7x8x256xbf16>
      %c1_62 = arith.constant 1 : index
      %c0_63 = arith.constant 0 : index
      %c256_64 = arith.constant 256 : index
      %62 = vector.load %arg9[%c1_62, %c0_63, %c256_64] : memref<8x8x1024xbf16, #tpu.memory_space<vmem>>, vector<7x8x256xbf16>
      %c1_65 = arith.constant 1 : index
      %c0_66 = arith.constant 0 : index
      %c384_67 = arith.constant 384 : index
      %63 = vector.load %arg9[%c1_65, %c0_66, %c384_67] : memref<8x8x1024xbf16, #tpu.memory_space<vmem>>, vector<7x8x256xbf16>
      %c1_68 = arith.constant 1 : index
      %c0_69 = arith.constant 0 : index
      %c512_70 = arith.constant 512 : index
      %64 = vector.load %arg9[%c1_68, %c0_69, %c512_70] : memref<8x8x1024xbf16, #tpu.memory_space<vmem>>, vector<7x8x256xbf16>
      %c1_71 = arith.constant 1 : index
      %c0_72 = arith.constant 0 : index
      %c640_73 = arith.constant 640 : index
      %65 = vector.load %arg9[%c1_71, %c0_72, %c640_73] : memref<8x8x1024xbf16, #tpu.memory_space<vmem>>, vector<7x8x256xbf16>
      %c1_74 = arith.constant 1 : index
      %c0_75 = arith.constant 0 : index
      %c768_76 = arith.constant 768 : index
      %66 = vector.load %arg9[%c1_74, %c0_75, %c768_76] : memref<8x8x1024xbf16, #tpu.memory_space<vmem>>, vector<7x8x256xbf16>
      %67 = vector.shape_cast %60 : vector<7x8x256xbf16> to vector<7x1x8x256xbf16>
      %68 = vector.shape_cast %61 : vector<7x8x256xbf16> to vector<7x1x8x256xbf16>
      %69 = vector.shape_cast %62 : vector<7x8x256xbf16> to vector<7x1x8x256xbf16>
      %70 = vector.shape_cast %63 : vector<7x8x256xbf16> to vector<7x1x8x256xbf16>
      %71 = vector.shape_cast %64 : vector<7x8x256xbf16> to vector<7x1x8x256xbf16>
      %72 = vector.shape_cast %65 : vector<7x8x256xbf16> to vector<7x1x8x256xbf16>
      %73 = vector.shape_cast %66 : vector<7x8x256xbf16> to vector<7x1x8x256xbf16>
      %74 = tpu.concatenate %67, %68, %69, %70, %71, %72, %73 in 1 : vector<7x1x8x256xbf16>, vector<7x1x8x256xbf16>, vector<7x1x8x256xbf16>, vector<7x1x8x256xbf16>, vector<7x1x8x256xbf16>, vector<7x1x8x256xbf16>, vector<7x1x8x256xbf16> -> vector<7x7x8x256xbf16>
      %75 = vector.shape_cast %74 : vector<7x7x8x256xbf16> to vector<392x256xbf16>
      %c512_77 = arith.constant 512 : index
      %c0_78 = arith.constant 0 : index
      %76 = vector.load %arg4[%c512_77, %c0_78] : memref<1024x128xbf16, #tpu.memory_space<vmem>>, vector<256x128xbf16>
      %cst_79 = arith.constant dense<0.000000e+00> : vector<392x128xf32>
      %77 = tpu.matmul %75, %76, %cst_79 {dimension_numbers = #tpu.dot_dimension_numbers<[1], [0], [0], [1], [0, 0, 1, 1], [], []>} : vector<392x256xbf16>, vector<256x128xbf16>, vector<392x128xf32> -> vector<392x128xf32>
      %78 = arith.addf %59, %77 : vector<392x128xf32>
      %c1_80 = arith.constant 1 : index
      %c0_81 = arith.constant 0 : index
      %c0_82 = arith.constant 0 : index
      %79 = vector.load %arg10[%c1_80, %c0_81, %c0_82] : memref<8x8x1024xbf16, #tpu.memory_space<vmem>>, vector<7x8x256xbf16>
      %c1_83 = arith.constant 1 : index
      %c0_84 = arith.constant 0 : index
      %c128_85 = arith.constant 128 : index
      %80 = vector.load %arg10[%c1_83, %c0_84, %c128_85] : memref<8x8x1024xbf16, #tpu.memory_space<vmem>>, vector<7x8x256xbf16>
      %c1_86 = arith.constant 1 : index
      %c0_87 = arith.constant 0 : index
      %c256_88 = arith.constant 256 : index
      %81 = vector.load %arg10[%c1_86, %c0_87, %c256_88] : memref<8x8x1024xbf16, #tpu.memory_space<vmem>>, vector<7x8x256xbf16>
      %c1_89 = arith.constant 1 : index
      %c0_90 = arith.constant 0 : index
      %c384_91 = arith.constant 384 : index
      %82 = vector.load %arg10[%c1_89, %c0_90, %c384_91] : memref<8x8x1024xbf16, #tpu.memory_space<vmem>>, vector<7x8x256xbf16>
      %c1_92 = arith.constant 1 : index
      %c0_93 = arith.constant 0 : index
      %c512_94 = arith.constant 512 : index
      %83 = vector.load %arg10[%c1_92, %c0_93, %c512_94] : memref<8x8x1024xbf16, #tpu.memory_space<vmem>>, vector<7x8x256xbf16>
      %c1_95 = arith.constant 1 : index
      %c0_96 = arith.constant 0 : index
      %c640_97 = arith.constant 640 : index
      %84 = vector.load %arg10[%c1_95, %c0_96, %c640_97] : memref<8x8x1024xbf16, #tpu.memory_space<vmem>>, vector<7x8x256xbf16>
      %c1_98 = arith.constant 1 : index
      %c0_99 = arith.constant 0 : index
      %c768_100 = arith.constant 768 : index
      %85 = vector.load %arg10[%c1_98, %c0_99, %c768_100] : memref<8x8x1024xbf16, #tpu.memory_space<vmem>>, vector<7x8x256xbf16>
      %86 = vector.shape_cast %79 : vector<7x8x256xbf16> to vector<7x1x8x256xbf16>
      %87 = vector.shape_cast %80 : vector<7x8x256xbf16> to vector<7x1x8x256xbf16>
      %88 = vector.shape_cast %81 : vector<7x8x256xbf16> to vector<7x1x8x256xbf16>
      %89 = vector.shape_cast %82 : vector<7x8x256xbf16> to vector<7x1x8x256xbf16>
      %90 = vector.shape_cast %83 : vector<7x8x256xbf16> to vector<7x1x8x256xbf16>
      %91 = vector.shape_cast %84 : vector<7x8x256xbf16> to vector<7x1x8x256xbf16>
      %92 = vector.shape_cast %85 : vector<7x8x256xbf16> to vector<7x1x8x256xbf16>
      %93 = tpu.concatenate %86, %87, %88, %89, %90, %91, %92 in 1 : vector<7x1x8x256xbf16>, vector<7x1x8x256xbf16>, vector<7x1x8x256xbf16>, vector<7x1x8x256xbf16>, vector<7x1x8x256xbf16>, vector<7x1x8x256xbf16>, vector<7x1x8x256xbf16> -> vector<7x7x8x256xbf16>
      %94 = vector.shape_cast %93 : vector<7x7x8x256xbf16> to vector<392x256xbf16>
      %c768_101 = arith.constant 768 : index
      %c0_102 = arith.constant 0 : index
      %95 = vector.load %arg4[%c768_101, %c0_102] : memref<1024x128xbf16, #tpu.memory_space<vmem>>, vector<256x128xbf16>
      %cst_103 = arith.constant dense<0.000000e+00> : vector<392x128xf32>
      %96 = tpu.matmul %94, %95, %cst_103 {dimension_numbers = #tpu.dot_dimension_numbers<[1], [0], [0], [1], [0, 0, 1, 1], [], []>} : vector<392x256xbf16>, vector<256x128xbf16>, vector<392x128xf32> -> vector<392x128xf32>
      %97 = arith.addf %78, %96 : vector<392x128xf32>
      %cst_104 = arith.constant dense<0.000000e+00> : vector<128xf32>
      %98 = vector.multi_reduction <add>, %97, %cst_104 [0] : vector<392x128xf32> to vector<128xf32>
      %99 = vector.shape_cast %98 : vector<128xf32> to vector<1x128xf32>
      %100 = arith.mulf %97, %97 : vector<392x128xf32>
      %cst_105 = arith.constant dense<0.000000e+00> : vector<128xf32>
      %101 = vector.multi_reduction <add>, %100, %cst_105 [0] : vector<392x128xf32> to vector<128xf32>
      %102 = vector.shape_cast %101 : vector<128xf32> to vector<1x128xf32>
      %c0_106 = arith.constant 0 : index
      %c0_107 = arith.constant 0 : index
      %103 = vector.load %arg12[%c0_106, %c0_107] : memref<2x128xf32, #tpu.memory_space<vmem>>, vector<2x128xf32>
      %104 = tpu.concatenate %99, %102 in 0 : vector<1x128xf32>, vector<1x128xf32> -> vector<2x128xf32>
      %105 = arith.addf %103, %104 : vector<2x128xf32>
      %c0_108 = arith.constant 0 : index
      %c0_109 = arith.constant 0 : index
      %106 = vector.load %arg12[%c0_108, %c0_109] : memref<2x128xf32, #tpu.memory_space<vmem>>, vector<2x128xf32>
      tpu.vector_store %arg12[%c0_108, %c0_109], %105 {strides = array<i32>} : memref<2x128xf32, #tpu.memory_space<vmem>>, vector<2x128xf32>,
      %107 = arith.truncf %97 : vector<392x128xf32> to vector<392x128xbf16>
      %108 = arith.index_cast %arg1 : i32 to index
      %c0_110 = arith.constant 0 : index
      %c0_111 = arith.constant 0 : index
      %109 = vector.load %arg11[%108, %c0_110, %c0_111] : memref<1x392x128xbf16, #tpu.memory_space<vmem>>, vector<1x392x128xbf16>
      %110 = vector.shape_cast %109 : vector<1x392x128xbf16> to vector<392x128xbf16>
      %111 = vector.shape_cast %107 : vector<392x128xbf16> to vector<1x392x128xbf16>
      tpu.vector_store %arg11[%108, %c0_110, %c0_111], %111 {strides = array<i32>} : memref<1x392x128xbf16, #tpu.memory_space<vmem>>, vector<1x392x128xbf16>,
    } else {
    }
    %c1_i32 = arith.constant 1 : i32
    %3 = arith.cmpi eq, %arg0, %c1_i32 : i32
    %4 = arith.extui %3 : i1 to i32
    %c0_i32_1 = arith.constant 0 : i32
    %5 = arith.cmpi ne, %4, %c0_i32_1 : i32
    scf.if %5 {
      %c0_i32_2 = arith.constant 0 : i32
      %6 = arith.cmpi eq, %arg1, %c0_i32_2 : i32
      %7 = arith.extui %6 : i1 to i32
      %c0_i32_3 = arith.constant 0 : i32
      %8 = arith.cmpi ne, %7, %c0_i32_3 : i32
      scf.if %8 {
        %c0_14 = arith.constant 0 : index
        %c0_15 = arith.constant 0 : index
        %39 = vector.load %arg12[%c0_14, %c0_15] : memref<2x128xf32, #tpu.memory_space<vmem>>, vector<2x128xf32>
        %40 = vector.extract_strided_slice %39 {offsets = [0, 0], sizes = [1, 128], strides = [1, 1]} : vector<2x128xf32> to vector<1x128xf32>
        %cst_16 = arith.constant 0.0102040814 : f32
        %41 = vector.broadcast %cst_16 : f32 to vector<1x128xf32>
        %42 = arith.mulf %40, %41 : vector<1x128xf32>
        %43 = vector.extract_strided_slice %39 {offsets = [1, 0], sizes = [1, 128], strides = [1, 1]} : vector<2x128xf32> to vector<1x128xf32>
        %cst_17 = arith.constant 0.0102040814 : f32
        %44 = vector.broadcast %cst_17 : f32 to vector<1x128xf32>
        %45 = arith.mulf %43, %44 : vector<1x128xf32>
        %46 = arith.mulf %42, %42 : vector<1x128xf32>
        %47 = arith.subf %45, %46 : vector<1x128xf32>
        %c0_18 = arith.constant 0 : index
        %c0_19 = arith.constant 0 : index
        %48 = vector.load %arg6[%c0_18, %c0_19] : memref<1x128xf32, #tpu.memory_space<vmem>>, vector<1x128xf32>
        %cst_20 = arith.constant 9.99999974E-6 : f32
        %49 = vector.broadcast %cst_20 : f32 to vector<1x128xf32>
        %50 = arith.addf %47, %49 : vector<1x128xf32>
        %51 = math.rsqrt %50 : vector<1x128xf32>
        %52 = arith.mulf %48, %51 : vector<1x128xf32>
        %c0_21 = arith.constant 0 : index
        %c0_22 = arith.constant 0 : index
        %53 = vector.load %arg7[%c0_21, %c0_22] : memref<1x128xf32, #tpu.memory_space<vmem>>, vector<1x128xf32>
        %54 = arith.mulf %42, %52 : vector<1x128xf32>
        %55 = arith.subf %53, %54 : vector<1x128xf32>
        %56 = tpu.concatenate %52, %55 in 0 : vector<1x128xf32>, vector<1x128xf32> -> vector<2x128xf32>
        %c0_23 = arith.constant 0 : index
        %c0_24 = arith.constant 0 : index
        %57 = vector.load %arg12[%c0_23, %c0_24] : memref<2x128xf32, #tpu.memory_space<vmem>>, vector<2x128xf32>
        tpu.vector_store %arg12[%c0_23, %c0_24], %56 {strides = array<i32>} : memref<2x128xf32, #tpu.memory_space<vmem>>, vector<2x128xf32>,
      } else {
      }
      %c0 = arith.constant 0 : index
      %c0_4 = arith.constant 0 : index
      %9 = vector.load %arg12[%c0, %c0_4] : memref<2x128xf32, #tpu.memory_space<vmem>>, vector<2x128xf32>
      %10 = vector.extract_strided_slice %9 {offsets = [0, 0], sizes = [1, 128], strides = [1, 1]} : vector<2x128xf32> to vector<1x128xf32>
      %11 = vector.extract_strided_slice %9 {offsets = [1, 0], sizes = [1, 128], strides = [1, 1]} : vector<2x128xf32> to vector<1x128xf32>
      %12 = arith.index_cast %arg1 : i32 to index
      %c0_5 = arith.constant 0 : index
      %c0_6 = arith.constant 0 : index
      %13 = vector.load %arg11[%12, %c0_5, %c0_6] : memref<1x392x128xbf16, #tpu.memory_space<vmem>>, vector<1x392x128xbf16>
      %14 = vector.shape_cast %13 : vector<1x392x128xbf16> to vector<392x128xbf16>
      %15 = arith.extf %14 : vector<392x128xbf16> to vector<392x128xf32>
      %16 = vector.broadcast %10 : vector<1x128xf32> to vector<392x128xf32>
      %17 = arith.mulf %15, %16 : vector<392x128xf32>
      %18 = vector.broadcast %11 : vector<1x128xf32> to vector<392x128xf32>
      %19 = arith.addf %17, %18 : vector<392x128xf32>
      %cst = arith.constant 2.000000e-01 : f32
      %20 = vector.broadcast %cst : f32 to vector<392x128xf32>
      %21 = arith.mulf %20, %19 : vector<392x128xf32>
      %22 = arith.maximumf %19, %21 : vector<392x128xf32>
      %23 = vector.shape_cast %22 : vector<392x128xf32> to vector<49x8x128xf32>
      %c0_7 = arith.constant 0 : index
      %c0_8 = arith.constant 0 : index
      %24 = vector.load %arg5[%c0_7, %c0_8] : memref<49x128xf32, #tpu.memory_space<vmem>>, vector<49x128xf32>
      %25 = vector.shape_cast %24 : vector<49x128xf32> to vector<49x1x128xf32>
      %26 = vector.broadcast %25 : vector<49x1x128xf32> to vector<49x8x128xf32>
      %27 = arith.mulf %23, %26 : vector<49x8x128xf32>
      %cst_9 = arith.constant dense<0.000000e+00> : vector<8x128xf32>
      %28 = vector.multi_reduction <add>, %27, %cst_9 [0] : vector<49x8x128xf32> to vector<8x128xf32>
      %cst_10 = arith.constant dense<0.000000e+00> : vector<8xf32>
      %29 = vector.multi_reduction <add>, %28, %cst_10 [1] : vector<8x128xf32> to vector<8xf32>
      %30 = vector.shape_cast %29 : vector<8xf32> to vector<8x1xf32>
      %31 = arith.negf %30 : vector<8x1xf32>
      %32 = math.exp %31 : vector<8x1xf32>
      %cst_11 = arith.constant 1.000000e+00 : f32
      %33 = vector.broadcast %cst_11 : f32 to vector<8x1xf32>
      %34 = arith.addf %33, %32 : vector<8x1xf32>
      %35 = arith.divf %33, %34 : vector<8x1xf32>
      %36 = vector.shape_cast %35 : vector<8x1xf32> to vector<8x1xf32>
      %37 = vector.broadcast %36 : vector<8x1xf32> to vector<8x128xf32>
      %c0_12 = arith.constant 0 : index
      %c0_13 = arith.constant 0 : index
      %38 = vector.load %arg8[%c0_12, %c0_13] : memref<8x128xf32, #tpu.memory_space<vmem>>, vector<8x128xf32>
      tpu.vector_store %arg8[%c0_12, %c0_13], %37 {strides = array<i32>} : memref<8x128xf32, #tpu.memory_space<vmem>>, vector<8x128xf32>,
    } else {
    }
    return
  }
  func.func @transform_0(%arg0: i32, %arg1: i32) -> (i32, i32) {
    %c1_i32 = arith.constant 1 : i32
    %0 = arith.subi %c1_i32, %arg0 : i32
    %1 = arith.muli %0, %arg1 : i32
    %c0_i32 = arith.constant 0 : i32
    %2 = arith.muli %arg0, %c0_i32 : i32
    %3 = arith.addi %1, %2 : i32
    %c0_i32_0 = arith.constant 0 : i32
    %c0_i32_1 = arith.constant 0 : i32
    return %3, %c0_i32_0 : i32, i32
  }
  func.func @transform_1(%arg0: i32, %arg1: i32) -> (i32, i32) {
    %c0_i32 = arith.constant 0 : i32
    %c0_i32_0 = arith.constant 0 : i32
    %c0_i32_1 = arith.constant 0 : i32
    return %c0_i32, %c0_i32_0 : i32, i32
  }
  func.func @transform_2(%arg0: i32, %arg1: i32) -> (i32, i32) {
    %c0_i32 = arith.constant 0 : i32
    %c0_i32_0 = arith.constant 0 : i32
    %c0_i32_1 = arith.constant 0 : i32
    return %c0_i32, %c0_i32_0 : i32, i32
  }
  func.func @transform_3(%arg0: i32, %arg1: i32) -> (i32, i32) {
    %c0_i32 = arith.constant 0 : i32
    %c0_i32_0 = arith.constant 0 : i32
    %c0_i32_1 = arith.constant 0 : i32
    return %c0_i32, %c0_i32_0 : i32, i32
  }
  func.func @transform_4(%arg0: i32, %arg1: i32) -> (i32, i32) {
    %c0_i32 = arith.constant 0 : i32
    %c0_i32_0 = arith.constant 0 : i32
    %c0_i32_1 = arith.constant 0 : i32
    return %c0_i32, %c0_i32_0 : i32, i32
  }
  func.func @transform_5(%arg0: i32, %arg1: i32) -> (i32, i32) {
    %c0_i32 = arith.constant 0 : i32
    %c0_i32_0 = arith.constant 0 : i32
    %c0_i32_1 = arith.constant 0 : i32
    return %c0_i32, %c0_i32_0 : i32, i32
  }
  func.func @transform_6(%arg0: i32, %arg1: i32) -> (i32, i32) {
    %c0_i32 = arith.constant 0 : i32
    %c0_i32_0 = arith.constant 0 : i32
    return %arg1, %c0_i32 : i32, i32
  }
}

</mosaic_0001>

<bundles_post_ra>
// kernel: netd_forward.1
= control target key start
LH: loop header
LB: loop body
LE: loop exit
PB: predicated region body
PF: predicated region fallthrough
CT: control target
= control target key end

     0   :  { %s7369_s21 = smov 0   ;;  %s7371_s22 = smov 0   ;;  %s9679_s0 = inlined_call_operand.vmem [shape: bf16[112,128], index: 0, kind: input, shape index: {}]   ;;  %s9680_s1 = inlined_call_operand.vmem [shape: bf16[128,1024], index: 1, kind: input, shape index: {}]   ;;  %s9681_s2 = inlined_call_operand.vmem [shape: bf16[1024,128], index: 2, kind: input, shape index: {}]   ;;  %s9682_s3 = inlined_call_operand.vmem [shape: f32[49,128], index: 3, kind: input, shape index: {}]   ;;  %s9683_s4 = inlined_call_operand.vmem [shape: f32[1,128], index: 4, kind: input, shape index: {}]   ;;  %s9684_s5 = inlined_call_operand.vmem [shape: f32[1,128], index: 5, kind: input, shape index: {}]   ;;  %s9685_s6 = inlined_call_operand.vmem [shape: f32[8,128], index: 6, kind: output, shape index: {}]  }
   0x1   :  { %s7373_s23 = smov 0  }
   0x2 LB: > { %s28_s24 = sadd.s32 1, %s7325_s22  ;;  %p5994_p0 = scmp.ge.s32.totalorder %s7329_s23, 1  ;;  %s7329_s23 = sphi %s7373_s23, %s16_s23   ;;  %s7325_s22 = sphi %s7371_s22, %s10273_s22   ;;  %s7321_s21 = sphi %s7369_s21, %s10272_s21  }
   0x3   : > { %p30_p1 = scmp.ge.s32.totalorder %s28_s24, 2  ;;  %p233_p2 = scmp.lt.s32.totalorder %s7329_s23, 3 }
   0x5   : > { %s10275_s24 = smov (%p30_p1, %s28_s24), 0  ;;  %p234_p3 = pnand %p5994_p0, %p233_p2 }
   0x6   : > { %p5995_p4 = scmp.ne.s32.totalorder (!%p234_p3), %s7321_s21, 0 }
   0x7   : > { %237 = sbr.rel (%p234_p3) target bundleno = 1413 (0x585), region = 44 }
   0xe   : > { %282 = sbr.rel (%p5995_p4) target bundleno = 988 (0x3dc), region = 48 }
  0x15   : > { %v311_v0 = vld [vmem:[%s9680_s1] sm:$0xff]  ;;  %v312_v2 = vld [vmem:[%s9680_s1 + $0x8] sm:$0xff]  ;;  %v7331_v8 = vmov 0   ;;  %v313_v63 = vld [vmem:[%s9680_s1 + $0x10] sm:$0xff]  ;;  %vm4647_vm0 = vcmask 1040384  }
  0x16   : > { %v315_v1 = vld [vmem:[%s9680_s1 + $0x20] sm:$0xff]  ;;  %v316_v4 = vld [vmem:[%s9680_s1 + $0x28] sm:$0xff]  ;;  %769 = vmatprep.mubr.bf16.mxu0 %v7331_v8  ;;  %288 = vst [vmem:[#allocation2] sm:$0xff] %v7331_v8  ;;  %289 = vst [vmem:[#allocation2 + $0x8] sm:$0xff] %v7331_v8  ;;  %872 = vmatprep.mubr.bf16.mxu1 %v7331_v8 }
  0x17   : > { %v6004_v3 = vcombine.high %v311_v0, %v315_v1  ;;  %v6003_v5 = vcombine.low %v311_v0, %v315_v1  ;;  %v319_v6 = vld [vmem:[%s9680_s1 + $0x40] sm:$0xff]  ;;  %290 = vst [vmem:[#allocation2 + $0x10] sm:$0xff] %v7331_v8  ;;  %291 = vst [vmem:[#allocation2 + $0x18] sm:$0xff] %v7331_v8  ;;  %v6006_v9 = vcombine.high %v312_v2, %v316_v4  ;;  %v320_v12 = vld [vmem:[%s9680_s1 + $0x48] sm:$0xff] }
  0x18   : > { %v323_v7 = vld [vmem:[%s9680_s1 + $0x60] sm:$0xff]  ;;  %293 = vst [vmem:[#allocation3 + $0xe0] sm:$0xff] %v7331_v8  ;;  %294 = vst [vmem:[#allocation3 + $0xe8] sm:$0xff] %v7331_v8  ;;  %v6005_v10 = vcombine.low %v312_v2, %v316_v4  ;;  %v324_v13 = vld [vmem:[%s9680_s1 + $0x68] sm:$0xff] }
  0x19   : > { %295 = vst [vmem:[#allocation3 + $0xf0] sm:$0xff] %v7331_v8  ;;  %296 = vst [vmem:[#allocation3 + $0xf8] sm:$0xff] %v7331_v8  ;;  %v6012_v11 = vcombine.high %v319_v6, %v323_v7  ;;  %v327_v14 = vld [vmem:[%s9680_s1 + $0x80] sm:$0xff]  ;;  %737 = vmatprep.subr.bf16.mxu0 %v6004_v3  ;;  %v6014_v15 = vcombine.high %v320_v12, %v324_v13  ;;  %v328_v17 = vld [vmem:[%s9680_s1 + $0x88] sm:$0xff]  ;;  %840 = vmatprep.subr.bf16.mxu1 %v6006_v9 }
  0x1a   : > { %v331_v16 = vld [vmem:[%s9680_s1 + $0xa0] sm:$0xff]  ;;  %v332_v18 = vld [vmem:[%s9680_s1 + $0xa8] sm:$0xff]  ;;  %738 = vmatpush1.bf16.msra.mxu0 %v6003_v5  ;;  %v6011_v19 = vcombine.low %v319_v6, %v323_v7  ;;  %841 = vmatpush1.bf16.msra.mxu1 %v6005_v10  ;;  %v6013_v20 = vcombine.low %v320_v12, %v324_v13  ;;  %v317_v0 = vld [vmem:[%s9680_s1 + $0x30] sm:$0xff] }
  0x1b   : > { %739 = vmatprep.subr.bf16.mxu0 %v6012_v11  ;;  %v6020_v21 = vcombine.high %v327_v14, %v331_v16  ;;  %842 = vmatprep.subr.bf16.mxu1 %v6014_v15  ;;  %v6022_v22 = vcombine.high %v328_v17, %v332_v18  ;;  %v335_v23 = vld [vmem:[%s9680_s1 + $0xc0] sm:$0xff]  ;;  %v336_v25 = vld [vmem:[%s9680_s1 + $0xc8] sm:$0xff]  ;;  %v6019_v27 = vcombine.low %v327_v14, %v331_v16  ;;  %v314_v1 = vld [vmem:[%s9680_s1 + $0x18] sm:$0xff] }
  0x1c   : > { %v339_v24 = vld [vmem:[%s9680_s1 + $0xe0] sm:$0xff]  ;;  %v340_v26 = vld [vmem:[%s9680_s1 + $0xe8] sm:$0xff]  ;;  %v6021_v28 = vcombine.low %v328_v17, %v332_v18  ;;  %v318_v2 = vld [vmem:[%s9680_s1 + $0x38] sm:$0xff]  ;;  %v6008_v6 = vcombine.high %v313_v63, %v317_v0  ;;  %v6007_v12 = vcombine.low %v313_v63, %v317_v0 }
  0x1d   : > { %v6028_v29 = vcombine.high %v335_v23, %v339_v24  ;;  %v6030_v30 = vcombine.high %v336_v25, %v340_v26  ;;  %v343_v31 = vld [vmem:[%s9680_s1 + $0x100] sm:$0xff]  ;;  %v344_v33 = vld [vmem:[%s9680_s1 + $0x108] sm:$0xff]  ;;  %v6027_v35 = vcombine.low %v335_v23, %v339_v24  ;;  %v6029_v36 = vcombine.low %v336_v25, %v340_v26  ;;  %v321_v7 = vld [vmem:[%s9680_s1 + $0x50] sm:$0xff] }
  0x1e   : > { %740 = vmatpush1.bf16.msra.mxu0 %v6011_v19  ;;  %843 = vmatpush1.bf16.msra.mxu1 %v6013_v20  ;;  %v347_v32 = vld [vmem:[%s9680_s1 + $0x120] sm:$0xff]  ;;  %v348_v34 = vld [vmem:[%s9680_s1 + $0x128] sm:$0xff]  ;;  %v325_v9 = vld [vmem:[%s9680_s1 + $0x70] sm:$0xff]  ;;  %v6010_v10 = vcombine.high %v314_v1, %v318_v2  ;;  %v6009_v16 = vcombine.low %v314_v1, %v318_v2 }
  0x1f   : > { %741 = vmatprep.subr.bf16.mxu0 %v6020_v21  ;;  %844 = vmatprep.subr.bf16.mxu1 %v6022_v22  ;;  %v6036_v37 = vcombine.high %v343_v31, %v347_v32  ;;  %v6038_v38 = vcombine.high %v344_v33, %v348_v34  ;;  %v351_v39 = vld [vmem:[%s9680_s1 + $0x140] sm:$0xff]  ;;  %v352_v41 = vld [vmem:[%s9680_s1 + $0x148] sm:$0xff]  ;;  %v6035_v43 = vcombine.low %v343_v31, %v347_v32  ;;  %v322_v11 = vld [vmem:[%s9680_s1 + $0x58] sm:$0xff] }
  0x20   : > { %v355_v40 = vld [vmem:[%s9680_s1 + $0x160] sm:$0xff]  ;;  %v356_v42 = vld [vmem:[%s9680_s1 + $0x168] sm:$0xff]  ;;  %v6037_v44 = vcombine.low %v344_v33, %v348_v34  ;;  %v326_v13 = vld [vmem:[%s9680_s1 + $0x78] sm:$0xff]  ;;  %v6016_v15 = vcombine.high %v321_v7, %v325_v9  ;;  %v6015_v20 = vcombine.low %v321_v7, %v325_v9 }
  0x21   : > { %v6044_v45 = vcombine.high %v351_v39, %v355_v40  ;;  %v359_v46 = vld [vmem:[%s9680_s1 + $0x180] sm:$0xff]  ;;  %v6046_v47 = vcombine.high %v352_v41, %v356_v42  ;;  %v360_v49 = vld [vmem:[%s9680_s1 + $0x188] sm:$0xff]  ;;  %v6043_v51 = vcombine.low %v351_v39, %v355_v40  ;;  %v6045_v52 = vcombine.low %v352_v41, %v356_v42  ;;  %v329_v14 = vld [vmem:[%s9680_s1 + $0x90] sm:$0xff] }
  0x22   : > { %742 = vmatpush1.bf16.msra.mxu0 %v6019_v27  ;;  %845 = vmatpush1.bf16.msra.mxu1 %v6021_v28  ;;  %v363_v48 = vld [vmem:[%s9680_s1 + $0x1a0] sm:$0xff]  ;;  %v364_v50 = vld [vmem:[%s9680_s1 + $0x1a8] sm:$0xff]  ;;  %v333_v17 = vld [vmem:[%s9680_s1 + $0xb0] sm:$0xff]  ;;  %v6018_v18 = vcombine.high %v322_v11, %v326_v13  ;;  %v6017_v25 = vcombine.low %v322_v11, %v326_v13 }
  0x23   : > { %743 = vmatprep.subr.bf16.mxu0 %v6028_v29  ;;  %846 = vmatprep.subr.bf16.mxu1 %v6030_v30  ;;  %v6052_v53 = vcombine.high %v359_v46, %v363_v48  ;;  %v6054_v54 = vcombine.high %v360_v49, %v364_v50  ;;  %v367_v55 = vld [vmem:[%s9680_s1 + $0x1c0] sm:$0xff]  ;;  %v368_v57 = vld [vmem:[%s9680_s1 + $0x1c8] sm:$0xff]  ;;  %v6051_v59 = vcombine.low %v359_v46, %v363_v48  ;;  %v330_v19 = vld [vmem:[%s9680_s1 + $0x98] sm:$0xff] }
  0x24   : > { %v371_v56 = vld [vmem:[%s9680_s1 + $0x1e0] sm:$0xff]  ;;  %v372_v58 = vld [vmem:[%s9680_s1 + $0x1e8] sm:$0xff]  ;;  %v6053_v60 = vcombine.low %v360_v49, %v364_v50  ;;  %v334_v21 = vld [vmem:[%s9680_s1 + $0xb8] sm:$0xff]  ;;  %v6024_v23 = vcombine.high %v329_v14, %v333_v17  ;;  %v6023_v30 = vcombine.low %v329_v14, %v333_v17 }
  0x25   : > { %v6060_v61 = vcombine.high %v367_v55, %v371_v56  ;;  %v6062_v62 = vcombine.high %v368_v57, %v372_v58  ;;  %v6059_v3 = vcombine.low %v367_v55, %v371_v56  ;;  %v6061_v4 = vcombine.low %v368_v57, %v372_v58  ;;  %v7511_v5 = vld [vmem:[%s9679_s0] sm:$0xff]   ;;  %v7544_v22 = vld [vmem:[%s9679_s0 + $0x8] sm:$0xff]   ;;  %v337_v24 = vld [vmem:[%s9680_s1 + $0xd0] sm:$0xff] }
  0x26   : > { %744 = vmatpush1.bf16.msra.mxu0 %v6027_v35  ;;  %847 = vmatpush1.bf16.msra.mxu1 %v6029_v36  ;;  %v341_v26 = vld [vmem:[%s9680_s1 + $0xf0] sm:$0xff]  ;;  %v6026_v27 = vcombine.high %v330_v19, %v334_v21  ;;  %v338_v28 = vld [vmem:[%s9680_s1 + $0xd8] sm:$0xff]  ;;  %v6025_v33 = vcombine.low %v330_v19, %v334_v21  ;;  %v7642_v9 = vld [vmem:[%s9679_s0 + $0x28] sm:$0xff]  }
  0x27   : > { %745 = vmatprep.subr.bf16.mxu0 %v6036_v37  ;;  %848 = vmatprep.subr.bf16.mxu1 %v6038_v38  ;;  %v342_v29 = vld [vmem:[%s9680_s1 + $0xf8] sm:$0xff]  ;;  %v345_v31 = vld [vmem:[%s9680_s1 + $0x110] sm:$0xff]  ;;  %v6032_v32 = vcombine.high %v337_v24, %v341_v26  ;;  %v6031_v39 = vcombine.low %v337_v24, %v341_v26  ;;  %v7092_v11 = vld [vmem:[%s9681_s2 + $0x100] sm:$0xff]  }
  0x28   : > { %v349_v34 = vld [vmem:[%s9680_s1 + $0x130] sm:$0xff]  ;;  %v6034_v35 = vcombine.high %v338_v28, %v342_v29  ;;  %v346_v36 = vld [vmem:[%s9680_s1 + $0x118] sm:$0xff]  ;;  %v7093_v13 = vld [vmem:[%s9681_s2 + $0x108] sm:$0xff]  }
  0x29   : > { %v350_v37 = vld [vmem:[%s9680_s1 + $0x138] sm:$0xff]  ;;  %v7577_v38 = vld [vmem:[%s9679_s0 + $0x10] sm:$0xff]   ;;  %v6040_v42 = vcombine.high %v345_v31, %v349_v34  ;;  %v7101_v14 = vld [vmem:[%s9681_s2 + $0x88] sm:$0xff]  }
  0x2a   : > { %746 = vmatpush1.bf16.msra.mxu0 %v6035_v43  ;;  %849 = vmatpush1.bf16.msra.mxu1 %v6037_v44  ;;  %v353_v40 = vld [vmem:[%s9680_s1 + $0x150] sm:$0xff]  ;;  %v6033_v43 = vcombine.low %v338_v28, %v342_v29  ;;  %v354_v44 = vld [vmem:[%s9680_s1 + $0x158] sm:$0xff]  ;;  %v6042_v46 = vcombine.high %v346_v36, %v350_v37  ;;  %v7107_v19 = vld [vmem:[%s9681_s2 + $0xa0] sm:$0xff]  }
  0x2b   : > { %747 = vmatprep.subr.bf16.mxu0 %v6044_v45  ;;  %850 = vmatprep.subr.bf16.mxu1 %v6046_v47  ;;  %v357_v41 = vld [vmem:[%s9680_s1 + $0x170] sm:$0xff]  ;;  %v358_v45 = vld [vmem:[%s9680_s1 + $0x178] sm:$0xff]  ;;  %v6039_v47 = vcombine.low %v345_v31, %v349_v34  ;;  %v7102_v24 = vld [vmem:[%s9681_s2 + $0x140] sm:$0xff]  }
  0x2c   : > { %v361_v48 = vld [vmem:[%s9680_s1 + $0x190] sm:$0xff]  ;;  %v6048_v50 = vcombine.high %v353_v40, %v357_v41  ;;  %v7610_v55 = vld [vmem:[%s9679_s0 + $0x18] sm:$0xff]   ;;  %v6047_v56 = vcombine.low %v353_v40, %v357_v41  ;;  %v7104_v26 = vld [vmem:[%s9681_s2 + $0x148] sm:$0xff]  }
  0x2d   : > { %v365_v49 = vld [vmem:[%s9680_s1 + $0x1b0] sm:$0xff]  ;;  %v7105_v17 = vld [vmem:[%s9681_s2 + $0x98] sm:$0xff]   ;;  %v7115_v29 = vld [vmem:[%s9681_s2 + $0xc0] sm:$0xff]  }
  0x2e   : > { %748 = vmatpush1.bf16.msra.mxu0 %v6043_v51  ;;  %851 = vmatpush1.bf16.msra.mxu1 %v6045_v52  ;;  %v6041_v51 = vcombine.low %v346_v36, %v350_v37  ;;  %v362_v52 = vld [vmem:[%s9680_s1 + $0x198] sm:$0xff]  ;;  %v369_v57 = vld [vmem:[%s9680_s1 + $0x1d0] sm:$0xff]  ;;  %v6055_v0 = vcombine.low %v361_v48, %v365_v49  ;;  %v7117_v31 = vld [vmem:[%s9681_s2 + $0xc8] sm:$0xff]  }
  0x2f   : > { %749 = vmatprep.subr.bf16.mxu0 %v6052_v53  ;;  %852 = vmatprep.subr.bf16.mxu1 %v6054_v54  ;;  %v366_v53 = vld [vmem:[%s9680_s1 + $0x1b8] sm:$0xff]  ;;  %v6050_v54 = vcombine.high %v354_v44, %v358_v45  ;;  %v373_v58 = vld [vmem:[%s9680_s1 + $0x1f0] sm:$0xff]  ;;  %v7112_v34 = vld [vmem:[%s9681_s2 + $0x168] sm:$0xff]  }
  0x30   : > { %v6058_v63 = vcombine.high %v362_v52, %v366_v53  ;;  %v6057_v1 = vcombine.low %v362_v52, %v366_v53  ;;  %v6064_v2 = vcombine.high %v369_v57, %v373_v58  ;;  %v7098_v21 = vld [vmem:[%s9681_s2 + $0x130] sm:$0xff]   ;;  %v7120_v37 = vld [vmem:[%s9681_s2 + $0xe0] sm:$0xff]   ;;  %v7123_v41 = vld [vmem:[%s9681_s2 + $0xf8] sm:$0xff]  }
  0x31   : > { %v7106_v28 = vld [vmem:[%s9681_s2 + $0x150] sm:$0xff]  }
  0x32   : > { %750 = vmatpush1.bf16.msra.mxu0 %v6051_v59  ;;  %853 = vmatpush1.bf16.msra.mxu1 %v6053_v60  ;;  %v6056_v59 = vcombine.high %v361_v48, %v365_v49  ;;  %v6049_v60 = vcombine.low %v354_v44, %v358_v45  ;;  %v7114_v36 = vld [vmem:[%s9681_s2 + $0x170] sm:$0xff]  }
  0x33   : > { %751 = vmatprep.subr.bf16.mxu0 %v6060_v61  ;;  %854 = vmatprep.subr.bf16.mxu1 %v6062_v62  ;;  %v370_v61 = vld [vmem:[%s9680_s1 + $0x1d8] sm:$0xff]  ;;  %v7122_v40 = vld [vmem:[%s9681_s2 + $0xf0] sm:$0xff]  }
  0x34   : > { %v374_v62 = vld [vmem:[%s9680_s1 + $0x1f8] sm:$0xff] }
  0x35   : > { %v6065_v7 = vcombine.low %v370_v61, %v374_v62 }
  0x36   : > { %752 = vmatpush1.bf16.msra.mxu0 %v6059_v3  ;;  %855 = vmatpush1.bf16.msra.mxu1 %v6061_v4  ;;  %v6066_v3 = vcombine.high %v370_v61, %v374_v62  ;;  %v7631_v4 = vld [vmem:[%s9679_s0 + $0x20] sm:$0xff]  }
  0x37   : > { %943 = vmatprep.subr.bf16.mxu0 %v6008_v6  ;;  %1046 = vmatprep.subr.bf16.mxu1 %v6010_v10  ;;  %v6063_v6 = vcombine.low %v369_v57, %v373_v58  ;;  %v7651_v10 = vld [vmem:[%s9679_s0 + $0x30] sm:$0xff]  }
  0x39   : > { %770 = vmatmul.mubr.bf16.vlgmr.msra.gmra.mrb[0].mxu0 %v7511_v5  ;;  %873 = vmatmul.mubr.bf16.vlgmr.msra.gmra.mrb[0].mxu1 %v7511_v5 }
  0x3a   : > { %944 = vmatpush1.bf16.msra.mxu0 %v6007_v12  ;;  %779 = vmatprep.mubr.bf16.mxu0 %v7331_v8  ;;  %v7099_v12 = vld [vmem:[%s9681_s2 + $0x80] sm:$0xff]  }
  0x3b   : > { %882 = vmatprep.mubr.bf16.mxu1 %v7331_v8  ;;  %945 = vmatprep.subr.bf16.mxu0 %v6016_v15  ;;  %v7103_v15 = vld [vmem:[%s9681_s2 + $0x90] sm:$0xff]  }
  0x3c   : > { %1047 = vmatpush1.bf16.msra.mxu1 %v6009_v16  ;;  %v7095_v16 = vld [vmem:[%s9681_s2 + $0x118] sm:$0xff]  }
  0x3d   : > { %1048 = vmatprep.subr.bf16.mxu1 %v6018_v18  ;;  %v7096_v18 = vld [vmem:[%s9681_s2 + $0x120] sm:$0xff]  }
  0x3e   : > { %946 = vmatpush1.bf16.msra.mxu0 %v6015_v20  ;;  %v7097_v20 = vld [vmem:[%s9681_s2 + $0x128] sm:$0xff]  }
  0x3f   : > { %947 = vmatprep.subr.bf16.mxu0 %v6024_v23  ;;  %v7109_v23 = vld [vmem:[%s9681_s2 + $0xa8] sm:$0xff]  }
  0x40   : > { %1049 = vmatpush1.bf16.msra.mxu1 %v6017_v25  ;;  %v7111_v25 = vld [vmem:[%s9681_s2 + $0xb0] sm:$0xff]  }
  0x41   : > { %780 = vmatmul.mubr.bf16.gmra.mrb[4].mxu0 %v7544_v22  ;;  %1050 = vmatprep.subr.bf16.mxu1 %v6026_v27  ;;  %v7113_v27 = vld [vmem:[%s9681_s2 + $0xb8] sm:$0xff]  }
  0x42   : > { %883 = vmatmul.mubr.bf16.gmra.mrb[4].mxu1 %v7544_v22  ;;  %789 = vmatprep.mubr.bf16.mxu0 %v7331_v8 }
  0x43   : > { %892 = vmatprep.mubr.bf16.mxu1 %v7331_v8  ;;  %948 = vmatpush1.bf16.msra.mxu0 %v6023_v30  ;;  %v7108_v30 = vld [vmem:[%s9681_s2 + $0x158] sm:$0xff]  }
  0x44   : > { %949 = vmatprep.subr.bf16.mxu0 %v6032_v32  ;;  %1051 = vmatpush1.bf16.msra.mxu1 %v6025_v33  ;;  %v7110_v32 = vld [vmem:[%s9681_s2 + $0x160] sm:$0xff]   ;;  %v7118_v33 = vld [vmem:[%s9681_s2 + $0xd0] sm:$0xff]  }
  0x45   : > { %1052 = vmatprep.subr.bf16.mxu1 %v6034_v35  ;;  %v7119_v35 = vld [vmem:[%s9681_s2 + $0xd8] sm:$0xff]  }
  0x47   : > { %950 = vmatpush1.bf16.msra.mxu0 %v6031_v39  ;;  %v7121_v39 = vld [vmem:[%s9681_s2 + $0xe8] sm:$0xff]  }
  0x48   : > { %951 = vmatprep.subr.bf16.mxu0 %v6040_v42  ;;  %1053 = vmatpush1.bf16.msra.mxu1 %v6033_v43 }
  0x49   : > { %790 = vmatmul.mubr.bf16.gmra.mrb[8].mxu0 %v7577_v38  ;;  %1054 = vmatprep.subr.bf16.mxu1 %v6042_v46 }
  0x4a   : > { %893 = vmatmul.mubr.bf16.gmra.mrb[8].mxu1 %v7577_v38  ;;  %799 = vmatprep.mubr.bf16.mxu0 %v7331_v8 }
  0x4b   : > { %902 = vmatprep.mubr.bf16.mxu1 %v7331_v8  ;;  %952 = vmatpush1.bf16.msra.mxu0 %v6039_v47 }
  0x4c   : > { %953 = vmatprep.subr.bf16.mxu0 %v6048_v50  ;;  %1055 = vmatpush1.bf16.msra.mxu1 %v6041_v51 }
  0x4d   : > { %1056 = vmatprep.subr.bf16.mxu1 %v6050_v54 }
  0x4f   : > { %954 = vmatpush1.bf16.msra.mxu0 %v6047_v56 }
  0x50   : > { %955 = vmatprep.subr.bf16.mxu0 %v6056_v59  ;;  %1057 = vmatpush1.bf16.msra.mxu1 %v6049_v60 }
  0x51   : > { %800 = vmatmul.mubr.bf16.gmra.mrb[12].mxu0 %v7610_v55  ;;  %1058 = vmatprep.subr.bf16.mxu1 %v6058_v63 }
  0x52   : > { %903 = vmatmul.mubr.bf16.gmra.mrb[12].mxu1 %v7610_v55  ;;  %809 = vmatprep.mubr.bf16.mxu0 %v7331_v8 }
  0x53   : > { %912 = vmatprep.mubr.bf16.mxu1 %v7331_v8  ;;  %956 = vmatpush1.bf16.msra.mxu0 %v6055_v0 }
  0x54   : > { %957 = vmatprep.subr.bf16.mxu0 %v6064_v2  ;;  %1059 = vmatpush1.bf16.msra.mxu1 %v6057_v1 }
  0x55   : > { %1060 = vmatprep.subr.bf16.mxu1 %v6066_v3 }
  0x57   : > { %958 = vmatpush1.bf16.msra.mxu0 %v6063_v6 }
  0x58   : > { %1061 = vmatpush1.bf16.msra.mxu1 %v6065_v7  ;;  %3502 = vmatprep.subr.bf16.mxu0 %v7331_v8 }
  0x59   : > { %810 = vmatmul.mubr.bf16.gmra.mrb[16].mxu0 %v7631_v4  ;;  %2271 = vmatprep.subr.bf16.mxu1 %v7331_v8 }
  0x5a   : > { %913 = vmatmul.mubr.bf16.gmra.mrb[16].mxu1 %v7631_v4  ;;  %819 = vmatprep.mubr.bf16.mxu0 %v7331_v8 }
  0x5b   : > { %922 = vmatprep.mubr.bf16.mxu1 %v7331_v8 }
  0x61   : > { %820 = vmatmul.mubr.bf16.gmra.mrb[20].mxu0 %v7642_v9 }
  0x62   : > { %923 = vmatmul.mubr.bf16.gmra.mrb[20].mxu1 %v7642_v9  ;;  %829 = vmatprep.mubr.bf16.mxu0 %v7331_v8 }
  0x63   : > { %932 = vmatprep.mubr.bf16.mxu1 %v7331_v8 }
  0x69   : > { %830 = vmatmul.mubr.bf16.gmra.mrb[24].mxu0 %v7651_v10 }
  0x6a   : > { %933 = vmatmul.mubr.bf16.gmra.mrb[24].mxu1 %v7651_v10  ;;  %975 = vmatprep.mubr.bf16.mxu0 %v7331_v8 }
  0x6b   : > { %1078 = vmatprep.mubr.bf16.mxu1 %v7331_v8 }
  0x71   : > { %976 = vmatmul.mubr.bf16.vlgmr.msra.gmra.mrb[28].mxu0 %v7511_v5 }
  0x72   : > { %1079 = vmatmul.mubr.bf16.vlgmr.msra.gmra.mrb[28].mxu1 %v7511_v5  ;;  %985 = vmatprep.mubr.bf16.mxu0 %v7331_v8  ;;  %v7094_v5 = vld [vmem:[%s9681_s2 + $0x110] sm:$0xff]  }
  0x73   : > { %1088 = vmatprep.mubr.bf16.mxu1 %v7331_v8  ;;  %3503 = vmatpush1.bf16.msra.mxu0 %v7092_v11 }
  0x74   : > { %3504 = vmatprep.subr.bf16.mxu0 %v7331_v8  ;;  %2272 = vmatpush1.bf16.msra.mxu1 %v7099_v12 }
  0x75   : > { %2273 = vmatprep.subr.bf16.mxu1 %v7331_v8 }
  0x77   : > { %3505 = vmatpush1.bf16.msra.mxu0 %v7093_v13 }
  0x78   : > { %3506 = vmatprep.subr.bf16.mxu0 %v7331_v8  ;;  %2274 = vmatpush1.bf16.msra.mxu1 %v7101_v14 }
  0x79   : > { %986 = vmatmul.mubr.bf16.gmra.mrb[32].mxu0 %v7544_v22  ;;  %2275 = vmatprep.subr.bf16.mxu1 %v7331_v8 }
  0x7a   : > { %1089 = vmatmul.mubr.bf16.gmra.mrb[32].mxu1 %v7544_v22  ;;  %995 = vmatprep.mubr.bf16.mxu0 %v7331_v8  ;;  %v7100_v22 = vld [vmem:[%s9681_s2 + $0x138] sm:$0xff]  }
  0x7b   : > { %1098 = vmatprep.mubr.bf16.mxu1 %v7331_v8  ;;  %3507 = vmatpush1.bf16.msra.mxu0 %v7094_v5 }
  0x7c   : > { %3508 = vmatprep.subr.bf16.mxu0 %v7331_v8  ;;  %2276 = vmatpush1.bf16.msra.mxu1 %v7103_v15 }
  0x7d   : > { %2277 = vmatprep.subr.bf16.mxu1 %v7331_v8 }
  0x7f   : > { %3509 = vmatpush1.bf16.msra.mxu0 %v7095_v16 }
  0x80   : > { %3510 = vmatprep.subr.bf16.mxu0 %v7331_v8  ;;  %2278 = vmatpush1.bf16.msra.mxu1 %v7105_v17 }
  0x81   : > { %996 = vmatmul.mubr.bf16.gmra.mrb[36].mxu0 %v7577_v38  ;;  %2279 = vmatprep.subr.bf16.mxu1 %v7331_v8 }
  0x82   : > { %1099 = vmatmul.mubr.bf16.gmra.mrb[36].mxu1 %v7577_v38  ;;  %1005 = vmatprep.mubr.bf16.mxu0 %v7331_v8  ;;  %v7116_v38 = vld [vmem:[%s9681_s2 + $0x178] sm:$0xff]  }
  0x83   : > { %1108 = vmatprep.mubr.bf16.mxu1 %v7331_v8  ;;  %3511 = vmatpush1.bf16.msra.mxu0 %v7096_v18 }
  0x84   : > { %3512 = vmatprep.subr.bf16.mxu0 %v7331_v8  ;;  %2280 = vmatpush1.bf16.msra.mxu1 %v7107_v19 }
  0x85   : > { %2281 = vmatprep.subr.bf16.mxu1 %v7331_v8 }
  0x87   : > { %3513 = vmatpush1.bf16.msra.mxu0 %v7097_v20 }
  0x88   : > { %3514 = vmatprep.subr.bf16.mxu0 %v7331_v8  ;;  %2282 = vmatpush1.bf16.msra.mxu1 %v7109_v23 }
  0x89   : > { %1006 = vmatmul.mubr.bf16.gmra.mrb[40].mxu0 %v7610_v55  ;;  %2283 = vmatprep.subr.bf16.mxu1 %v7331_v8 }
  0x8a   : > { %1109 = vmatmul.mubr.bf16.gmra.mrb[40].mxu1 %v7610_v55  ;;  %1015 = vmatprep.mubr.bf16.mxu0 %v7331_v8 }
  0x8b   : > { %1118 = vmatprep.mubr.bf16.mxu1 %v7331_v8  ;;  %3515 = vmatpush1.bf16.msra.mxu0 %v7098_v21 }
  0x8c   : > { %3516 = vmatprep.subr.bf16.mxu0 %v7331_v8  ;;  %2284 = vmatpush1.bf16.msra.mxu1 %v7111_v25 }
  0x8d   : > { %2285 = vmatprep.subr.bf16.mxu1 %v7331_v8 }
  0x8f   : > { %3517 = vmatpush1.bf16.msra.mxu0 %v7100_v22 }
  0x90   : > { %3518 = vmatprep.subr.bf16.mxu0 %v7331_v8  ;;  %2286 = vmatpush1.bf16.msra.mxu1 %v7113_v27 }
  0x91   : > { %1016 = vmatmul.mubr.bf16.gmra.mrb[44].mxu0 %v7631_v4  ;;  %2287 = vmatprep.subr.bf16.mxu1 %v7331_v8 }
  0x92   : > { %1119 = vmatmul.mubr.bf16.gmra.mrb[44].mxu1 %v7631_v4  ;;  %1025 = vmatprep.mubr.bf16.mxu0 %v7331_v8 }
  0x93   : > { %1128 = vmatprep.mubr.bf16.mxu1 %v7331_v8  ;;  %3519 = vmatpush1.bf16.msra.mxu0 %v7102_v24 }
  0x94   : > { %3520 = vmatprep.subr.bf16.mxu0 %v7331_v8  ;;  %2288 = vmatpush1.bf16.msra.mxu1 %v7115_v29 }
  0x95   : > { %2289 = vmatprep.subr.bf16.mxu1 %v7331_v8 }
  0x97   : > { %3521 = vmatpush1.bf16.msra.mxu0 %v7104_v26 }
  0x98   : > { %3522 = vmatprep.subr.bf16.mxu0 %v7331_v8  ;;  %2290 = vmatpush1.bf16.msra.mxu1 %v7117_v31 }
  0x99   : > { %1026 = vmatmul.mubr.bf16.gmra.mrb[48].mxu0 %v7642_v9  ;;  %2291 = vmatprep.subr.bf16.mxu1 %v7331_v8 }
  0x9a   : > { %1129 = vmatmul.mubr.bf16.gmra.mrb[48].mxu1 %v7642_v9  ;;  %1035 = vmatprep.mubr.bf16.mxu0 %v7331_v8 }
  0x9b   : > { %1138 = vmatprep.mubr.bf16.mxu1 %v7331_v8  ;;  %3523 = vmatpush1.bf16.msra.mxu0 %v7106_v28 }
  0x9c   : > { %3524 = vmatprep.subr.bf16.mxu0 %v7331_v8  ;;  %2292 = vmatpush1.bf16.msra.mxu1 %v7118_v33 }
  0x9d   : > { %2293 = vmatprep.subr.bf16.mxu1 %v7331_v8 }
  0x9f   : > { %3525 = vmatpush1.bf16.msra.mxu0 %v7108_v30 }
  0xa0   : > { %3526 = vmatprep.subr.bf16.mxu0 %v7331_v8  ;;  %2294 = vmatpush1.bf16.msra.mxu1 %v7119_v35 }
  0xa1   : > { %1036 = vmatmul.mubr.bf16.gmra.mrb[52].mxu0 %v7651_v10  ;;  %2295 = vmatprep.subr.bf16.mxu1 %v7331_v8 }
  0xa2   : > { %1139 = vmatmul.mubr.bf16.gmra.mrb[52].mxu1 %v7651_v10 }
  0xa3   : > { %3527 = vmatpush1.bf16.msra.mxu0 %v7110_v32 }
  0xa4   : > { %3528 = vmatprep.subr.bf16.mxu0 %v7331_v8  ;;  %2296 = vmatpush1.bf16.msra.mxu1 %v7120_v37 }
  0xa5   : > { %2297 = vmatprep.subr.bf16.mxu1 %v7331_v8 }
  0xa7   : > { %3529 = vmatpush1.bf16.msra.mxu0 %v7112_v34 }
  0xa8   : > { %3530 = vmatprep.subr.bf16.mxu0 %v7331_v8  ;;  %2298 = vmatpush1.bf16.msra.mxu1 %v7121_v39 }
  0xa9   : > { %2299 = vmatprep.subr.bf16.mxu1 %v7331_v8 }
  0xab   : > { %3531 = vmatpush1.bf16.msra.mxu0 %v7114_v36 }
  0xac   : > { %3532 = vmatprep.subr.bf16.mxu0 %v7331_v8  ;;  %2300 = vmatpush1.bf16.msra.mxu1 %v7122_v40 }
  0xad   : > { %2301 = vmatprep.subr.bf16.mxu1 %v7331_v8 }
  0xaf   : > { %3533 = vmatpush1.bf16.msra.mxu0 %v7116_v38 }
  0xb0   : > { %4208 = vmatprep.subr.bf16.mxu0 %v7331_v8  ;;  %2302 = vmatpush1.bf16.msra.mxu1 %v7123_v41  ;;  %v7125_v41 = vld [vmem:[%s9681_s2 + $0x180] sm:$0xff]  }
  0xb1   : > { %2846 = vmatprep.subr.bf16.mxu1 %v7331_v8 }
 0x10c   : > { %v771_v42 = vpop.f32.mrb[0].mxu0  ;;  %v874_v44 = vpop.f32.mrb[0].mxu1 }
 0x10d   : > { %v1149_v43 = vmul.f32 0.2, %v771_v42  ;;  %v773_v45 = vpop.f32.mrb[1].mxu0  ;;  %v1151_v46 = vmul.f32 0.2, %v874_v44  ;;  %v876_v48 = vpop.f32.mrb[1].mxu1 }
 0x10e   : > { %v1150_v47 = vmul.f32 0.2, %v773_v45  ;;  %v775_v49 = vpop.f32.mrb[2].mxu0  ;;  %v1152_v51 = vmul.f32 0.2, %v876_v48  ;;  %v878_v53 = vpop.f32.mrb[2].mxu1 }
 0x10f   : > { %v1261_v50 = vmax.f32 %v771_v42, %v1149_v43  ;;  %v1157_v52 = vmul.f32 0.2, %v775_v49  ;;  %v777_v54 = vpop.f32.mrb[3].mxu0  ;;  %v1263_v55 = vmax.f32 %v874_v44, %v1151_v46  ;;  %v1159_v57 = vmul.f32 0.2, %v878_v53  ;;  %v880_v59 = vpop.f32.mrb[3].mxu1 }
 0x110   : > { %v1262_v56 = vmax.f32 %v773_v45, %v1150_v47  ;;  %v1158_v58 = vmul.f32 0.2, %v777_v54  ;;  %v1264_v60 = vmax.f32 %v876_v48, %v1152_v51  ;;  %v1160_v61 = vmul.f32 0.2, %v880_v59 }
 0x111   : > { %v7811_v8 = vmax.f32 %v775_v49, %v1157_v52  ;;  %v1271_v63 = vmax.f32 %v878_v53, %v1159_v57 }
 0x112   : > { %v7813_v62 = vpack.c.bf16 %v1262_v56, %v1261_v50  ;;  %v7815_v0 = vmax.f32 %v777_v54, %v1158_v58  ;;  %v7817_v1 = vpack.c.bf16 %v1264_v60, %v1263_v55  ;;  %v1272_v2 = vmax.f32 %v880_v59, %v1160_v61  ;;  %v7127_v59 = vld [vmem:[%s9681_s2 + $0x188] sm:$0xff]  }
 0x114   : > { %1710 = vst [vmem:[#allocation2 + $0x20] sm:$0xff] %v7813_v62  ;;  %v6446_v3 = vpack.c.bf16 %v7815_v0, %v7811_v8  ;;  %v781_v4 = vpop.f32.mrb[4].mxu0  ;;  %1711 = vst [vmem:[#allocation2 + $0x28] sm:$0xff] %v7817_v1  ;;  %v7823_v6 = vpack.c.bf16 %v1272_v2, %v1271_v63  ;;  %v7834_v63 = vld [vmem:[#allocation2] sm:$0xff] }
 0x115   : > { %v1165_v7 = vmul.f32 0.2, %v781_v4  ;;  %v884_v9 = vpop.f32.mrb[4].mxu1  ;;  %v783_v10 = vpop.f32.mrb[5].mxu0 }
 0x116   : > { %1714 = vst [vmem:[#allocation2 + $0x40] sm:$0xff] %v6446_v3  ;;  %v1167_v11 = vmul.f32 0.2, %v884_v9  ;;  %v1166_v12 = vmul.f32 0.2, %v783_v10  ;;  %v886_v13 = vpop.f32.mrb[5].mxu1 }
 0x117   : > { %v785_v14 = vpop.f32.mrb[6].mxu0  ;;  %1715 = vst [vmem:[#allocation2 + $0x48] sm:$0xff] %v7823_v6  ;;  %v1277_v5 = vmax.f32 %v781_v4, %v1165_v7  ;;  %v1168_v15 = vmul.f32 0.2, %v886_v13  ;;  %v888_v17 = vpop.f32.mrb[6].mxu1 }
 0x118   : > { %v1173_v16 = vmul.f32 0.2, %v785_v14  ;;  %v787_v18 = vpop.f32.mrb[7].mxu0  ;;  %v1279_v19 = vmax.f32 %v884_v9, %v1167_v11  ;;  %v1278_v20 = vmax.f32 %v783_v10, %v1166_v12  ;;  %v1175_v21 = vmul.f32 0.2, %v888_v17  ;;  %v890_v23 = vpop.f32.mrb[7].mxu1 }
 0x119   : > { %v1174_v22 = vmul.f32 0.2, %v787_v18  ;;  %v1280_v24 = vmax.f32 %v886_v13, %v1168_v15  ;;  %v1176_v26 = vmul.f32 0.2, %v890_v23  ;;  %v7131_v13 = vld [vmem:[%s9681_s2 + $0x190] sm:$0xff]  }
 0x11a   : > { %v1285_v25 = vmax.f32 %v785_v14, %v1173_v16  ;;  %v6450_v27 = vpack.c.bf16 %v1278_v20, %v1277_v5  ;;  %v1287_v28 = vmax.f32 %v888_v17, %v1175_v21 }
 0x11b   : > { %v1286_v29 = vmax.f32 %v787_v18, %v1174_v22  ;;  %v6451_v30 = vpack.c.bf16 %v1280_v24, %v1279_v19  ;;  %v1288_v31 = vmax.f32 %v890_v23, %v1176_v26  ;;  %v3085_v34 = vld [vmem:[#allocation2 + $0x24] sm:$0xff] }
 0x11c   : > { %1718 = vst [vmem:[#allocation2 + $0x60] sm:$0xff] %v6450_v27  ;;  %v791_v33 = vpop.f32.mrb[8].mxu0  ;;  %v6255_v39 = vcombine.low %v7813_v62, %v3085_v34  ;;  %v6256_v40 = vcombine.high %v7813_v62, %v3085_v34 }
 0x11d   : > { %v6454_v32 = vpack.c.bf16 %v1286_v29, %v1285_v25  ;;  %1719 = vst [vmem:[#allocation2 + $0x68] sm:$0xff] %v6451_v30  ;;  %v6455_v35 = vpack.c.bf16 %v1288_v31, %v1287_v28  ;;  %v1181_v36 = vmul.f32 0.2, %v791_v33  ;;  %v894_v37 = vpop.f32.mrb[8].mxu1  ;;  %v793_v38 = vpop.f32.mrb[9].mxu0  ;;  %v7137_v30 = vld [vmem:[%s9681_s2 + $0x198] sm:$0xff]  }
 0x11e   : > { %v1183_v42 = vmul.f32 0.2, %v894_v37  ;;  %v1182_v43 = vmul.f32 0.2, %v793_v38  ;;  %v896_v44 = vpop.f32.mrb[9].mxu1  ;;  %v795_v45 = vpop.f32.mrb[10].mxu0  ;;  %3534 = vmatprep.mubr.bf16.mxu0 %v6256_v40 }
 0x11f   : > { %1722 = vst [vmem:[#allocation2 + $0x80] sm:$0xff] %v6454_v32  ;;  %1723 = vst [vmem:[#allocation2 + $0x88] sm:$0xff] %v6455_v35  ;;  %v1293_v46 = vmax.f32 %v791_v33, %v1181_v36  ;;  %v1184_v47 = vmul.f32 0.2, %v896_v44  ;;  %v1189_v48 = vmul.f32 0.2, %v795_v45  ;;  %3535 = vmatmul.mubr.bf16.vlgmr.msra.gmra.mrb[56].mxu0 %v6255_v39 }
 0x120   : > { %v898_v49 = vpop.f32.mrb[10].mxu1  ;;  %v797_v50 = vpop.f32.mrb[11].mxu0  ;;  %v1295_v51 = vmax.f32 %v894_v37, %v1183_v42  ;;  %v1294_v52 = vmax.f32 %v793_v38, %v1182_v43  ;;  %4209 = vmatpush1.bf16.msra.mxu0 %v7125_v41 }
 0x121   : > { %v1191_v53 = vmul.f32 0.2, %v898_v49  ;;  %v1190_v54 = vmul.f32 0.2, %v797_v50  ;;  %v900_v55 = vpop.f32.mrb[11].mxu1  ;;  %v1296_v56 = vmax.f32 %v896_v44, %v1184_v47  ;;  %v1301_v57 = vmax.f32 %v795_v45, %v1189_v48  ;;  %4210 = vmatprep.subr.bf16.mxu0 %v7834_v63  ;;  %v7139_v44 = vld [vmem:[%s9681_s2 + $0x1a0] sm:$0xff]  }
 0x122   : > { %v1192_v58 = vmul.f32 0.2, %v900_v55  ;;  %v6458_v60 = vpack.c.bf16 %v1294_v52, %v1293_v46 }
 0x123   : > { %v1303_v61 = vmax.f32 %v898_v49, %v1191_v53  ;;  %v1302_v62 = vmax.f32 %v797_v50, %v1190_v54  ;;  %v6459_v2 = vpack.c.bf16 %v1296_v56, %v1295_v51 }
 0x124   : > { %v1304_v3 = vmax.f32 %v900_v55, %v1192_v58  ;;  %1726 = vst [vmem:[#allocation2 + $0xa0] sm:$0xff] %v6458_v60  ;;  %v801_v7 = vpop.f32.mrb[12].mxu0  ;;  %4211 = vmatpush1.bf16.msra.mxu0 %v7127_v59 }
 0x125   : > { %v6462_v4 = vpack.c.bf16 %v1302_v62, %v1301_v57  ;;  %1727 = vst [vmem:[#allocation2 + $0xa8] sm:$0xff] %v6459_v2  ;;  %v1197_v10 = vmul.f32 0.2, %v801_v7  ;;  %v904_v11 = vpop.f32.mrb[12].mxu1  ;;  %v803_v12 = vpop.f32.mrb[13].mxu0  ;;  %4212 = vmatprep.subr.bf16.mxu0 %v7834_v63 }
 0x126   : > { %v6463_v9 = vpack.c.bf16 %v1304_v3, %v1303_v61  ;;  %v1199_v14 = vmul.f32 0.2, %v904_v11  ;;  %v1198_v5 = vmul.f32 0.2, %v803_v12  ;;  %v906_v15 = vpop.f32.mrb[13].mxu1  ;;  %v805_v16 = vpop.f32.mrb[14].mxu0 }
 0x127   : > { %1730 = vst [vmem:[#allocation2 + $0xc0] sm:$0xff] %v6462_v4  ;;  %v1309_v17 = vmax.f32 %v801_v7, %v1197_v10  ;;  %v1200_v18 = vmul.f32 0.2, %v906_v15  ;;  %v1205_v19 = vmul.f32 0.2, %v805_v16  ;;  %v908_v20 = vpop.f32.mrb[14].mxu1 }
 0x128   : > { %1731 = vst [vmem:[#allocation2 + $0xc8] sm:$0xff] %v6463_v9  ;;  %v807_v21 = vpop.f32.mrb[15].mxu0  ;;  %v1311_v22 = vmax.f32 %v904_v11, %v1199_v14  ;;  %v1310_v23 = vmax.f32 %v803_v12, %v1198_v5  ;;  %v1207_v24 = vmul.f32 0.2, %v908_v20  ;;  %v910_v26 = vpop.f32.mrb[15].mxu1  ;;  %4213 = vmatpush1.bf16.msra.mxu0 %v7131_v13  ;;  %v7143_v7 = vld [vmem:[%s9681_s2 + $0x1a8] sm:$0xff]  }
 0x129   : > { %v1206_v25 = vmul.f32 0.2, %v807_v21  ;;  %v1312_v27 = vmax.f32 %v906_v15, %v1200_v18  ;;  %v1317_v28 = vmax.f32 %v805_v16, %v1205_v19  ;;  %v1208_v29 = vmul.f32 0.2, %v910_v26  ;;  %4214 = vmatprep.subr.bf16.mxu0 %v7834_v63 }
 0x12a   : > { %v6466_v31 = vpack.c.bf16 %v1310_v23, %v1309_v17  ;;  %v1319_v32 = vmax.f32 %v908_v20, %v1207_v24 }
 0x12b   : > { %v1318_v33 = vmax.f32 %v807_v21, %v1206_v25  ;;  %v6467_v34 = vpack.c.bf16 %v1312_v27, %v1311_v22  ;;  %v1320_v35 = vmax.f32 %v910_v26, %v1208_v29  ;;  %v7145_v21 = vld [vmem:[%s9681_s2 + $0x1b0] sm:$0xff]  }
 0x12c   : > { %1734 = vst [vmem:[#allocation2 + $0xe0] sm:$0xff] %v6466_v31  ;;  %v811_v37 = vpop.f32.mrb[16].mxu0  ;;  %v7847_v38 = vld [vmem:[#allocation2 + $0xa4] sm:$0xff]  ;;  %4215 = vmatpush1.bf16.msra.mxu0 %v7137_v30 }
 0x12d   : > { %v7845_v36 = vpack.c.bf16 %v1318_v33, %v1317_v28  ;;  %9834 = vst [vmem:[#allocation6_spill] sm:$0xff] %v7847_v38  ;;  %v7849_v39 = vld [vmem:[#allocation2 + $0xa8] sm:$0xff]  ;;  %1735 = vst [vmem:[#allocation2 + $0xe8] sm:$0xff] %v6467_v34  ;;  %v7851_v40 = vpack.c.bf16 %v1320_v35, %v1319_v32  ;;  %v1213_v41 = vmul.f32 0.2, %v811_v37  ;;  %v914_v42 = vpop.f32.mrb[16].mxu1  ;;  %4216 = vmatprep.subr.bf16.mxu0 %v7834_v63 }
 0x12e   : > { %9835 = vst [vmem:[#allocation7_spill] sm:$0xff] %v7849_v39  ;;  %v813_v43 = vpop.f32.mrb[17].mxu0  ;;  %v7856_v45 = vld [vmem:[#allocation2 + $0xc0] sm:$0xff]  ;;  %v1215_v46 = vmul.f32 0.2, %v914_v42  ;;  %v916_v48 = vpop.f32.mrb[17].mxu1 }
 0x12f   : > { %9836 = vst [vmem:[#allocation8_spill] sm:$0xff] %v7856_v45  ;;  %1738 = vst [vmem:[#allocation3] sm:$0xff] %v7845_v36  ;;  %v1214_v47 = vmul.f32 0.2, %v813_v43  ;;  %v815_v49 = vpop.f32.mrb[18].mxu0  ;;  %v7865_v52 = vmax.f32 %v811_v37, %v1213_v41  ;;  %v918_v55 = vpop.f32.mrb[18].mxu1 }
 0x130   : > { %1739 = vst [vmem:[#allocation3 + $0x8] sm:$0xff] %v7851_v40  ;;  %v1216_v53 = vmul.f32 0.2, %v916_v48  ;;  %v1221_v54 = vmul.f32 0.2, %v815_v49  ;;  %v817_v56 = vpop.f32.mrb[19].mxu0  ;;  %v1327_v57 = vmax.f32 %v914_v42, %v1215_v46  ;;  %4217 = vmatpush1.bf16.msra.mxu0 %v7139_v44 }
 0x131   : > { %v7867_v58 = vmax.f32 %v813_v43, %v1214_v47  ;;  %v1223_v59 = vmul.f32 0.2, %v918_v55  ;;  %v1222_v60 = vmul.f32 0.2, %v817_v56  ;;  %v920_v61 = vpop.f32.mrb[19].mxu1  ;;  %v7869_v62 = vld [vmem:[#allocation2 + $0xc4] sm:$0xff]  ;;  %4218 = vmatprep.subr.bf16.mxu0 %v7834_v63 }
 0x132   : > { %9837 = vst [vmem:[#allocation9_spill] sm:$0xff] %v7869_v62  ;;  %v1328_v2 = vmax.f32 %v916_v48, %v1216_v53  ;;  %v1333_v3 = vmax.f32 %v815_v49, %v1221_v54  ;;  %v1224_v4 = vmul.f32 0.2, %v920_v61  ;;  %v7124_v53 = vld [vmem:[%s9681_s2] sm:$0xff]  }
 0x133   : > { %v6474_v10 = vpack.c.bf16 %v7867_v58, %v7865_v52  ;;  %v1335_v11 = vmax.f32 %v918_v55, %v1223_v59  ;;  %v1334_v12 = vmax.f32 %v817_v56, %v1222_v60 }
 0x134   : > { %v7879_v13 = vpack.c.bf16 %v1328_v2, %v1327_v57  ;;  %v1336_v14 = vmax.f32 %v920_v61, %v1224_v4  ;;  %v821_v16 = vpop.f32.mrb[20].mxu0  ;;  %4219 = vmatpush1.bf16.msra.mxu0 %v7143_v7  ;;  %v7126_v2 = vld [vmem:[%s9681_s2 + $0x8] sm:$0xff]  }
 0x135   : > { %1742 = vst [vmem:[#allocation3 + $0x20] sm:$0xff] %v6474_v10  ;;  %v7883_v15 = vpack.c.bf16 %v1334_v12, %v1333_v3  ;;  %v1229_v18 = vmul.f32 0.2, %v821_v16  ;;  %v924_v19 = vpop.f32.mrb[20].mxu1  ;;  %v823_v20 = vpop.f32.mrb[21].mxu0  ;;  %4220 = vmatprep.subr.bf16.mxu0 %v7834_v63 }
 0x136   : > { %1743 = vst [vmem:[#allocation3 + $0x28] sm:$0xff] %v7879_v13  ;;  %v7886_v17 = vpack.c.bf16 %v1336_v14, %v1335_v11  ;;  %v1231_v22 = vmul.f32 0.2, %v924_v19  ;;  %v1230_v23 = vmul.f32 0.2, %v823_v20  ;;  %v926_v24 = vpop.f32.mrb[21].mxu1 }
 0x137   : > { %1746 = vst [vmem:[#allocation3 + $0x40] sm:$0xff] %v7883_v15  ;;  %v825_v25 = vpop.f32.mrb[22].mxu0  ;;  %v7894_v26 = vmax.f32 %v821_v16, %v1229_v18  ;;  %v1232_v27 = vmul.f32 0.2, %v926_v24  ;;  %v928_v29 = vpop.f32.mrb[22].mxu1  ;;  %v1854_v37 = vld [vmem:[#allocation3 + $0x4] sm:$0xff] }
 0x138   : > { %1747 = vst [vmem:[#allocation3 + $0x48] sm:$0xff] %v7886_v17  ;;  %v1237_v28 = vmul.f32 0.2, %v825_v25  ;;  %v827_v30 = vpop.f32.mrb[23].mxu0  ;;  %v1343_v31 = vmax.f32 %v924_v19, %v1231_v22  ;;  %v7896_v32 = vmax.f32 %v823_v20, %v1230_v23  ;;  %v1239_v33 = vmul.f32 0.2, %v928_v29  ;;  %4221 = vmatpush1.bf16.msra.mxu0 %v7145_v21 }
 0x139   : > { %v1238_v34 = vmul.f32 0.2, %v827_v30  ;;  %v930_v35 = vpop.f32.mrb[23].mxu1  ;;  %v1344_v41 = vmax.f32 %v926_v24, %v1232_v27  ;;  %v6123_v44 = vcombine.low %v7845_v36, %v1854_v37  ;;  %v6124_v49 = vcombine.high %v7845_v36, %v1854_v37  ;;  %4222 = vmatprep.subr.bf16.mxu0 %v7834_v63 }
 0x13a   : > { %v1349_v42 = vmax.f32 %v825_v25, %v1237_v28  ;;  %v1240_v43 = vmul.f32 0.2, %v930_v35  ;;  %v6482_v46 = vpack.c.bf16 %v7896_v32, %v7894_v26  ;;  %v1351_v47 = vmax.f32 %v928_v29, %v1239_v33  ;;  %v7150_v33 = vld [vmem:[%s9681_s2 + $0x1b8] sm:$0xff]  }
 0x13b   : > { %v1350_v48 = vmax.f32 %v827_v30, %v1238_v34  ;;  %v7906_v54 = vpack.c.bf16 %v1344_v41, %v1343_v31  ;;  %2303 = vmatprep.mubr.bf16.mxu1 %v6124_v49  ;;  %v7130_v31 = vld [vmem:[%s9681_s2 + $0x10] sm:$0xff]  }
 0x13c   : > { %v1352_v55 = vmax.f32 %v930_v35, %v1240_v43  ;;  %1750 = vst [vmem:[#allocation3 + $0x60] sm:$0xff] %v6482_v46  ;;  %v831_v57 = vpop.f32.mrb[24].mxu0  ;;  %2304 = vmatmul.mubr.bf16.vlgmr.msra.gmra.mrb[56].mxu1 %v6123_v44  ;;  %4223 = vmatpush1.bf16.msra.mxu0 %v7150_v33 }
 0x13d   : > { %v6486_v56 = vpack.c.bf16 %v1350_v48, %v1349_v42  ;;  %1751 = vst [vmem:[#allocation3 + $0x68] sm:$0xff] %v7906_v54  ;;  %v1245_v60 = vmul.f32 0.2, %v831_v57  ;;  %v934_v61 = vpop.f32.mrb[24].mxu1  ;;  %v833_v36 = vpop.f32.mrb[25].mxu0  ;;  %2847 = vmatpush1.bf16.msra.mxu1 %v7124_v53  ;;  %4224 = vmatprep.subr.bf16.mxu0 %v7834_v63 }
 0x13e   : > { %v6487_v59 = vpack.c.bf16 %v1352_v55, %v1351_v47  ;;  %v1247_v3 = vmul.f32 0.2, %v934_v61  ;;  %v1246_v4 = vmul.f32 0.2, %v833_v36  ;;  %v936_v7 = vpop.f32.mrb[25].mxu1  ;;  %v835_v10 = vpop.f32.mrb[26].mxu0  ;;  %2848 = vmatprep.subr.bf16.mxu1 %v7834_v63 }
 0x13f   : > { %1754 = vst [vmem:[#allocation3 + $0x80] sm:$0xff] %v6486_v56  ;;  %v1357_v11 = vmax.f32 %v831_v57, %v1245_v60  ;;  %v1248_v12 = vmul.f32 0.2, %v936_v7  ;;  %v1253_v14 = vmul.f32 0.2, %v835_v10  ;;  %v938_v16 = vpop.f32.mrb[26].mxu1 }
 0x140   : > { %1755 = vst [vmem:[#allocation3 + $0x88] sm:$0xff] %v6487_v59  ;;  %v837_v18 = vpop.f32.mrb[27].mxu0  ;;  %v1359_v19 = vmax.f32 %v934_v61, %v1247_v3  ;;  %v1358_v20 = vmax.f32 %v833_v36, %v1246_v4  ;;  %v1255_v21 = vmul.f32 0.2, %v938_v16  ;;  %v940_v23 = vpop.f32.mrb[27].mxu1  ;;  %v7136_v47 = vld [vmem:[%s9681_s2 + $0x18] sm:$0xff]  }
 0x141   : > { %v1254_v22 = vmul.f32 0.2, %v837_v18  ;;  %v1360_v24 = vmax.f32 %v936_v7, %v1248_v12  ;;  %v1365_v25 = vmax.f32 %v835_v10, %v1253_v14  ;;  %v1256_v27 = vmul.f32 0.2, %v940_v23  ;;  %2849 = vmatpush1.bf16.msra.mxu1 %v7126_v2 }
 0x142   : > { %v6490_v28 = vpack.c.bf16 %v1358_v20, %v1357_v11  ;;  %v1367_v29 = vmax.f32 %v938_v16, %v1255_v21  ;;  %2850 = vmatprep.subr.bf16.mxu1 %v7834_v63  ;;  %v7138_v21 = vld [vmem:[%s9681_s2 + $0x20] sm:$0xff]  }
 0x143   : > { %v1366_v30 = vmax.f32 %v837_v18, %v1254_v22  ;;  %v6491_v34 = vpack.c.bf16 %v1360_v24, %v1359_v19  ;;  %v1368_v35 = vmax.f32 %v940_v23, %v1256_v27  ;;  %v7153_v22 = vld [vmem:[%s9681_s2 + $0x1c0] sm:$0xff]  }
 0x144   : > { %1758 = vst [vmem:[#allocation3 + $0xa0] sm:$0xff] %v6490_v28  ;;  %v977_v41 = vpop.f32.mrb[28].mxu0  ;;  %4225 = vmatpush1.bf16.msra.mxu0 %v7153_v22 }
 0x145   : > { %v6494_v37 = vpack.c.bf16 %v1366_v30, %v1365_v25  ;;  %1759 = vst [vmem:[#allocation3 + $0xa8] sm:$0xff] %v6491_v34  ;;  %v6495_v42 = vpack.c.bf16 %v1368_v35, %v1367_v29  ;;  %v1153_v43 = vmul.f32 0.2, %v977_v41  ;;  %v1080_v44 = vpop.f32.mrb[28].mxu1  ;;  %v979_v46 = vpop.f32.mrb[29].mxu0  ;;  %2851 = vmatpush1.bf16.msra.mxu1 %v7130_v31  ;;  %4226 = vmatprep.subr.bf16.mxu0 %v7834_v63 }
 0x146   : > { %v1155_v48 = vmul.f32 0.2, %v1080_v44  ;;  %v1154_v49 = vmul.f32 0.2, %v979_v46  ;;  %v1082_v53 = vpop.f32.mrb[29].mxu1  ;;  %v981_v55 = vpop.f32.mrb[30].mxu0  ;;  %2852 = vmatprep.subr.bf16.mxu1 %v7834_v63 }
 0x147   : > { %1762 = vst [vmem:[#allocation3 + $0xc0] sm:$0xff] %v6494_v37  ;;  %1763 = vst [vmem:[#allocation3 + $0xc8] sm:$0xff] %v6495_v42  ;;  %v1265_v56 = vmax.f32 %v977_v41, %v1153_v43  ;;  %v1156_v57 = vmul.f32 0.2, %v1082_v53  ;;  %v1161_v59 = vmul.f32 0.2, %v981_v55 }
 0x148   : > { %v1084_v60 = vpop.f32.mrb[30].mxu1  ;;  %v983_v61 = vpop.f32.mrb[31].mxu0  ;;  %v7925_v36 = vmax.f32 %v1080_v44, %v1155_v48  ;;  %v1266_v2 = vmax.f32 %v979_v46, %v1154_v49  ;;  %v7927_v10 = vld [vmem:[#allocation3 + $0x84] sm:$0xff] }
 0x149   : > { %v1163_v3 = vmul.f32 0.2, %v1084_v60  ;;  %v1162_v4 = vmul.f32 0.2, %v983_v61  ;;  %v1086_v7 = vpop.f32.mrb[31].mxu1  ;;  %v7929_v11 = vmax.f32 %v1082_v53, %v1156_v57  ;;  %v1273_v12 = vmax.f32 %v981_v55, %v1161_v59  ;;  %v7931_v16 = vld [vmem:[#allocation3 + $0x88] sm:$0xff]  ;;  %2853 = vmatpush1.bf16.msra.mxu1 %v7136_v47 }
 0x14a   : > { %v1164_v14 = vmul.f32 0.2, %v1086_v7  ;;  %v7933_v18 = vpack.c.bf16 %v1266_v2, %v1265_v56  ;;  %2854 = vmatprep.subr.bf16.mxu1 %v7834_v63  ;;  %v7298_v42 = vpack.c.bf16 %v7811_v8, %v7925_v36  ;;  %v7142_v43 = vld [vmem:[%s9681_s2 + $0x28] sm:$0xff]  }
 0x14b   : > { %v1275_v19 = vmax.f32 %v1084_v60, %v1163_v3  ;;  %v1274_v20 = vmax.f32 %v983_v61, %v1162_v4  ;;  %v6445_v23 = vpack.c.bf16 %v7929_v11, %v7925_v36  ;;  %v7951_v30 = vld [vmem:[#allocation3 + $0xa0] sm:$0xff]  ;;  %v7297_v41 = vpack.c.bf16 %v7815_v0, %v7929_v11 }
 0x14c   : > { %v1276_v24 = vmax.f32 %v1086_v7, %v1164_v14  ;;  %1712 = vst [vmem:[#allocation2 + $0x30] sm:$0xff] %v7933_v18  ;;  %v987_v29 = vpop.f32.mrb[32].mxu0  ;;  %v7953_v31 = vld [vmem:[#allocation3 + $0xa4] sm:$0xff] }
 0x14d   : > { %v7949_v28 = vpack.c.bf16 %v1274_v20, %v1273_v12  ;;  %1713 = vst [vmem:[#allocation2 + $0x38] sm:$0xff] %v6445_v23  ;;  %v1169_v34 = vmul.f32 0.2, %v987_v29  ;;  %v1090_v35 = vpop.f32.mrb[32].mxu1  ;;  %v989_v37 = vpop.f32.mrb[33].mxu0  ;;  %2855 = vmatpush1.bf16.msra.mxu1 %v7138_v21 }
 0x14e   : > { %v7955_v33 = vpack.c.bf16 %v1276_v24, %v1275_v19  ;;  %v1171_v44 = vmul.f32 0.2, %v1090_v35  ;;  %v1170_v46 = vmul.f32 0.2, %v989_v37  ;;  %v1092_v47 = vpop.f32.mrb[33].mxu1  ;;  %v991_v48 = vpop.f32.mrb[34].mxu0  ;;  %2856 = vmatprep.subr.bf16.mxu1 %v7834_v63 }
 0x14f   : > { %1716 = vst [vmem:[#allocation2 + $0x50] sm:$0xff] %v7949_v28  ;;  %v1281_v49 = vmax.f32 %v987_v29, %v1169_v34  ;;  %v1172_v53 = vmul.f32 0.2, %v1092_v47  ;;  %v1177_v55 = vmul.f32 0.2, %v991_v48  ;;  %v1094_v56 = vpop.f32.mrb[34].mxu1 }
 0x150   : > { %1717 = vst [vmem:[#allocation2 + $0x58] sm:$0xff] %v7955_v33  ;;  %v993_v57 = vpop.f32.mrb[35].mxu0  ;;  %v1283_v60 = vmax.f32 %v1090_v35, %v1171_v44  ;;  %v1282_v61 = vmax.f32 %v989_v37, %v1170_v46  ;;  %v1179_v2 = vmul.f32 0.2, %v1094_v56  ;;  %v1096_v4 = vpop.f32.mrb[35].mxu1  ;;  %v7970_v7 = vld [vmem:[#allocation3 + $0xc4] sm:$0xff] }
 0x151   : > { %v1178_v3 = vmul.f32 0.2, %v993_v57  ;;  %9838 = vst [vmem:[#allocation10_spill] sm:$0xff] %v7970_v7  ;;  %v1284_v12 = vmax.f32 %v1092_v47, %v1172_v53  ;;  %v1289_v14 = vmax.f32 %v991_v48, %v1177_v55  ;;  %v1180_v19 = vmul.f32 0.2, %v1096_v4  ;;  %v7972_v20 = vld [vmem:[#allocation3 + $0xc8] sm:$0xff]  ;;  %2857 = vmatpush1.bf16.msra.mxu1 %v7142_v43 }
 0x152   : > { %9839 = vst [vmem:[#allocation11_spill] sm:$0xff] %v7972_v20  ;;  %v7974_v21 = vpack.c.bf16 %v1282_v61, %v1281_v49  ;;  %v1291_v22 = vmax.f32 %v1094_v56, %v1179_v2  ;;  %v7144_v24 = vld [vmem:[%s9681_s2 + $0x30] sm:$0xff]   ;;  %2858 = vmatprep.subr.bf16.mxu1 %v7834_v63  ;;  %v7149_v61 = vld [vmem:[%s9681_s2 + $0x38] sm:$0xff]  }
 0x153   : > { %v1290_v23 = vmax.f32 %v993_v57, %v1178_v3  ;;  %v7979_v29 = vpack.c.bf16 %v1284_v12, %v1283_v60  ;;  %v1292_v34 = vmax.f32 %v1096_v4, %v1180_v19  ;;  %v3099_v35 = vld [vmem:[#allocation2 + $0x2c] sm:$0xff] }
 0x154   : > { %1720 = vst [vmem:[#allocation2 + $0x70] sm:$0xff] %v7974_v21  ;;  %v997_v43 = vpop.f32.mrb[36].mxu0  ;;  %v6258_v47 = vcombine.high %v7817_v1, %v3099_v35  ;;  %v6257_v48 = vcombine.low %v7817_v1, %v3099_v35  ;;  %v7991_v49 = vld [vmem:[#allocation2 + $0x34] sm:$0xff] }
 0x155   : > { %v7987_v46 = vpack.c.bf16 %v1290_v23, %v1289_v14  ;;  %1721 = vst [vmem:[#allocation2 + $0x78] sm:$0xff] %v7979_v29  ;;  %v7996_v55 = vpack.c.bf16 %v1292_v34, %v1291_v22  ;;  %v1185_v56 = vmul.f32 0.2, %v997_v43  ;;  %v1100_v57 = vpop.f32.mrb[36].mxu1  ;;  %v999_v60 = vpop.f32.mrb[37].mxu0  ;;  %v6260_v12 = vcombine.high %v7933_v18, %v7991_v49  ;;  %2859 = vmatpush1.bf16.msra.mxu1 %v7144_v24 }
 0x156   : > { %v1187_v2 = vmul.f32 0.2, %v1100_v57  ;;  %v1186_v1 = vmul.f32 0.2, %v999_v60  ;;  %v1102_v3 = vpop.f32.mrb[37].mxu1  ;;  %v1001_v4 = vpop.f32.mrb[38].mxu0  ;;  %3542 = vmatprep.mubr.bf16.mxu0 %v6258_v47  ;;  %2860 = vmatprep.subr.bf16.mxu1 %v7834_v63 }
 0x157   : > { %1724 = vst [vmem:[#allocation2 + $0x90] sm:$0xff] %v7987_v46  ;;  %1725 = vst [vmem:[#allocation2 + $0x98] sm:$0xff] %v7996_v55  ;;  %v1297_v14 = vmax.f32 %v997_v43, %v1185_v56  ;;  %v1188_v19 = vmul.f32 0.2, %v1102_v3  ;;  %v1193_v22 = vmul.f32 0.2, %v1001_v4  ;;  %3543 = vmatmul.mubr.bf16.gmra.mrb[60].mxu0 %v6257_v48 }
 0x158   : > { %v1104_v23 = vpop.f32.mrb[38].mxu1  ;;  %v1003_v34 = vpop.f32.mrb[39].mxu0  ;;  %v1299_v35 = vmax.f32 %v1100_v57, %v1187_v2  ;;  %v1298_v5 = vmax.f32 %v999_v60, %v1186_v1  ;;  %3550 = vmatprep.mubr.bf16.mxu0 %v6260_v12  ;;  %v7152_v48 = vld [vmem:[%s9681_s2 + $0x40] sm:$0xff]   ;;  %v7159_v56 = vld [vmem:[%s9681_s2 + $0x1c8] sm:$0xff]  }
 0x159   : > { %v1195_v9 = vmul.f32 0.2, %v1104_v23  ;;  %v1194_v51 = vmul.f32 0.2, %v1003_v34  ;;  %v1106_v50 = vpop.f32.mrb[39].mxu1  ;;  %v1300_v47 = vmax.f32 %v1102_v3, %v1188_v19  ;;  %v1305_v53 = vmax.f32 %v1001_v4, %v1193_v22  ;;  %2861 = vmatpush1.bf16.msra.mxu1 %v7149_v61  ;;  %4227 = vmatpush1.bf16.msra.mxu0 %v7159_v56 }
 0x15a   : > { %v1196_v44 = vmul.f32 0.2, %v1106_v50  ;;  %v8006_v24 = vpack.c.bf16 %v1298_v5, %v1297_v14  ;;  %2862 = vmatprep.subr.bf16.mxu1 %v7834_v63  ;;  %v6259_v3 = vcombine.low %v7933_v18, %v7991_v49  ;;  %4228 = vmatprep.subr.bf16.mxu0 %v7834_v63 }
 0x15b   : > { %v1307_v37 = vmax.f32 %v1104_v23, %v1195_v9  ;;  %v1306_v43 = vmax.f32 %v1003_v34, %v1194_v51  ;;  %v8014_v57 = vpack.c.bf16 %v1300_v47, %v1299_v35 }
 0x15c   : > { %v1308_v60 = vmax.f32 %v1106_v50, %v1196_v44  ;;  %1728 = vst [vmem:[#allocation2 + $0xb0] sm:$0xff] %v8006_v24  ;;  %v1007_v9 = vpop.f32.mrb[40].mxu0  ;;  %v7158_v50 = vld [vmem:[%s9681_s2 + $0x48] sm:$0xff]  }
 0x15d   : > { %v8018_v5 = vpack.c.bf16 %v1306_v43, %v1305_v53  ;;  %1729 = vst [vmem:[#allocation2 + $0xb8] sm:$0xff] %v8014_v57  ;;  %v1201_v61 = vmul.f32 0.2, %v1007_v9  ;;  %v1110_v2 = vpop.f32.mrb[40].mxu1  ;;  %v1009_v1 = vpop.f32.mrb[41].mxu0  ;;  %2863 = vmatpush1.bf16.msra.mxu1 %v7152_v48 }
 0x15e   : > { %v8021_v51 = vpack.c.bf16 %v1308_v60, %v1307_v37  ;;  %v1203_v44 = vmul.f32 0.2, %v1110_v2  ;;  %v1202_v53 = vmul.f32 0.2, %v1009_v1  ;;  %v1112_v4 = vpop.f32.mrb[41].mxu1  ;;  %v1011_v12 = vpop.f32.mrb[42].mxu0  ;;  %2864 = vmatprep.subr.bf16.mxu1 %v7834_v63 }
 0x15f   : > { %1732 = vst [vmem:[#allocation2 + $0xd0] sm:$0xff] %v8018_v5  ;;  %v1313_v37 = vmax.f32 %v1007_v9, %v1201_v61  ;;  %v1204_v14 = vmul.f32 0.2, %v1112_v4  ;;  %v1209_v19 = vmul.f32 0.2, %v1011_v12  ;;  %v1114_v22 = vpop.f32.mrb[42].mxu1  ;;  %3551 = vmatmul.mubr.bf16.gmra.mrb[64].mxu0 %v6259_v3 }
 0x160   : > { %1733 = vst [vmem:[#allocation2 + $0xd8] sm:$0xff] %v8021_v51  ;;  %v1013_v18 = vpop.f32.mrb[43].mxu0  ;;  %v8032_v49 = vmax.f32 %v1110_v2, %v1203_v44  ;;  %v1314_v23 = vmax.f32 %v1009_v1, %v1202_v53  ;;  %v1211_v34 = vmul.f32 0.2, %v1114_v22  ;;  %v1116_v47 = vpop.f32.mrb[43].mxu1  ;;  %3558 = vmatprep.mubr.bf16.mxu0 %v7297_v41  ;;  %v8037_v43 = vld [vmem:[#allocation2 + $0x8c] sm:$0xff] }
 0x161   : > { %v1210_v35 = vmul.f32 0.2, %v1013_v18  ;;  %v8039_v48 = vmax.f32 %v1112_v4, %v1204_v14  ;;  %v1321_v56 = vmax.f32 %v1011_v12, %v1209_v19  ;;  %v1212_v60 = vmul.f32 0.2, %v1116_v47  ;;  %v8045_v3 = vld [vmem:[#allocation2 + $0x88] sm:$0xff]  ;;  %2865 = vmatpush1.bf16.msra.mxu1 %v7158_v50  ;;  %v7162_v1 = vld [vmem:[%s9681_s2 + $0x50] sm:$0xff]  }
 0x162   : > { %9840 = vst [vmem:[#allocation12_spill] sm:$0xff] %v8032_v49  ;;  %v8041_v9 = vpack.c.bf16 %v1314_v23, %v1313_v37  ;;  %v8043_v61 = vmax.f32 %v1114_v22, %v1211_v34  ;;  %v8054_v41 = vld [vmem:[#allocation2 + $0x44] sm:$0xff]  ;;  %2866 = vmatprep.subr.bf16.mxu1 %v7834_v63 }
 0x163   : > { %v1322_v2 = vmax.f32 %v1013_v18, %v1210_v35  ;;  %v6469_v0 = vpack.c.bf16 %v8039_v48, %v8032_v49  ;;  %v8052_v11 = vmax.f32 %v1116_v47, %v1212_v60  ;;  %v6264_v35 = vcombine.high %v8054_v41, %v7823_v6 }
 0x164   : > { %1736 = vst [vmem:[#allocation2 + $0xf0] sm:$0xff] %v8041_v9  ;;  %v1017_v50 = vpop.f32.mrb[44].mxu0 }
 0x165   : > { %v8060_v53 = vpack.c.bf16 %v1322_v2, %v1321_v56  ;;  %1737 = vst [vmem:[#allocation2 + $0xf8] sm:$0xff] %v6469_v0  ;;  %v6473_v12 = vpack.c.bf16 %v8052_v11, %v8043_v61  ;;  %v1217_v37 = vmul.f32 0.2, %v1017_v50  ;;  %v1120_v14 = vpop.f32.mrb[44].mxu1  ;;  %v1019_v19 = vpop.f32.mrb[45].mxu0  ;;  %2867 = vmatpush1.bf16.msra.mxu1 %v7162_v1 }
 0x166   : > { %v1219_v22 = vmul.f32 0.2, %v1120_v14  ;;  %v1218_v18 = vmul.f32 0.2, %v1019_v19  ;;  %v1122_v23 = vpop.f32.mrb[45].mxu1  ;;  %v1021_v34 = vpop.f32.mrb[46].mxu0  ;;  %2868 = vmatprep.subr.bf16.mxu1 %v7834_v63 }
 0x167   : > { %1740 = vst [vmem:[#allocation3 + $0x10] sm:$0xff] %v8060_v53  ;;  %1741 = vst [vmem:[#allocation3 + $0x18] sm:$0xff] %v6473_v12  ;;  %v1329_v47 = vmax.f32 %v1017_v50, %v1217_v37  ;;  %v1220_v56 = vmul.f32 0.2, %v1122_v23  ;;  %v1225_v60 = vmul.f32 0.2, %v1021_v34  ;;  %3559 = vmatmul.mubr.bf16.gmra.mrb[68].mxu0 %v7298_v42 }
 0x168   : > { %v1124_v2 = vpop.f32.mrb[46].mxu1  ;;  %v1023_v0 = vpop.f32.mrb[47].mxu0  ;;  %v1331_v44 = vmax.f32 %v1120_v14, %v1219_v22  ;;  %v1330_v59 = vmax.f32 %v1019_v19, %v1218_v18  ;;  %3566 = vmatprep.mubr.bf16.mxu0 %v6264_v35  ;;  %v7163_v50 = vld [vmem:[%s9681_s2 + $0x1d0] sm:$0xff]  }
 0x169   : > { %v1227_v27 = vmul.f32 0.2, %v1124_v2  ;;  %v1226_v25 = vmul.f32 0.2, %v1023_v0  ;;  %v1126_v1 = vpop.f32.mrb[47].mxu1  ;;  %v1332_v12 = vmax.f32 %v1122_v23, %v1220_v56  ;;  %v1337_v37 = vmax.f32 %v1021_v34, %v1225_v60  ;;  %v8084_v19 = vld [vmem:[#allocation2 + $0x4c] sm:$0xff]  ;;  %4229 = vmatpush1.bf16.msra.mxu0 %v7163_v50 }
 0x16a   : > { %v1228_v62 = vmul.f32 0.2, %v1126_v1  ;;  %v8080_v36 = vpack.c.bf16 %v1330_v59, %v1329_v47  ;;  %4230 = vmatprep.subr.bf16.mxu0 %v7834_v63  ;;  %v6266_v47 = vcombine.high %v8084_v19, %v7949_v28 }
 0x16b   : > { %v8082_v42 = vmax.f32 %v1124_v2, %v1227_v27  ;;  %v1338_v14 = vmax.f32 %v1023_v0, %v1226_v25  ;;  %v8086_v22 = vpack.c.bf16 %v1332_v12, %v1331_v44  ;;  %v6263_v44 = vcombine.low %v8054_v41, %v7823_v6 }
 0x16c   : > { %v8088_v18 = vmax.f32 %v1126_v1, %v1228_v62  ;;  %1744 = vst [vmem:[#allocation3 + $0x30] sm:$0xff] %v8080_v36  ;;  %v1027_v34 = vpop.f32.mrb[48].mxu0 }
 0x16d   : > { %v8092_v23 = vpack.c.bf16 %v1338_v14, %v1337_v37  ;;  %1745 = vst [vmem:[#allocation3 + $0x38] sm:$0xff] %v8086_v22  ;;  %v1233_v25 = vmul.f32 0.2, %v1027_v34  ;;  %v1130_v59 = vpop.f32.mrb[48].mxu1  ;;  %v1029_v35 = vpop.f32.mrb[49].mxu0 }
 0x16e   : > { %v6481_v27 = vpack.c.bf16 %v8088_v18, %v8082_v42  ;;  %v1868_v62 = vld [vmem:[#allocation3 + $0xc] sm:$0xff]  ;;  %v1235_v56 = vmul.f32 0.2, %v1130_v59  ;;  %v1234_v60 = vmul.f32 0.2, %v1029_v35  ;;  %v1132_v2 = vpop.f32.mrb[49].mxu1 }
 0x16f   : > { %1748 = vst [vmem:[#allocation3 + $0x50] sm:$0xff] %v8092_v23  ;;  %v1031_v0 = vpop.f32.mrb[50].mxu0  ;;  %v6126_v1 = vcombine.high %v7851_v40, %v1868_v62  ;;  %v6125_v50 = vcombine.low %v7851_v40, %v1868_v62  ;;  %v1345_v12 = vmax.f32 %v1027_v34, %v1233_v25  ;;  %v1236_v37 = vmul.f32 0.2, %v1132_v2  ;;  %v1134_v8 = vpop.f32.mrb[50].mxu1  ;;  %3567 = vmatmul.mubr.bf16.gmra.mrb[72].mxu0 %v6263_v44  ;;  %v1882_v49 = vld [vmem:[#allocation3 + $0x14] sm:$0xff] }
 0x170   : > { %1749 = vst [vmem:[#allocation3 + $0x58] sm:$0xff] %v6481_v27  ;;  %v1241_v14 = vmul.f32 0.2, %v1031_v0  ;;  %v1033_v6 = vpop.f32.mrb[51].mxu0  ;;  %v1347_v4 = vmax.f32 %v1130_v59, %v1235_v56  ;;  %v1346_v45 = vmax.f32 %v1029_v35, %v1234_v60  ;;  %v1243_v39 = vmul.f32 0.2, %v1134_v8  ;;  %3574 = vmatprep.mubr.bf16.mxu0 %v6266_v47 }
 0x171   : > { %v1242_v38 = vmul.f32 0.2, %v1033_v6  ;;  %v1136_v20 = vpop.f32.mrb[51].mxu1  ;;  %2311 = vmatprep.mubr.bf16.mxu1 %v6126_v1  ;;  %v1348_v7 = vmax.f32 %v1132_v2, %v1236_v37  ;;  %v6128_v34 = vcombine.high %v8060_v53, %v1882_v49  ;;  %v7167_v59 = vld [vmem:[%s9681_s2 + $0x58] sm:$0xff]  }
 0x172   : > { %v1353_v40 = vmax.f32 %v1031_v0, %v1241_v14  ;;  %v1244_v27 = vmul.f32 0.2, %v1136_v20  ;;  %2312 = vmatmul.mubr.bf16.gmra.mrb[60].mxu1 %v6125_v50  ;;  %v8107_v25 = vpack.c.bf16 %v1346_v45, %v1345_v12  ;;  %v1355_v44 = vmax.f32 %v1134_v8, %v1243_v39  ;;  %v7168_v35 = vld [vmem:[%s9681_s2 + $0x1d8] sm:$0xff]  }
 0x173   : > { %v1354_v62 = vmax.f32 %v1033_v6, %v1242_v38  ;;  %v8115_v47 = vpack.c.bf16 %v1348_v7, %v1347_v4  ;;  %2319 = vmatprep.mubr.bf16.mxu1 %v6128_v34  ;;  %v3114_v60 = vld [vmem:[#allocation2 + $0x54] sm:$0xff]  ;;  %2869 = vmatpush1.bf16.msra.mxu1 %v7167_v59 }
 0x174   : > { %v1356_v56 = vmax.f32 %v1136_v20, %v1244_v27  ;;  %1752 = vst [vmem:[#allocation3 + $0x70] sm:$0xff] %v8107_v25  ;;  %v1037_v38 = vpop.f32.mrb[52].mxu0  ;;  %4231 = vmatpush1.bf16.msra.mxu0 %v7168_v35  ;;  %v6265_v20 = vcombine.low %v8084_v19, %v7949_v28  ;;  %2870 = vmatprep.subr.bf16.mxu1 %v7834_v63 }
 0x175   : > { %v8120_v39 = vpack.c.bf16 %v1354_v62, %v1353_v40  ;;  %1753 = vst [vmem:[#allocation3 + $0x78] sm:$0xff] %v8115_v47  ;;  %v1249_v8 = vmul.f32 0.2, %v1037_v38  ;;  %v1140_v7 = vpop.f32.mrb[52].mxu1  ;;  %v1039_v4 = vpop.f32.mrb[53].mxu0  ;;  %4232 = vmatprep.subr.bf16.mxu0 %v7834_v63  ;;  %v6268_v37 = vcombine.high %v3114_v60, %v7955_v33  ;;  %v6127_v28 = vcombine.low %v8060_v53, %v1882_v49 }
 0x176   : > { %v8123_v45 = vpack.c.bf16 %v1356_v56, %v1355_v44  ;;  %v1251_v0 = vmul.f32 0.2, %v1140_v7  ;;  %v1250_v1 = vmul.f32 0.2, %v1039_v4  ;;  %v1142_v50 = vpop.f32.mrb[53].mxu1  ;;  %v1041_v12 = vpop.f32.mrb[54].mxu0 }
 0x177   : > { %1756 = vst [vmem:[#allocation3 + $0x90] sm:$0xff] %v8120_v39  ;;  %v1361_v14 = vmax.f32 %v1037_v38, %v1249_v8  ;;  %v1252_v6 = vmul.f32 0.2, %v1142_v50  ;;  %v1257_v40 = vmul.f32 0.2, %v1041_v12  ;;  %v1043_v27 = vpop.f32.mrb[55].mxu0  ;;  %3575 = vmatmul.mubr.bf16.gmra.mrb[76].mxu0 %v6265_v20  ;;  %v9841_v38 = vpack.c.bf16 %v7867_v58, %v8052_v11 }
 0x178   : > { %1757 = vst [vmem:[#allocation3 + $0x98] sm:$0xff] %v8123_v45  ;;  %v1363_v19 = vmax.f32 %v1140_v7, %v1251_v0  ;;  %v1362_v34 = vmax.f32 %v1039_v4, %v1250_v1  ;;  %v1258_v63 = vmul.f32 0.2, %v1043_v27  ;;  %3582 = vmatprep.mubr.bf16.mxu0 %v6268_v37  ;;  %v1144_v44 = vpop.f32.mrb[54].mxu1  ;;  %v6267_v4 = vcombine.low %v3114_v60, %v7955_v33  ;;  %v8149_v0 = vld [vmem:[#allocation3 + $0x24] sm:$0xff] }
 0x179   : > { %v1364_v62 = vmax.f32 %v1142_v50, %v1252_v6  ;;  %v1369_v59 = vmax.f32 %v1041_v12, %v1257_v40  ;;  %v1259_v35 = vmul.f32 0.2, %v1144_v44  ;;  %v1146_v56 = vpop.f32.mrb[55].mxu1  ;;  %v7128_v58 = vld [vmem:[#allocation2 + $0x64] sm:$0xff]   ;;  %v6132_v1 = vcombine.high %v8149_v0, %v7879_v13  ;;  %v8180_v6 = vld [vmem:[#allocation3 + $0x2c] sm:$0xff] }
 0x17a   : > { %2320 = vmatmul.mubr.bf16.gmra.mrb[64].mxu1 %v6127_v28  ;;  %v8133_v2 = vpack.c.bf16 %v1362_v34, %v1361_v14  ;;  %v1370_v41 = vmax.f32 %v1043_v27, %v1258_v63  ;;  %v1260_v8 = vmul.f32 0.2, %v1146_v56  ;;  %v7175_v33 = vld [vmem:[%s9681_s2 + $0x1e0] sm:$0xff]   ;;  %v9842_v60 = vpack.c.bf16 %v7865_v52, %v8043_v61  ;;  %v8168_v50 = vld [vmem:[#allocation3 + $0xa8] sm:$0xff] }
 0x17b   : > { %2327 = vmatprep.mubr.bf16.mxu1 %v9841_v38  ;;  %v8138_v20 = vpack.c.bf16 %v1364_v62, %v1363_v19  ;;  %v8140_v49 = vmax.f32 %v1144_v44, %v1259_v35  ;;  %4233 = vmatpush1.bf16.msra.mxu0 %v7175_v33  ;;  %v8172_v37 = vld [vmem:[#allocation2] sm:$0xff]  ;;  %v7133_v40 = vld [vmem:[#allocation2 + $0x6c] sm:$0xff]   ;;  %v6131_v27 = vcombine.low %v8149_v0, %v7879_v13  ;;  %v3115_v13 = vld [vmem:[#allocation2 + $0x74] sm:$0xff] }
 0x17c   : > { %1760 = vst [vmem:[#allocation3 + $0xb0] sm:$0xff] %v8133_v2  ;;  %v8143_v53 = vpack.c.bf16 %v1370_v41, %v1369_v59  ;;  %v8145_v7 = vmax.f32 %v1146_v56, %v1260_v8  ;;  %v7174_v41 = vld [vmem:[%s9681_s2 + $0x60] sm:$0xff]   ;;  %4234 = vmatprep.subr.bf16.mxu0 %v8172_v37  ;;  %v6134_v28 = vcombine.high %v8180_v6, %v8080_v36  ;;  %v7177_v34 = vld [vmem:[%s9681_s2 + $0x1e8] sm:$0xff]   ;;  %v8196_v59 = vld [vmem:[#allocation3 + $0x34] sm:$0xff] }
 0x17d   : > { %1761 = vst [vmem:[#allocation3 + $0xb8] sm:$0xff] %v8138_v20  ;;  %2871 = vmatpush1.bf16.msra.mxu1 %v7174_v41  ;;  %v7132_v61 = vld [vmem:[#allocation2 + $0x60] sm:$0xff]   ;;  %v7178_v63 = vld [vmem:[%s9681_s2 + $0x68] sm:$0xff]   ;;  %v6274_v35 = vcombine.high %v7974_v21, %v3115_v13  ;;  %v6133_v56 = vcombine.low %v8180_v6, %v8080_v36  ;;  %v7179_v38 = vld [vmem:[%s9681_s2 + $0x1f0] sm:$0xff]   ;;  %v6136_v8 = vcombine.high %v8196_v59, %v8086_v22 }
 0x17e   : > { %1764 = vst [vmem:[#allocation3 + $0xd0] sm:$0xff] %v8143_v53  ;;  %v8154_v11 = vpack.c.bf16 %v8145_v7, %v8140_v49  ;;  %2872 = vmatprep.subr.bf16.mxu1 %v8172_v37  ;;  %v7135_v62 = vld [vmem:[#allocation2 + $0x68] sm:$0xff]   ;;  %v7184_v36 = vld [vmem:[%s9681_s2 + $0x1f8] sm:$0xff]   ;;  %v3081_v41 = vld [vmem:[#allocation2 + $0x80] sm:$0xff] }
 0x17f   : > { %3583 = vmatmul.mubr.bf16.gmra.mrb[80].mxu0 %v6267_v4  ;;  %v6276_v33 = vcombine.high %v7979_v29, %v3081_v41 }
 0x180   : > { %3590 = vmatprep.mubr.bf16.mxu0 %v7128_v58  ;;  %1765 = vst [vmem:[#allocation3 + $0xd8] sm:$0xff] %v8154_v11  ;;  %4235 = vmatpush1.bf16.msra.mxu0 %v7177_v34  ;;  %v6273_v58 = vcombine.low %v7974_v21, %v3115_v13  ;;  %v8225_v21 = vld [vmem:[#allocation2 + $0x84] sm:$0xff]  ;;  %v7190_v13 = vld [vmem:[%s9681_s2 + $0x78] sm:$0xff]  }
 0x181   : > { %2873 = vmatpush1.bf16.msra.mxu1 %v7178_v63  ;;  %4236 = vmatprep.subr.bf16.mxu0 %v8172_v37 }
 0x182   : > { %2328 = vmatmul.mubr.bf16.gmra.mrb[68].mxu1 %v9842_v60  ;;  %2874 = vmatprep.subr.bf16.mxu1 %v8172_v37  ;;  %v6135_v60 = vcombine.low %v8196_v59, %v8086_v22  ;;  %v6278_v22 = vcombine.high %v8225_v21, %v8045_v3 }
 0x183   : > { %2335 = vmatprep.mubr.bf16.mxu1 %v6132_v1  ;;  %v8170_v12 = vld [vmem:[#allocation3 + $0xac] sm:$0xff]  ;;  %v8215_v1 = vld [vmem:[#allocation3 + $0x44] sm:$0xff] }
 0x184   : > { %v6352_v14 = vcombine.high %v8168_v50, %v8170_v12  ;;  %v6351_v52 = vcombine.low %v8168_v50, %v8170_v12  ;;  %4237 = vmatpush1.bf16.msra.mxu0 %v7179_v38  ;;  %v6137_v34 = vcombine.low %v7883_v15, %v8215_v1  ;;  %v8250_v38 = vld [vmem:[#allocation2 + $0x94] sm:$0xff] }
 0x185   : > { %4238 = vmatprep.subr.bf16.mxu0 %v8172_v37 }
 0x187   : > { %3591 = vmatmul.mubr.bf16.gmra.mrb[84].mxu0 %v7132_v61  ;;  %v8186_v19 = vld [vmem:[#allocation3 + $0xd4] sm:$0xff]  ;;  %v6138_v61 = vcombine.high %v7883_v15, %v8215_v1 }
 0x188   : > { %3598 = vmatprep.mubr.bf16.mxu0 %v7133_v40  ;;  %v6362_v44 = vcombine.high %v8186_v19, %v8154_v11  ;;  %v6361_v4 = vcombine.low %v8186_v19, %v8154_v11  ;;  %4239 = vmatpush1.bf16.msra.mxu0 %v7184_v36  ;;  %v7187_v40 = vld [vmem:[%s9681_s2 + $0x70] sm:$0xff]   ;;  %v6282_v36 = vcombine.high %v8250_v38, %v7996_v55 }
 0x189   : > { %2875 = vmatpush1.bf16.msra.mxu1 %v7187_v40  ;;  %v9844_v40 = vpack.c.bf16 %v7894_v26, %v8082_v42  ;;  %v8283_v26 = vld [vmem:[#allocation2 + $0xb4] sm:$0xff] }
 0x18a   : > { %2336 = vmatmul.mubr.bf16.gmra.mrb[72].mxu1 %v6131_v27  ;;  %2876 = vmatprep.subr.bf16.mxu1 %v8172_v37  ;;  %v6275_v27 = vcombine.low %v7979_v29, %v3081_v41  ;;  %v6277_v29 = vcombine.low %v8225_v21, %v8045_v3  ;;  %v8261_v41 = vld [vmem:[#allocation2 + $0xa0] sm:$0xff] }
 0x18b   : > { %2343 = vmatprep.mubr.bf16.mxu1 %v6134_v28  ;;  %v8229_v28 = vld [vmem:[#allocation3 + $0x4c] sm:$0xff] }
 0x18c   : > { %v6140_v63 = vcombine.high %v7886_v17, %v8229_v28  ;;  %v6139_v15 = vcombine.low %v7886_v17, %v8229_v28  ;;  %v9843_v17 = vpack.c.bf16 %v7896_v32, %v8088_v18  ;;  %v8273_v32 = vld [vmem:[#allocation2 + $0xac] sm:$0xff] }
 0x18d   : > { %2877 = vmatpush1.bf16.msra.mxu1 %v7190_v13  ;;  %v8286_v13 = vld [vmem:[#allocation3 + $0x74] sm:$0xff] }
 0x18f   : > { %3599 = vmatmul.mubr.bf16.gmra.mrb[88].mxu0 %v7135_v62  ;;  %v8242_v62 = vld [vmem:[#allocation3 + $0x54] sm:$0xff] }
 0x190   : > { %3606 = vmatprep.mubr.bf16.mxu0 %v6274_v35  ;;  %v6280_v35 = vcombine.high %v8037_v43, %v7987_v46 }
 0x192   : > { %2344 = vmatmul.mubr.bf16.gmra.mrb[76].mxu1 %v6133_v56  ;;  %v6142_v56 = vcombine.high %v8092_v23, %v8242_v62 }
 0x193   : > { %2351 = vmatprep.mubr.bf16.mxu1 %v6136_v8  ;;  %v6279_v8 = vcombine.low %v8037_v43, %v7987_v46  ;;  %v7281_v46 = vld [vmem:[#allocation2 + $0xa4] sm:$0xff] }
 0x194   : > { %v6283_v18 = vcombine.low %v8261_v41, %v7281_v46 }
 0x197   : > { %3607 = vmatmul.mubr.bf16.gmra.mrb[92].mxu0 %v6273_v58  ;;  %v6141_v58 = vcombine.low %v8092_v23, %v8242_v62 }
 0x198   : > { %3614 = vmatprep.mubr.bf16.mxu0 %v6276_v33  ;;  %v6281_v33 = vcombine.low %v8250_v38, %v7996_v55  ;;  %v8276_v55 = vld [vmem:[#allocation3 + $0x6c] sm:$0xff] }
 0x19a   : > { %2352 = vmatmul.mubr.bf16.gmra.mrb[80].mxu1 %v6135_v60  ;;  %v8265_v60 = vld [vmem:[#allocation3 + $0x64] sm:$0xff] }
 0x19b   : > { %2359 = vmatprep.mubr.bf16.mxu1 %v6138_v61  ;;  %v6284_v61 = vcombine.high %v8261_v41, %v7281_v46  ;;  %v6146_v23 = vcombine.high %v8265_v60, %v7906_v54  ;;  %v7284_v46 = vld [vmem:[#allocation2 + $0xc4] sm:$0xff] }
 0x19f   : > { %3615 = vmatmul.mubr.bf16.gmra.mrb[96].mxu0 %v6275_v27  ;;  %v7282_v27 = vld [vmem:[#allocation2 + $0xa8] sm:$0xff] }
 0x1a0   : > { %3622 = vmatprep.mubr.bf16.mxu0 %v6278_v22  ;;  %v6286_v22 = vcombine.high %v7282_v27, %v8273_v32  ;;  %v6285_v42 = vcombine.low %v7282_v27, %v8273_v32 }
 0x1a2   : > { %2360 = vmatmul.mubr.bf16.gmra.mrb[84].mxu1 %v6137_v34  ;;  %v6145_v34 = vcombine.low %v8265_v60, %v7906_v54  ;;  %v6150_v54 = vcombine.high %v8286_v13, %v8115_v47 }
 0x1a3   : > { %2367 = vmatprep.mubr.bf16.mxu1 %v6140_v63  ;;  %v6148_v63 = vcombine.high %v8276_v55, %v8107_v25 }
 0x1a7   : > { %3623 = vmatmul.mubr.bf16.gmra.mrb[100].mxu0 %v6277_v29  ;;  %v6288_v29 = vcombine.high %v8006_v24, %v8283_v26 }
 0x1a8   : > { %3630 = vmatprep.mubr.bf16.mxu0 %v6280_v35  ;;  %v6147_v35 = vcombine.low %v8276_v55, %v8107_v25 }
 0x1aa   : > { %2368 = vmatmul.mubr.bf16.gmra.mrb[88].mxu1 %v6139_v15  ;;  %v6287_v15 = vcombine.low %v8006_v24, %v8283_v26  ;;  %v8306_v24 = vld [vmem:[#allocation3 + $0x8c] sm:$0xff] }
 0x1ab   : > { %2375 = vmatprep.mubr.bf16.mxu1 %v6142_v56  ;;  %v8296_v56 = vld [vmem:[#allocation3 + $0x80] sm:$0xff] }
 0x1ac   : > { %v6152_v25 = vcombine.high %v8296_v56, %v7927_v10 }
 0x1af   : > { %3631 = vmatmul.mubr.bf16.gmra.mrb[104].mxu0 %v6279_v8  ;;  %v7283_v8 = vld [vmem:[#allocation2 + $0xc0] sm:$0xff] }
 0x1b0   : > { %3638 = vmatprep.mubr.bf16.mxu0 %v6282_v36  ;;  %v6290_v36 = vcombine.high %v8014_v57, %v7283_v8 }
 0x1b2   : > { %2376 = vmatmul.mubr.bf16.gmra.mrb[92].mxu1 %v6141_v58  ;;  %v6149_v58 = vcombine.low %v8286_v13, %v8115_v47  ;;  %v6154_v47 = vcombine.high %v7931_v16, %v8306_v24 }
 0x1b3   : > { %2383 = vmatprep.mubr.bf16.mxu1 %v9843_v17  ;;  %v8303_v17 = vld [vmem:[#allocation2 + $0xc8] sm:$0xff] }
 0x1b7   : > { %3639 = vmatmul.mubr.bf16.gmra.mrb[108].mxu0 %v6281_v33  ;;  %v6289_v33 = vcombine.low %v8014_v57, %v7283_v8  ;;  %v8316_v57 = vld [vmem:[#allocation3 + $0x94] sm:$0xff]  ;;  %v7164_v8 = vld [vmem:[#allocation2 + $0xe4] sm:$0xff]  }
 0x1b8   : > { %3646 = vmatprep.mubr.bf16.mxu0 %v6284_v61  ;;  %v6292_v61 = vcombine.high %v7284_v46, %v8303_v17 }
 0x1ba   : > { %2384 = vmatmul.mubr.bf16.gmra.mrb[96].mxu1 %v9844_v40  ;;  %v8313_v40 = vld [vmem:[#allocation2 + $0xcc] sm:$0xff] }
 0x1bb   : > { %2391 = vmatprep.mubr.bf16.mxu1 %v6146_v23  ;;  %v6151_v23 = vcombine.low %v8296_v56, %v7927_v10  ;;  %v6294_v27 = vcombine.high %v8313_v40, %v8018_v5 }
 0x1bf   : > { %3647 = vmatmul.mubr.bf16.gmra.mrb[112].mxu0 %v6283_v18  ;;  %v6291_v18 = vcombine.low %v7284_v46, %v8303_v17  ;;  %v8344_v46 = vld [vmem:[#allocation3 + $0xb4] sm:$0xff] }
 0x1c0   : > { %3654 = vmatprep.mubr.bf16.mxu0 %v6286_v22  ;;  %v6153_v22 = vcombine.low %v7931_v16, %v8306_v24 }
 0x1c2   : > { %2392 = vmatmul.mubr.bf16.gmra.mrb[100].mxu1 %v6145_v34  ;;  %v6156_v34 = vcombine.high %v8120_v39, %v8316_v57 }
 0x1c3   : > { %2399 = vmatprep.mubr.bf16.mxu1 %v6148_v63  ;;  %v8324_v63 = vld [vmem:[#allocation2 + $0xd4] sm:$0xff] }
 0x1c7   : > { %3655 = vmatmul.mubr.bf16.gmra.mrb[116].mxu0 %v6285_v42  ;;  %v6293_v42 = vcombine.low %v8313_v40, %v8018_v5  ;;  %v6157_v5 = vcombine.low %v8123_v45, %v7951_v30 }
 0x1c8   : > { %3662 = vmatprep.mubr.bf16.mxu0 %v6288_v29  ;;  %v6296_v29 = vcombine.high %v8324_v63, %v8021_v51 }
 0x1ca   : > { %2400 = vmatmul.mubr.bf16.gmra.mrb[104].mxu1 %v6147_v35  ;;  %v6155_v35 = vcombine.low %v8120_v39, %v8316_v57  ;;  %v7169_v39 = vld [vmem:[#allocation2 + $0xe0] sm:$0xff]  }
 0x1cb   : > { %2407 = vmatprep.mubr.bf16.mxu1 %v6150_v54  ;;  %v6158_v54 = vcombine.high %v8123_v45, %v7951_v30  ;;  %v7173_v45 = vld [vmem:[#allocation2 + $0xe8] sm:$0xff]  }
 0x1cf   : > { %3663 = vmatmul.mubr.bf16.gmra.mrb[120].mxu0 %v6287_v15  ;;  %v6295_v15 = vcombine.low %v8324_v63, %v8021_v51  ;;  %v6162_v51 = vcombine.high %v8170_v12, %v8133_v2 }
 0x1d0   : > { %3670 = vmatprep.mubr.bf16.mxu0 %v6290_v36  ;;  %v6160_v36 = vcombine.high %v7953_v31, %v8168_v50 }
 0x1d2   : > { %2408 = vmatmul.mubr.bf16.gmra.mrb[108].mxu1 %v6149_v58  ;;  %v7170_v58 = vld [vmem:[#allocation2 + $0xec] sm:$0xff]  }
 0x1d3   : > { %2415 = vmatprep.mubr.bf16.mxu1 %v6152_v25  ;;  %v6159_v25 = vcombine.low %v7953_v31, %v8168_v50 }
 0x1d7   : > { %3671 = vmatmul.mubr.bf16.gmra.mrb[124].mxu0 %v6289_v33  ;;  %v3119_v33 = vld [vmem:[#allocation2 + $0xf4] sm:$0xff] }
 0x1d8   : > { %3678 = vmatprep.mubr.bf16.mxu0 %v6292_v61  ;;  %v6302_v61 = vcombine.high %v8041_v9, %v3119_v33 }
 0x1da   : > { %2416 = vmatmul.mubr.bf16.gmra.mrb[112].mxu1 %v6151_v23  ;;  %v6161_v23 = vcombine.low %v8170_v12, %v8133_v2 }
 0x1db   : > { %2423 = vmatprep.mubr.bf16.mxu1 %v6154_v47  ;;  %v6164_v47 = vcombine.high %v8344_v46, %v8138_v20 }
 0x1df   : > { %3679 = vmatmul.mubr.bf16.gmra.mrb[128].mxu0 %v6291_v18  ;;  %v6301_v18 = vcombine.low %v8041_v9, %v3119_v33  ;;  %v8362_v9 = vld [vmem:[#allocation3 + $0xcc] sm:$0xff] }
 0x1e0   : > { %3686 = vmatprep.mubr.bf16.mxu0 %v6294_v27  ;;  %v8352_v27 = vld [vmem:[#allocation3 + $0xc0] sm:$0xff] }
 0x1e2   : > { %2424 = vmatmul.mubr.bf16.gmra.mrb[116].mxu1 %v6153_v22  ;;  %v7303_v22 = vpack.c.bf16 %v8039_v48, %v8039_v48 }
 0x1e3   : > { %2431 = vmatprep.mubr.bf16.mxu1 %v6156_v34  ;;  %v6163_v34 = vcombine.low %v8344_v46, %v8138_v20  ;;  %v9847_v20 = vld [vmem:[#allocation11_spill] sm:$0xff] }
 0x1e7   : > { %3687 = vmatmul.mubr.bf16.gmra.mrb[132].mxu0 %v6293_v42  ;;  %v9845_v42 = vld [vmem:[#allocation10_spill] sm:$0xff] }
 0x1e8   : > { %3694 = vmatprep.mubr.bf16.mxu0 %v6296_v29  ;;  %v6166_v2 = vcombine.high %v8352_v27, %v9845_v42  ;;  %v3784_v29 = vld [vmem:[#allocation3 + $0x20] sm:$0xff]  ;;  %v6165_v48 = vcombine.low %v8352_v27, %v9845_v42 }
 0x1ea   : > { %2432 = vmatmul.mubr.bf16.gmra.mrb[120].mxu1 %v6155_v35  ;;  %v9846_v35 = vld [vmem:[#allocation12_spill] sm:$0xff] }
 0x1eb   : > { %2439 = vmatprep.mubr.bf16.mxu1 %v6158_v54  ;;  %v7304_v54 = vpack.c.bf16 %v9846_v35, %v9846_v35 }
 0x1ef   : > { %3695 = vmatmul.mubr.bf16.gmra.mrb[136].mxu0 %v6295_v15  ;;  %v6322_v15 = vcombine.high %v3784_v29, %v8149_v0 }
 0x1f0   : > { %3702 = vmatprep.mubr.bf16.mxu0 %v7164_v8  ;;  %v6168_v8 = vcombine.high %v9847_v20, %v8362_v9 }
 0x1f2   : > { %2440 = vmatmul.mubr.bf16.gmra.mrb[124].mxu1 %v6157_v5  ;;  %v6321_v5 = vcombine.low %v3784_v29, %v8149_v0  ;;  %v6169_v0 = vcombine.low %v8143_v53, %v8186_v19 }
 0x1f3   : > { %2447 = vmatprep.mubr.bf16.mxu1 %v6160_v36  ;;  %v3798_v36 = vld [vmem:[#allocation3 + $0x28] sm:$0xff] }
 0x1f4   : > { %v6323_v33 = vcombine.low %v3798_v36, %v8180_v6 }
 0x1f7   : > { %3703 = vmatmul.mubr.bf16.gmra.mrb[140].mxu0 %v7169_v39  ;;  %v6324_v39 = vcombine.high %v3798_v36, %v8180_v6  ;;  %v7306_v6 = vpack.c.bf16 %v8140_v49, %v8140_v49 }
 0x1f8   : > { %3710 = vmatprep.mubr.bf16.mxu0 %v7170_v58  ;;  %v6167_v58 = vcombine.low %v9847_v20, %v8362_v9 }
 0x1fa   : > { %2448 = vmatmul.mubr.bf16.gmra.mrb[128].mxu1 %v6159_v25  ;;  %v6170_v25 = vcombine.high %v8143_v53, %v8186_v19  ;;  %v3799_v53 = vld [vmem:[#allocation3 + $0x48] sm:$0xff]  ;;  %v3825_v19 = vld [vmem:[#allocation3 + $0xf4] sm:$0xff] }
 0x1fb   : > { %2455 = vmatprep.mubr.bf16.mxu1 %v6162_v51  ;;  %v3812_v51 = vld [vmem:[#allocation3 + $0x30] sm:$0xff]  ;;  %v6330_v29 = vcombine.high %v8215_v1, %v3799_v53  ;;  %v6329_v49 = vcombine.low %v8215_v1, %v3799_v53 }
 0x1ff   : > { %3711 = vmatmul.mubr.bf16.gmra.mrb[144].mxu0 %v7173_v45  ;;  %v6326_v45 = vcombine.high %v3812_v51, %v8196_v59 }
 0x200   : > { %3718 = vmatprep.mubr.bf16.mxu0 %v6302_v61  ;;  %v7305_v61 = vpack.c.bf16 %v8145_v7, %v8145_v7 }
 0x202   : > { %2456 = vmatmul.mubr.bf16.gmra.mrb[132].mxu1 %v6161_v23  ;;  %v1773_v23 = vld [vmem:[#allocation2 + $0x4] sm:$0xff] }
 0x203   : > { %2463 = vmatprep.mubr.bf16.mxu1 %v6164_v47  ;;  %v6325_v47 = vcombine.low %v3812_v51, %v8196_v59  ;;  %v6189_v7 = vcombine.low %v8172_v37, %v1773_v23  ;;  %v3813_v59 = vld [vmem:[#allocation3 + $0x50] sm:$0xff]  ;;  %v3786_v51 = vld [vmem:[#allocation3 + $0x60] sm:$0xff] }
 0x204   : > { %v6331_v36 = vcombine.low %v8229_v28, %v3813_v59 }
 0x207   : > { %3719 = vmatmul.mubr.bf16.gmra.mrb[148].mxu0 %v6301_v18  ;;  %v7192_v18 = vld [vmem:[#allocation3 + $0x3c] ss:$8 sps:$4 sm:$0xff]  }
 0x208   : > { %3726 = vmatprep.mubr.bf16.mxu0 %v7303_v22  ;;  %v6190_v22 = vcombine.high %v8172_v37, %v1773_v23  ;;  %v3800_v23 = vld [vmem:[#allocation3 + $0x68] sm:$0xff] }
 0x20a   : > { %2464 = vmatmul.mubr.bf16.gmra.mrb[136].mxu1 %v6163_v34  ;;  %v1787_v34 = vld [vmem:[#allocation2 + $0xc] sm:$0xff] }
 0x20b   : > { %2471 = vmatprep.mubr.bf16.mxu1 %v6166_v2  ;;  %v7194_v2 = vld [vmem:[#allocation3 + $0x38] ss:$8 sps:$4 sm:$0xff]   ;;  %v6192_v35 = vcombine.high %v8172_v37, %v1787_v34 }
 0x20f   : > { %3727 = vmatmul.mubr.bf16.gmra.mrb[152].mxu0 %v7304_v54  ;;  %v1801_v54 = vld [vmem:[#allocation2 + $0x14] sm:$0xff] }
 0x210   : > { %4240 = vmatprep.mubr.bf16.mxu0 %v6322_v15  ;;  %v6191_v15 = vcombine.low %v8172_v37, %v1787_v34  ;;  %v7211_v34 = vld [vmem:[#allocation2 + $0x2c] sm:$0xff]  }
 0x212   : > { %2472 = vmatmul.mubr.bf16.gmra.mrb[140].mxu1 %v6165_v48  ;;  %v6332_v48 = vcombine.high %v8229_v28, %v3813_v59  ;;  %v7202_v28 = vld [vmem:[#allocation2 + $0x28] sm:$0xff]  }
 0x213   : > { %2479 = vmatprep.mubr.bf16.mxu1 %v6168_v8  ;;  %v6194_v8 = vcombine.high %v8172_v37, %v1801_v54  ;;  %v7217_v59 = vld [vmem:[#allocation2 + $0x44] sm:$0xff]  }
 0x217   : > { %4241 = vmatmul.mubr.bf16.vlgmr.msra.gmra.mrb[56].mxu0 %v6321_v5  ;;  %v3827_v5 = vld [vmem:[#allocation3 + $0x58] sm:$0xff] }
 0x218   : > { %4248 = vmatprep.mubr.bf16.mxu0 %v6324_v39  ;;  %v6193_v39 = vcombine.low %v8172_v37, %v1801_v54  ;;  %v7221_v54 = vld [vmem:[#allocation2 + $0x40] sm:$0xff]  }
 0x21a   : > { %2480 = vmatmul.mubr.bf16.gmra.mrb[144].mxu1 %v6167_v58  ;;  %v1767_v58 = vld [vmem:[#allocation2 + $0x20] sm:$0xff] }
 0x21b   : > { %2487 = vmatprep.mubr.bf16.mxu1 %v6170_v25  ;;  %v6334_v25 = vcombine.high %v8242_v62, %v3827_v5  ;;  %v6196_v1 = vcombine.high %v8172_v37, %v1767_v58 }
 0x21f   : > { %4249 = vmatmul.mubr.bf16.gmra.mrb[60].mxu0 %v6323_v33  ;;  %v6333_v33 = vcombine.low %v8242_v62, %v3827_v5  ;;  %v3814_v62 = vld [vmem:[#allocation3 + $0x70] sm:$0xff]  ;;  %v7226_v5 = vld [vmem:[#allocation2 + $0x48] sm:$0xff]  }
 0x220   : > { %4256 = vmatprep.mubr.bf16.mxu0 %v6326_v45  ;;  %v6336_v45 = vcombine.high %v3786_v51, %v8265_v60  ;;  %v6340_v53 = vcombine.high %v3814_v62, %v8286_v13 }
 0x222   : > { %2488 = vmatmul.mubr.bf16.gmra.mrb[148].mxu1 %v6169_v0  ;;  %v6195_v0 = vcombine.low %v8172_v37, %v1767_v58 }
 0x223   : > { %2495 = vmatprep.mubr.bf16.mxu1 %v7305_v61  ;;  %v6335_v61 = vcombine.low %v3786_v51, %v8265_v60  ;;  %v3828_v60 = vld [vmem:[#allocation3 + $0x78] sm:$0xff] }
 0x227   : > { %4257 = vmatmul.mubr.bf16.gmra.mrb[64].mxu0 %v6325_v47  ;;  %v6338_v47 = vcombine.high %v3800_v23, %v8276_v55 }
 0x228   : > { %4264 = vmatprep.mubr.bf16.mxu0 %v7192_v18  ;;  %v7206_v18 = vld [vmem:[#allocation2 + $0x24] sm:$0xff]  }
 0x22a   : > { %2496 = vmatmul.mubr.bf16.gmra.mrb[152].mxu1 %v7306_v6  ;;  %v6337_v6 = vcombine.low %v3800_v23, %v8276_v55  ;;  %v6341_v55 = vcombine.low %v3828_v60, %v8296_v56  ;;  %v7247_v23 = vld [vmem:[#allocation2 + $0x78] sm:$0xff]  }
 0x22b   : > { %2878 = vmatprep.mubr.bf16.mxu1 %v6190_v22  ;;  %v7207_v22 = vld [vmem:[#allocation2 + $0x30] sm:$0xff]  }
 0x22f   : > { %4265 = vmatmul.mubr.bf16.gmra.mrb[68].mxu0 %v7194_v2  ;;  %v7212_v2 = vld [vmem:[#allocation2 + $0x38] sm:$0xff]  }
 0x230   : > { %4272 = vmatprep.mubr.bf16.mxu0 %v6330_v29  ;;  %v6342_v29 = vcombine.high %v3828_v60, %v8296_v56  ;;  %v3829_v56 = vld [vmem:[#allocation3 + $0x98] sm:$0xff] }
 0x231   : > { %v6348_v58 = vcombine.high %v8316_v57, %v3829_v56  ;;  %v6347_v51 = vcombine.low %v8316_v57, %v3829_v56  ;;  %v3816_v57 = vld [vmem:[#allocation3 + $0xb0] sm:$0xff]  ;;  %v1812_v60 = vld [vmem:[#allocation2 + $0x98] sm:$0xff] }
 0x232   : > { %2879 = vmatmul.mubr.bf16.vlgmr.msra.gmra.mrb[56].mxu1 %v6189_v7  ;;  %v6339_v7 = vcombine.low %v3814_v62, %v8286_v13  ;;  %v3815_v13 = vld [vmem:[#allocation3 + $0x90] sm:$0xff]  ;;  %v9861_v56 = vld [vmem:[#allocation9_spill] sm:$0xff] }
 0x233   : > { %2886 = vmatprep.mubr.bf16.mxu1 %v6192_v35  ;;  %v7216_v35 = vld [vmem:[#allocation2 + $0x34] sm:$0xff]  }
 0x234   : > { %v3817_v62 = vld [vmem:[#allocation3 + $0xd0] sm:$0xff] }
 0x237   : > { %4273 = vmatmul.mubr.bf16.gmra.mrb[72].mxu0 %v6329_v49  ;;  %v9848_v49 = vcombine.high %v7927_v10, %v7931_v16 }
 0x238   : > { %4280 = vmatprep.mubr.bf16.mxu0 %v6332_v48  ;;  %v6346_v48 = vcombine.high %v8306_v24, %v3815_v13 }
 0x23a   : > { %2887 = vmatmul.mubr.bf16.gmra.mrb[60].mxu1 %v6191_v15  ;;  %v7222_v15 = vld [vmem:[#allocation2 + $0x4c] sm:$0xff]  }
 0x23b   : > { %2894 = vmatprep.mubr.bf16.mxu1 %v6194_v8  ;;  %v9849_v8 = vcombine.low %v7927_v10, %v7931_v16  ;;  %v7236_v10 = vld [vmem:[#allocation2 + $0x58] ss:$8 sps:$4 sm:$0xff]   ;;  %v9850_v16 = vcombine.high %v7951_v30, %v7953_v31 }
 0x23f   : > { %4281 = vmatmul.mubr.bf16.gmra.mrb[76].mxu0 %v6331_v36  ;;  %v7227_v36 = vld [vmem:[#allocation2 + $0x54] sm:$0xff]  }
 0x240   : > { %4288 = vmatprep.mubr.bf16.mxu0 %v6334_v25  ;;  %v7231_v25 = vld [vmem:[#allocation2 + $0x50] sm:$0xff]  }
 0x242   : > { %2895 = vmatmul.mubr.bf16.gmra.mrb[64].mxu1 %v6193_v39  ;;  %v6345_v39 = vcombine.low %v8306_v24, %v3815_v13  ;;  %v9851_v24 = vcombine.low %v7951_v30, %v7953_v31  ;;  %v3830_v30 = vld [vmem:[#allocation3 + $0xb8] sm:$0xff]  ;;  %v6353_v31 = vcombine.low %v3816_v57, %v8344_v46 }
 0x243   : > { %2902 = vmatprep.mubr.bf16.mxu1 %v6196_v1  ;;  %v7232_v1 = vld [vmem:[#allocation2 + $0x5c] ss:$8 sps:$4 sm:$0xff]   ;;  %v6355_v50 = vcombine.low %v3830_v30, %v8352_v27 }
 0x247   : > { %4289 = vmatmul.mubr.bf16.gmra.mrb[80].mxu0 %v6333_v33  ;;  %v7237_v33 = vld [vmem:[#allocation2 + $0x68] sm:$0xff]  }
 0x248   : > { %4296 = vmatprep.mubr.bf16.mxu0 %v6336_v45  ;;  %v7241_v45 = vld [vmem:[#allocation2 + $0x64] sm:$0xff]  }
 0x24a   : > { %2903 = vmatmul.mubr.bf16.gmra.mrb[68].mxu1 %v6195_v0  ;;  %v7242_v0 = vld [vmem:[#allocation2 + $0x70] sm:$0xff]  }
 0x24b   : > { %2910 = vmatprep.mubr.bf16.mxu1 %v7202_v28  ;;  %v6354_v28 = vcombine.high %v3816_v57, %v8344_v46  ;;  %v9853_v46 = vcombine.high %v8045_v3, %v8037_v43 }
 0x24f   : > { %4297 = vmatmul.mubr.bf16.gmra.mrb[84].mxu0 %v6335_v61  ;;  %v7246_v61 = vld [vmem:[#allocation2 + $0x6c] sm:$0xff]  }
 0x250   : > { %4304 = vmatprep.mubr.bf16.mxu0 %v6338_v47  ;;  %v1770_v47 = vld [vmem:[#allocation2 + $0x80] sm:$0xff] }
 0x251   : > { %v6217_v12 = vcombine.low %v1770_v47, %v8225_v21 }
 0x252   : > { %2911 = vmatmul.mubr.bf16.gmra.mrb[72].mxu1 %v7206_v18  ;;  %v7251_v18 = vld [vmem:[#allocation2 + $0x74] sm:$0xff]  }
 0x253   : > { %2918 = vmatprep.mubr.bf16.mxu1 %v7207_v22  ;;  %v6218_v22 = vcombine.high %v1770_v47, %v8225_v21 }
 0x257   : > { %4305 = vmatmul.mubr.bf16.gmra.mrb[88].mxu0 %v6337_v6  ;;  %v1798_v6 = vld [vmem:[#allocation2 + $0x90] sm:$0xff] }
 0x258   : > { %4312 = vmatprep.mubr.bf16.mxu0 %v6340_v53  ;;  %v6360_v53 = vcombine.high %v8362_v9, %v3817_v62  ;;  %v6222_v21 = vcombine.high %v1798_v6, %v8250_v38 }
 0x25a   : > { %2919 = vmatmul.mubr.bf16.gmra.mrb[76].mxu1 %v7211_v34  ;;  %v9854_v34 = vcombine.low %v9845_v42, %v9847_v20 }
 0x25b   : > { %2926 = vmatprep.mubr.bf16.mxu1 %v7212_v2  ;;  %v6359_v2 = vcombine.low %v8362_v9, %v3817_v62  ;;  %v9857_v9 = vld [vmem:[#allocation7_spill] sm:$0xff] }
 0x25f   : > { %4313 = vmatmul.mubr.bf16.gmra.mrb[92].mxu0 %v6339_v7  ;;  %v6221_v7 = vcombine.low %v1798_v6, %v8250_v38  ;;  %v9856_v38 = vld [vmem:[#allocation6_spill] sm:$0xff] }
 0x260   : > { %4320 = vmatprep.mubr.bf16.mxu0 %v6342_v29  ;;  %v9859_v11 = vcombine.low %v9856_v38, %v9857_v9 }
 0x262   : > { %2927 = vmatmul.mubr.bf16.gmra.mrb[80].mxu1 %v7216_v35  ;;  %v9858_v35 = vcombine.high %v9856_v38, %v9857_v9 }
 0x263   : > { %2934 = vmatprep.mubr.bf16.mxu1 %v7217_v59 }
 0x267   : > { %4321 = vmatmul.mubr.bf16.gmra.mrb[96].mxu0 %v6341_v55  ;;  %v1799_v55 = vld [vmem:[#allocation2 + $0xb0] sm:$0xff] }
 0x268   : > { %4328 = vmatprep.mubr.bf16.mxu0 %v9848_v49  ;;  %v1813_v49 = vld [vmem:[#allocation2 + $0xb8] sm:$0xff] }
 0x269   : > { %v6230_v13 = vcombine.high %v8283_v26, %v1813_v49 }
 0x26a   : > { %2935 = vmatmul.mubr.bf16.gmra.mrb[84].mxu1 %v7221_v54  ;;  %v6228_v54 = vcombine.high %v8273_v32, %v1799_v55 }
 0x26b   : > { %2942 = vmatprep.mubr.bf16.mxu1 %v7222_v15  ;;  %v6227_v15 = vcombine.low %v8273_v32, %v1799_v55  ;;  %v6369_v32 = vcombine.low %v8172_v37, %v8172_v37 }
 0x26f   : > { %4329 = vmatmul.mubr.bf16.gmra.mrb[100].mxu0 %v9849_v8  ;;  %v6370_v8 = vcombine.high %v8172_v37, %v8172_v37 }
 0x270   : > { %4336 = vmatprep.mubr.bf16.mxu0 %v6346_v48  ;;  %v6367_v48 = vcombine.low %v8172_v37, %v3825_v19 }
 0x272   : > { %2943 = vmatmul.mubr.bf16.gmra.mrb[88].mxu1 %v7226_v5  ;;  %v6229_v5 = vcombine.low %v8283_v26, %v1813_v49  ;;  %v6233_v26 = vcombine.low %v8303_v17, %v8313_v40 }
 0x273   : > { %2950 = vmatprep.mubr.bf16.mxu1 %v7227_v36  ;;  %v9860_v36 = vld [vmem:[#allocation8_spill] sm:$0xff] }
 0x277   : > { %4337 = vmatmul.mubr.bf16.gmra.mrb[104].mxu0 %v6345_v39  ;;  %v9862_v39 = vcombine.high %v9860_v36, %v9861_v56 }
 0x278   : > { %4344 = vmatprep.mubr.bf16.mxu0 %v6348_v58  ;;  %v6234_v58 = vcombine.high %v8303_v17, %v8313_v40 }
 0x27a   : > { %2951 = vmatmul.mubr.bf16.gmra.mrb[92].mxu1 %v7231_v25  ;;  %v9863_v25 = vcombine.low %v9860_v36, %v9861_v56 }
 0x27b   : > { %2958 = vmatprep.mubr.bf16.mxu1 %v7232_v1  ;;  %v1800_v1 = vld [vmem:[#allocation2 + $0xd0] sm:$0xff] }
 0x27f   : > { %4345 = vmatmul.mubr.bf16.gmra.mrb[108].mxu0 %v6347_v51  ;;  %v6236_v51 = vcombine.high %v1800_v1, %v8324_v63 }
 0x280   : > { %4352 = vmatprep.mubr.bf16.mxu0 %v9850_v16 }
 0x282   : > { %2959 = vmatmul.mubr.bf16.gmra.mrb[96].mxu1 %v7236_v10  ;;  %v1814_v10 = vld [vmem:[#allocation2 + $0xd8] sm:$0xff] }
 0x283   : > { %2966 = vmatprep.mubr.bf16.mxu1 %v7237_v33  ;;  %v6238_v16 = vcombine.high %v1814_v10, %v1814_v10  ;;  %v6237_v57 = vcombine.low %v1814_v10, %v1814_v10 }
 0x287   : > { %4353 = vmatmul.mubr.bf16.gmra.mrb[112].mxu0 %v9851_v24 }
 0x288   : > { %4360 = vmatprep.mubr.bf16.mxu0 %v6352_v14  ;;  %v6356_v14 = vcombine.high %v3830_v30, %v8352_v27  ;;  %v9855_v27 = vcombine.low %v8045_v3, %v8037_v43  ;;  %v6223_v43 = vcombine.low %v1812_v60, %v8261_v41  ;;  %v3811_v3 = vld [vmem:[#allocation3 + $0xec] sm:$0xff] }
 0x289   : > { %v6366_v59 = vcombine.high %v8172_v37, %v3811_v3 }
 0x28a   : > { %2967 = vmatmul.mubr.bf16.gmra.mrb[100].mxu1 %v7241_v45 }
 0x28b   : > { %2974 = vmatprep.mubr.bf16.mxu1 %v7242_v0 }
 0x28f   : > { %4361 = vmatmul.mubr.bf16.gmra.mrb[116].mxu0 %v6351_v52  ;;  %v9852_v52 = vcombine.high %v9845_v42, %v9847_v20  ;;  %v6224_v42 = vcombine.high %v1812_v60, %v8261_v41  ;;  %v3797_v20 = vld [vmem:[#allocation3 + $0xe4] sm:$0xff]  ;;  %v6368_v41 = vcombine.high %v8172_v37, %v3825_v19 }
 0x290   : > { %4368 = vmatprep.mubr.bf16.mxu0 %v6354_v28  ;;  %v6364_v29 = vcombine.high %v8172_v37, %v3797_v20 }
 0x292   : > { %2975 = vmatmul.mubr.bf16.gmra.mrb[104].mxu1 %v7246_v61 }
 0x293   : > { %2982 = vmatprep.mubr.bf16.mxu1 %v7247_v23 }
 0x297   : > { %4369 = vmatmul.mubr.bf16.gmra.mrb[120].mxu0 %v6353_v31 }
 0x298   : > { %4376 = vmatprep.mubr.bf16.mxu0 %v6356_v14 }
 0x29a   : > { %2983 = vmatmul.mubr.bf16.gmra.mrb[108].mxu1 %v7251_v18 }
 0x29b   : > { %2990 = vmatprep.mubr.bf16.mxu1 %v6218_v22 }
 0x29f   : > { %4377 = vmatmul.mubr.bf16.gmra.mrb[124].mxu0 %v6355_v50 }
 0x2a0   : > { %4384 = vmatprep.mubr.bf16.mxu0 %v9852_v52 }
 0x2a2   : > { %2991 = vmatmul.mubr.bf16.gmra.mrb[112].mxu1 %v6217_v12 }
 0x2a3   : > { %2998 = vmatprep.mubr.bf16.mxu1 %v9853_v46 }
 0x2a7   : > { %4385 = vmatmul.mubr.bf16.gmra.mrb[128].mxu0 %v9854_v34 }
 0x2a8   : > { %4392 = vmatprep.mubr.bf16.mxu0 %v6360_v53 }
 0x2aa   : > { %2999 = vmatmul.mubr.bf16.gmra.mrb[116].mxu1 %v9855_v27 }
 0x2ab   : > { %3006 = vmatprep.mubr.bf16.mxu1 %v6222_v21 }
 0x2af   : > { %4393 = vmatmul.mubr.bf16.gmra.mrb[132].mxu0 %v6359_v2 }
 0x2b0   : > { %4400 = vmatprep.mubr.bf16.mxu0 %v6362_v44  ;;  %v6363_v44 = vcombine.low %v8172_v37, %v3797_v20 }
 0x2b2   : > { %3007 = vmatmul.mubr.bf16.gmra.mrb[120].mxu1 %v6221_v7 }
 0x2b3   : > { %3014 = vmatprep.mubr.bf16.mxu1 %v6224_v42 }
 0x2b7   : > { %4401 = vmatmul.mubr.bf16.gmra.mrb[136].mxu0 %v6361_v4  ;;  %v6365_v4 = vcombine.low %v8172_v37, %v3811_v3  ;;  %v6235_v37 = vcombine.low %v1800_v1, %v8324_v63 }
 0x2b8   : > { %4408 = vmatprep.mubr.bf16.mxu0 %v6364_v29 }
 0x2ba   : > { %3015 = vmatmul.mubr.bf16.gmra.mrb[124].mxu1 %v6223_v43 }
 0x2bb   : > { %3022 = vmatprep.mubr.bf16.mxu1 %v9858_v35 }
 0x2bf   : > { %4409 = vmatmul.mubr.bf16.gmra.mrb[140].mxu0 %v6363_v44 }
 0x2c0   : > { %4416 = vmatprep.mubr.bf16.mxu0 %v6366_v59 }
 0x2c2   : > { %3023 = vmatmul.mubr.bf16.gmra.mrb[128].mxu1 %v9859_v11 }
 0x2c3   : > { %3030 = vmatprep.mubr.bf16.mxu1 %v6228_v54 }
 0x2c7   : > { %4417 = vmatmul.mubr.bf16.gmra.mrb[144].mxu0 %v6365_v4 }
 0x2c8   : > { %4424 = vmatprep.mubr.bf16.mxu0 %v6368_v41 }
 0x2ca   : > { %3031 = vmatmul.mubr.bf16.gmra.mrb[132].mxu1 %v6227_v15 }
 0x2cb   : > { %3038 = vmatprep.mubr.bf16.mxu1 %v6230_v13 }
 0x2cf   : > { %4425 = vmatmul.mubr.bf16.gmra.mrb[148].mxu0 %v6367_v48 }
 0x2d0   : > { %4432 = vmatprep.mubr.bf16.mxu0 %v6370_v8 }
 0x2d2   : > { %3039 = vmatmul.mubr.bf16.gmra.mrb[136].mxu1 %v6229_v5 }
 0x2d3   : > { %3046 = vmatprep.mubr.bf16.mxu1 %v9862_v39 }
 0x2d7   : > { %4433 = vmatmul.mubr.bf16.gmra.mrb[152].mxu0 %v6369_v32 }
 0x2da   : > { %3047 = vmatmul.mubr.bf16.gmra.mrb[140].mxu1 %v9863_v25 }
 0x2db   : > { %3054 = vmatprep.mubr.bf16.mxu1 %v6234_v58 }
 0x2e2   : > { %3055 = vmatmul.mubr.bf16.gmra.mrb[144].mxu1 %v6233_v26 }
 0x2e3   : > { %3062 = vmatprep.mubr.bf16.mxu1 %v6236_v51 }
 0x2ea   : > { %3063 = vmatmul.mubr.bf16.gmra.mrb[148].mxu1 %v6235_v37  ;;  %v4242_v33 = vpop.f32.mrb[56].mxu0 }
 0x2eb   : > { %3070 = vmatprep.mubr.bf16.mxu1 %v6238_v16  ;;  %v4244_v24 = vpop.f32.mrb[57].mxu0 }
 0x2ec   : > { %v4245_v45 = vpop.f32.mrb[58].mxu0 }
 0x2ed   : > { %v4247_v0 = vpop.f32.mrb[59].mxu0 }
 0x2f2   : > { %3071 = vmatmul.mubr.bf16.gmra.mrb[152].mxu1 %v6237_v57  ;;  %v4250_v28 = vpop.f32.mrb[60].mxu0 }
 0x2f3   : > { %v4252_v61 = vpop.f32.mrb[61].mxu0 }
 0x2f4   : > { %v4253_v23 = vpop.f32.mrb[62].mxu0 }
 0x2f5   : > { %v4255_v17 = vpop.f32.mrb[63].mxu0 }
 0x2fa   : > { %v4258_v40 = vpop.f32.mrb[64].mxu0 }
 0x2fb   : > { %v4260_v30 = vpop.f32.mrb[65].mxu0 }
 0x2fc   : > { %v4261_v31 = vpop.f32.mrb[66].mxu0 }
 0x2fd   : > { %v4263_v47 = vpop.f32.mrb[67].mxu0 }
 0x302   : > { %v4266_v14 = vpop.f32.mrb[68].mxu0 }
 0x303   : > { %v4268_v18 = vpop.f32.mrb[69].mxu0 }
 0x304   : > { %v4269_v22 = vpop.f32.mrb[70].mxu0 }
 0x305   : > { %v2880_v63 = vpop.f32.mrb[56].mxu1  ;;  %v4271_v52 = vpop.f32.mrb[71].mxu0 }
 0x306   : > { %v6809_v50 = vadd.f32 %v4242_v33, %v2880_v63  ;;  %v2882_v12 = vpop.f32.mrb[57].mxu1 }
 0x307   : > { %v2883_v46 = vpop.f32.mrb[58].mxu1 }
 0x308   : > { %v6810_v62 = vadd.f32 %v4245_v45, %v2883_v46  ;;  %v2885_v6 = vpop.f32.mrb[59].mxu1  ;;  %v4543_v53 = vmul.f32 %v6809_v50, %v6809_v50 }
 0x30a   : > { %v4489_v34 = vadd.f32 %v6810_v62, %v6809_v50  ;;  %v4544_v21 = vmul.f32 %v6810_v62, %v6810_v62  ;;  %v6550_v27 = vpack.c.bf16 %v6810_v62, %v6809_v50  ;;  %v4274_v2 = vpop.f32.mrb[72].mxu0 }
 0x30b   : > { %v4276_v7 = vpop.f32.mrb[73].mxu0 }
 0x30c   : > { %v4592_v60 = vadd.f32 %v4544_v21, %v4543_v53  ;;  %6551 = vst [vmem:[#allocation4] sm:$0xff] %v6550_v27   ;;  %v4277_v20 = vpop.f32.mrb[74].mxu0 }
 0x30d   : > { %v2888_v42 = vpop.f32.mrb[60].mxu1  ;;  %v4279_v3 = vpop.f32.mrb[75].mxu0 }
 0x30e   : > { %v6811_v29 = vadd.f32 %v4250_v28, %v2888_v42  ;;  %v2890_v43 = vpop.f32.mrb[61].mxu1 }
 0x30f   : > { %v2891_v38 = vpop.f32.mrb[62].mxu1 }
 0x310   : > { %v4490_v9 = vadd.f32 %v6811_v29, %v4489_v34  ;;  %v4545_v35 = vmul.f32 %v6811_v29, %v6811_v29  ;;  %v6812_v44 = vadd.f32 %v4253_v23, %v2891_v38  ;;  %v2893_v59 = vpop.f32.mrb[63].mxu1 }
 0x312   : > { %v4593_v55 = vadd.f32 %v4592_v60, %v4545_v35  ;;  %v4491_v54 = vadd.f32 %v6812_v44, %v4490_v9  ;;  %v4546_v11 = vmul.f32 %v6812_v44, %v6812_v44  ;;  %v6555_v19 = vpack.c.bf16 %v6812_v44, %v6811_v29  ;;  %v4282_v4 = vpop.f32.mrb[76].mxu0 }
 0x313   : > { %v4284_v49 = vpop.f32.mrb[77].mxu0 }
 0x314   : > { %v4594_v41 = vadd.f32 %v4593_v55, %v4546_v11  ;;  %6763 = vst [vmem:[#allocation4 + $0x8] sm:$0xff] %v6555_v19   ;;  %v4285_v13 = vpop.f32.mrb[78].mxu0 }
 0x315   : > { %v2896_v15 = vpop.f32.mrb[64].mxu1  ;;  %v4287_v5 = vpop.f32.mrb[79].mxu0 }
 0x316   : > { %v6813_v48 = vadd.f32 %v4258_v40, %v2896_v15  ;;  %v2898_v8 = vpop.f32.mrb[65].mxu1 }
 0x317   : > { %v2899_v36 = vpop.f32.mrb[66].mxu1 }
 0x318   : > { %v4492_v56 = vadd.f32 %v6813_v48, %v4491_v54  ;;  %v4547_v39 = vmul.f32 %v6813_v48, %v6813_v48  ;;  %v6814_v32 = vadd.f32 %v4261_v31, %v2899_v36  ;;  %v2901_v58 = vpop.f32.mrb[67].mxu1 }
 0x31a   : > { %v4595_v25 = vadd.f32 %v4594_v41, %v4547_v39  ;;  %v4493_v1 = vadd.f32 %v6814_v32, %v4492_v56  ;;  %v4548_v26 = vmul.f32 %v6814_v32, %v6814_v32  ;;  %v6560_v51 = vpack.c.bf16 %v6814_v32, %v6813_v48  ;;  %v4290_v10 = vpop.f32.mrb[80].mxu0 }
 0x31b   : > { %v4292_v16 = vpop.f32.mrb[81].mxu0 }
 0x31c   : > { %v4596_v37 = vadd.f32 %v4595_v25, %v4548_v26  ;;  %6764 = vst [vmem:[#allocation4 + $0x10] sm:$0xff] %v6560_v51   ;;  %v4293_v24 = vpop.f32.mrb[82].mxu0 }
 0x31d   : > { %v2904_v33 = vpop.f32.mrb[68].mxu1  ;;  %v4295_v57 = vpop.f32.mrb[83].mxu0 }
 0x31e   : > { %v6815_v45 = vadd.f32 %v4266_v14, %v2904_v33  ;;  %v2906_v0 = vpop.f32.mrb[69].mxu1 }
 0x31f   : > { %v2907_v28 = vpop.f32.mrb[70].mxu1 }
 0x320   : > { %v4494_v61 = vadd.f32 %v6815_v45, %v4493_v1  ;;  %v4549_v23 = vmul.f32 %v6815_v45, %v6815_v45  ;;  %v6816_v17 = vadd.f32 %v4269_v22, %v2907_v28  ;;  %v2909_v40 = vpop.f32.mrb[71].mxu1 }
 0x322   : > { %v4597_v30 = vadd.f32 %v4596_v37, %v4549_v23  ;;  %v4495_v31 = vadd.f32 %v6816_v17, %v4494_v61  ;;  %v4550_v47 = vmul.f32 %v6816_v17, %v6816_v17  ;;  %v6565_v18 = vpack.c.bf16 %v6816_v17, %v6815_v45  ;;  %v4298_v63 = vpop.f32.mrb[84].mxu0 }
 0x323   : > { %v4300_v12 = vpop.f32.mrb[85].mxu0 }
 0x324   : > { %v4598_v50 = vadd.f32 %v4597_v30, %v4550_v47  ;;  %6765 = vst [vmem:[#allocation4 + $0x18] sm:$0xff] %v6565_v18   ;;  %v4301_v46 = vpop.f32.mrb[86].mxu0 }
 0x325   : > { %v2912_v52 = vpop.f32.mrb[72].mxu1  ;;  %v4303_v14 = vpop.f32.mrb[87].mxu0 }
 0x326   : > { %v6817_v62 = vadd.f32 %v4274_v2, %v2912_v52  ;;  %v2914_v6 = vpop.f32.mrb[73].mxu1 }
 0x327   : > { %v2915_v53 = vpop.f32.mrb[74].mxu1 }
 0x328   : > { %v4496_v34 = vadd.f32 %v6817_v62, %v4495_v31  ;;  %v4551_v21 = vmul.f32 %v6817_v62, %v6817_v62  ;;  %v6818_v27 = vadd.f32 %v4277_v20, %v2915_v53  ;;  %v2917_v60 = vpop.f32.mrb[75].mxu1 }
 0x32a   : > { %v4599_v22 = vadd.f32 %v4598_v50, %v4551_v21  ;;  %v4497_v7 = vadd.f32 %v6818_v27, %v4496_v34  ;;  %v4552_v42 = vmul.f32 %v6818_v27, %v6818_v27  ;;  %v6570_v29 = vpack.c.bf16 %v6818_v27, %v6817_v62  ;;  %v4306_v43 = vpop.f32.mrb[88].mxu0 }
 0x32b   : > { %v4308_v38 = vpop.f32.mrb[89].mxu0  ;;  %v7332_v27 = vmov 0.0  }
 0x32c   : > { %v4600_v3 = vadd.f32 %v4599_v22, %v4552_v42  ;;  %6766 = vst [vmem:[#allocation4 + $0x20] sm:$0xff] %v6570_v29   ;;  %v8490_v35 = vpop.f32.mrb[90].mxu0  ;;  %287 = vst [vmem:[#allocation5] sm:$0x3] %v7332_v27 }
 0x32d   : > { %v2920_v9 = vpop.f32.mrb[76].mxu1  ;;  %v4311_v59 = vpop.f32.mrb[91].mxu0 }
 0x32e   : > { %v6819_v44 = vadd.f32 %v4282_v4, %v2920_v9  ;;  %v2922_v2 = vpop.f32.mrb[77].mxu1 }
 0x32f   : > { %v2923_v55 = vpop.f32.mrb[78].mxu1 }
 0x330   : > { %v4498_v54 = vadd.f32 %v6819_v44, %v4497_v7  ;;  %v4553_v11 = vmul.f32 %v6819_v44, %v6819_v44  ;;  %v6820_v19 = vadd.f32 %v4285_v13, %v2923_v55  ;;  %v2925_v20 = vpop.f32.mrb[79].mxu1 }
 0x332   : > { %v4601_v41 = vadd.f32 %v4600_v3, %v4553_v11  ;;  %v4499_v49 = vadd.f32 %v6820_v19, %v4498_v54  ;;  %v4554_v15 = vmul.f32 %v6820_v19, %v6820_v19  ;;  %v6575_v48 = vpack.c.bf16 %v6820_v19, %v6819_v44  ;;  %v4314_v8 = vpop.f32.mrb[92].mxu0 }
 0x333   : > { %v4316_v36 = vpop.f32.mrb[93].mxu0 }
 0x334   : > { %v4602_v5 = vadd.f32 %v4601_v41, %v4554_v15  ;;  %6767 = vst [vmem:[#allocation4 + $0x28] sm:$0xff] %v6575_v48   ;;  %v8492_v39 = vpop.f32.mrb[94].mxu0 }
 0x335   : > { %v2928_v56 = vpop.f32.mrb[80].mxu1  ;;  %v4319_v58 = vpop.f32.mrb[95].mxu0 }
 0x336   : > { %v6821_v32 = vadd.f32 %v4290_v10, %v2928_v56  ;;  %v2930_v4 = vpop.f32.mrb[81].mxu1 }
 0x337   : > { %v2931_v25 = vpop.f32.mrb[82].mxu1 }
 0x338   : > { %v4500_v1 = vadd.f32 %v6821_v32, %v4499_v49  ;;  %v4555_v26 = vmul.f32 %v6821_v32, %v6821_v32  ;;  %v6822_v51 = vadd.f32 %v4293_v24, %v2931_v25  ;;  %v2933_v13 = vpop.f32.mrb[83].mxu1 }
 0x33a   : > { %v4603_v37 = vadd.f32 %v4602_v5, %v4555_v26  ;;  %v4501_v16 = vadd.f32 %v6822_v51, %v4500_v1  ;;  %v4556_v33 = vmul.f32 %v6822_v51, %v6822_v51  ;;  %v6580_v45 = vpack.c.bf16 %v6822_v51, %v6821_v32  ;;  %v4322_v0 = vpop.f32.mrb[96].mxu0 }
 0x33b   : > { %v4324_v28 = vpop.f32.mrb[97].mxu0 }
 0x33c   : > { %v4604_v57 = vadd.f32 %v4603_v37, %v4556_v33  ;;  %6768 = vst [vmem:[#allocation4 + $0x30] sm:$0xff] %v6580_v45   ;;  %v8494_v23 = vpop.f32.mrb[98].mxu0 }
 0x33d   : > { %v2936_v61 = vpop.f32.mrb[84].mxu1  ;;  %v4327_v40 = vpop.f32.mrb[99].mxu0 }
 0x33e   : > { %v6823_v17 = vadd.f32 %v4298_v63, %v2936_v61  ;;  %v2938_v10 = vpop.f32.mrb[85].mxu1 }
 0x33f   : > { %v2939_v30 = vpop.f32.mrb[86].mxu1 }
 0x340   : > { %v4502_v31 = vadd.f32 %v6823_v17, %v4501_v16  ;;  %v4557_v47 = vmul.f32 %v6823_v17, %v6823_v17  ;;  %v6824_v18 = vadd.f32 %v4301_v46, %v2939_v30  ;;  %v2941_v24 = vpop.f32.mrb[87].mxu1 }
 0x342   : > { %v4605_v50 = vadd.f32 %v4604_v57, %v4557_v47  ;;  %v4503_v12 = vadd.f32 %v6824_v18, %v4502_v31  ;;  %v4558_v52 = vmul.f32 %v6824_v18, %v6824_v18  ;;  %v6585_v62 = vpack.c.bf16 %v6824_v18, %v6823_v17  ;;  %v4330_v6 = vpop.f32.mrb[100].mxu0 }
 0x343   : > { %v4332_v53 = vpop.f32.mrb[101].mxu0 }
 0x344   : > { %v4606_v14 = vadd.f32 %v4605_v50, %v4558_v52  ;;  %6769 = vst [vmem:[#allocation4 + $0x38] sm:$0xff] %v6585_v62   ;;  %v8496_v21 = vpop.f32.mrb[102].mxu0 }
 0x345   : > { %v2944_v34 = vpop.f32.mrb[88].mxu1  ;;  %v4335_v22 = vpop.f32.mrb[103].mxu0 }
 0x346   : > { %v6825_v63 = vadd.f32 %v4306_v43, %v2944_v34  ;;  %v2946_v60 = vpop.f32.mrb[89].mxu1 }
 0x347   : > { %v2947_v7 = vpop.f32.mrb[90].mxu1 }
 0x348   : > { %v4504_v42 = vadd.f32 %v6825_v63, %v4503_v12  ;;  %v4559_v46 = vmul.f32 %v6825_v63, %v6825_v63  ;;  %v6826_v29 = vadd.f32 %v8490_v35, %v2947_v7  ;;  %v2949_v3 = vpop.f32.mrb[91].mxu1 }
 0x34a   : > { %v4607_v38 = vadd.f32 %v4606_v14, %v4559_v46  ;;  %v4505_v9 = vadd.f32 %v6826_v29, %v4504_v42  ;;  %v4560_v44 = vmul.f32 %v6826_v29, %v6826_v29  ;;  %v6590_v2 = vpack.c.bf16 %v6826_v29, %v6825_v63  ;;  %v4338_v59 = vpop.f32.mrb[104].mxu0 }
 0x34b   : > { %v4340_v54 = vpop.f32.mrb[105].mxu0 }
 0x34c   : > { %v4608_v55 = vadd.f32 %v4607_v38, %v4560_v44  ;;  %6770 = vst [vmem:[#allocation4 + $0x40] sm:$0xff] %v6590_v2   ;;  %v4341_v19 = vpop.f32.mrb[106].mxu0 }
 0x34d   : > { %v2952_v11 = vpop.f32.mrb[92].mxu1  ;;  %v4343_v41 = vpop.f32.mrb[107].mxu0 }
 0x34e   : > { %v6827_v20 = vadd.f32 %v4314_v8, %v2952_v11  ;;  %v2954_v43 = vpop.f32.mrb[93].mxu1 }
 0x34f   : > { %v2955_v49 = vpop.f32.mrb[94].mxu1 }
 0x350   : > { %v4506_v15 = vadd.f32 %v6827_v20, %v4505_v9  ;;  %v4561_v48 = vmul.f32 %v6827_v20, %v6827_v20  ;;  %v6828_v5 = vadd.f32 %v8492_v39, %v2955_v49  ;;  %v2957_v35 = vpop.f32.mrb[95].mxu1 }
 0x352   : > { %v4609_v36 = vadd.f32 %v4608_v55, %v4561_v48  ;;  %v4507_v56 = vadd.f32 %v6828_v5, %v4506_v15  ;;  %v4562_v32 = vmul.f32 %v6828_v5, %v6828_v5  ;;  %v6595_v4 = vpack.c.bf16 %v6828_v5, %v6827_v20  ;;  %v4346_v58 = vpop.f32.mrb[108].mxu0 }
 0x353   : > { %v4348_v1 = vpop.f32.mrb[109].mxu0 }
 0x354   : > { %v4610_v25 = vadd.f32 %v4609_v36, %v4562_v32  ;;  %6771 = vst [vmem:[#allocation4 + $0x48] sm:$0xff] %v6595_v4   ;;  %v4349_v51 = vpop.f32.mrb[110].mxu0 }
 0x355   : > { %v2960_v26 = vpop.f32.mrb[96].mxu1  ;;  %v4351_v37 = vpop.f32.mrb[111].mxu0 }
 0x356   : > { %v6829_v13 = vadd.f32 %v4322_v0, %v2960_v26  ;;  %v2962_v8 = vpop.f32.mrb[97].mxu1 }
 0x357   : > { %v2963_v16 = vpop.f32.mrb[98].mxu1 }
 0x358   : > { %v4508_v33 = vadd.f32 %v6829_v13, %v4507_v56  ;;  %v4563_v45 = vmul.f32 %v6829_v13, %v6829_v13  ;;  %v6830_v57 = vadd.f32 %v8494_v23, %v2963_v16  ;;  %v2965_v39 = vpop.f32.mrb[99].mxu1 }
 0x35a   : > { %v4611_v28 = vadd.f32 %v4610_v25, %v4563_v45  ;;  %v4509_v61 = vadd.f32 %v6830_v57, %v4508_v33  ;;  %v4564_v17 = vmul.f32 %v6830_v57, %v6830_v57  ;;  %v6600_v10 = vpack.c.bf16 %v6830_v57, %v6829_v13  ;;  %v4354_v40 = vpop.f32.mrb[112].mxu0 }
 0x35b   : > { %v4356_v31 = vpop.f32.mrb[113].mxu0 }
 0x35c   : > { %v4612_v30 = vadd.f32 %v4611_v28, %v4564_v17  ;;  %6772 = vst [vmem:[#allocation4 + $0x50] sm:$0xff] %v6600_v10   ;;  %v4357_v18 = vpop.f32.mrb[114].mxu0 }
 0x35d   : > { %v2968_v47 = vpop.f32.mrb[100].mxu1  ;;  %v4359_v50 = vpop.f32.mrb[115].mxu0 }
 0x35e   : > { %v6831_v24 = vadd.f32 %v4330_v6, %v2968_v47  ;;  %v2970_v0 = vpop.f32.mrb[101].mxu1 }
 0x35f   : > { %v2971_v12 = vpop.f32.mrb[102].mxu1 }
 0x360   : > { %v4510_v52 = vadd.f32 %v6831_v24, %v4509_v61  ;;  %v4565_v62 = vmul.f32 %v6831_v24, %v6831_v24  ;;  %v6832_v14 = vadd.f32 %v8496_v21, %v2971_v12  ;;  %v2973_v23 = vpop.f32.mrb[103].mxu1 }
 0x362   : > { %v4613_v53 = vadd.f32 %v4612_v30, %v4565_v62  ;;  %v4511_v34 = vadd.f32 %v6832_v14, %v4510_v52  ;;  %v4566_v27 = vmul.f32 %v6832_v14, %v6832_v14  ;;  %v6605_v63 = vpack.c.bf16 %v6832_v14, %v6831_v24  ;;  %v4362_v60 = vpop.f32.mrb[116].mxu0 }
 0x363   : > { %v4364_v7 = vpop.f32.mrb[117].mxu0 }
 0x364   : > { %v4614_v22 = vadd.f32 %v4613_v53, %v4566_v27  ;;  %6773 = vst [vmem:[#allocation4 + $0x58] sm:$0xff] %v6605_v63   ;;  %v4365_v46 = vpop.f32.mrb[118].mxu0 }
 0x365   : > { %v2976_v42 = vpop.f32.mrb[104].mxu1  ;;  %v4367_v3 = vpop.f32.mrb[119].mxu0 }
 0x366   : > { %v6833_v29 = vadd.f32 %v4338_v59, %v2976_v42  ;;  %v2978_v6 = vpop.f32.mrb[105].mxu1 }
 0x367   : > { %v2979_v38 = vpop.f32.mrb[106].mxu1 }
 0x368   : > { %v4512_v9 = vadd.f32 %v6833_v29, %v4511_v34  ;;  %v4567_v44 = vmul.f32 %v6833_v29, %v6833_v29  ;;  %v6834_v2 = vadd.f32 %v4341_v19, %v2979_v38  ;;  %v2981_v55 = vpop.f32.mrb[107].mxu1 }
 0x36a   : > { %v4615_v21 = vadd.f32 %v4614_v22, %v4567_v44  ;;  %v4513_v54 = vadd.f32 %v6834_v2, %v4512_v9  ;;  %v4568_v11 = vmul.f32 %v6834_v2, %v6834_v2  ;;  %v6610_v20 = vpack.c.bf16 %v6834_v2, %v6833_v29  ;;  %v4370_v43 = vpop.f32.mrb[120].mxu0 }
 0x36b   : > { %v4372_v49 = vpop.f32.mrb[121].mxu0 }
 0x36c   : > { %v4616_v41 = vadd.f32 %v4615_v21, %v4568_v11  ;;  %6774 = vst [vmem:[#allocation4 + $0x60] sm:$0xff] %v6610_v20   ;;  %v4373_v48 = vpop.f32.mrb[122].mxu0 }
 0x36d   : > { %v2984_v15 = vpop.f32.mrb[108].mxu1  ;;  %v4375_v59 = vpop.f32.mrb[123].mxu0 }
 0x36e   : > { %v6835_v5 = vadd.f32 %v4346_v58, %v2984_v15  ;;  %v2986_v35 = vpop.f32.mrb[109].mxu1 }
 0x36f   : > { %v2987_v36 = vpop.f32.mrb[110].mxu1 }
 0x370   : > { %v4514_v56 = vadd.f32 %v6835_v5, %v4513_v54  ;;  %v4569_v32 = vmul.f32 %v6835_v5, %v6835_v5  ;;  %v6836_v4 = vadd.f32 %v4349_v51, %v2987_v36  ;;  %v2989_v25 = vpop.f32.mrb[111].mxu1 }
 0x372   : > { %v4617_v19 = vadd.f32 %v4616_v41, %v4569_v32  ;;  %v4515_v1 = vadd.f32 %v6836_v4, %v4514_v56  ;;  %v4570_v26 = vmul.f32 %v6836_v4, %v6836_v4  ;;  %v6615_v13 = vpack.c.bf16 %v6836_v4, %v6835_v5  ;;  %v4378_v8 = vpop.f32.mrb[124].mxu0 }
 0x373   : > { %v4380_v16 = vpop.f32.mrb[125].mxu0 }
 0x374   : > { %v4618_v37 = vadd.f32 %v4617_v19, %v4570_v26  ;;  %6775 = vst [vmem:[#allocation4 + $0x68] sm:$0xff] %v6615_v13   ;;  %v4381_v45 = vpop.f32.mrb[126].mxu0 }
 0x375   : > { %v2992_v33 = vpop.f32.mrb[112].mxu1  ;;  %v4383_v58 = vpop.f32.mrb[127].mxu0 }
 0x376   : > { %v6837_v57 = vadd.f32 %v4354_v40, %v2992_v33  ;;  %v2994_v39 = vpop.f32.mrb[113].mxu1 }
 0x377   : > { %v2995_v28 = vpop.f32.mrb[114].mxu1 }
 0x378   : > { %v4516_v61 = vadd.f32 %v6837_v57, %v4515_v1  ;;  %v4571_v17 = vmul.f32 %v6837_v57, %v6837_v57  ;;  %v6838_v10 = vadd.f32 %v4357_v18, %v2995_v28  ;;  %v2997_v30 = vpop.f32.mrb[115].mxu1 }
 0x37a   : > { %v4619_v51 = vadd.f32 %v4618_v37, %v4571_v17  ;;  %v4517_v31 = vadd.f32 %v6838_v10, %v4516_v61  ;;  %v4572_v47 = vmul.f32 %v6838_v10, %v6838_v10  ;;  %v6620_v24 = vpack.c.bf16 %v6838_v10, %v6837_v57  ;;  %v4386_v0 = vpop.f32.mrb[128].mxu0 }
 0x37b   : > { %v4388_v12 = vpop.f32.mrb[129].mxu0 }
 0x37c   : > { %v4620_v50 = vadd.f32 %v4619_v51, %v4572_v47  ;;  %6776 = vst [vmem:[#allocation4 + $0x70] sm:$0xff] %v6620_v24   ;;  %v4389_v62 = vpop.f32.mrb[130].mxu0 }
 0x37d   : > { %v3000_v52 = vpop.f32.mrb[116].mxu1  ;;  %v4391_v40 = vpop.f32.mrb[131].mxu0 }
 0x37e   : > { %v6839_v14 = vadd.f32 %v4362_v60, %v3000_v52  ;;  %v3002_v23 = vpop.f32.mrb[117].mxu1 }
 0x37f   : > { %v3003_v53 = vpop.f32.mrb[118].mxu1 }
 0x380   : > { %v4518_v34 = vadd.f32 %v6839_v14, %v4517_v31  ;;  %v4573_v27 = vmul.f32 %v6839_v14, %v6839_v14  ;;  %v6840_v63 = vadd.f32 %v4365_v46, %v3003_v53  ;;  %v3005_v22 = vpop.f32.mrb[119].mxu1 }
 0x382   : > { %v4621_v18 = vadd.f32 %v4620_v50, %v4573_v27  ;;  %v4519_v7 = vadd.f32 %v6840_v63, %v4518_v34  ;;  %v4574_v42 = vmul.f32 %v6840_v63, %v6840_v63  ;;  %v6625_v29 = vpack.c.bf16 %v6840_v63, %v6839_v14  ;;  %v4394_v6 = vpop.f32.mrb[132].mxu0 }
 0x383   : > { %v4396_v38 = vpop.f32.mrb[133].mxu0 }
 0x384   : > { %v4622_v3 = vadd.f32 %v4621_v18, %v4574_v42  ;;  %6777 = vst [vmem:[#allocation4 + $0x78] sm:$0xff] %v6625_v29   ;;  %v4397_v44 = vpop.f32.mrb[134].mxu0 }
 0x385   : > { %v3008_v9 = vpop.f32.mrb[120].mxu1  ;;  %v4399_v60 = vpop.f32.mrb[135].mxu0 }
 0x386   : > { %v6841_v2 = vadd.f32 %v4370_v43, %v3008_v9  ;;  %v3010_v55 = vpop.f32.mrb[121].mxu1 }
 0x387   : > { %v3011_v21 = vpop.f32.mrb[122].mxu1 }
 0x388   : > { %v4520_v54 = vadd.f32 %v6841_v2, %v4519_v7  ;;  %v4575_v11 = vmul.f32 %v6841_v2, %v6841_v2  ;;  %v6842_v20 = vadd.f32 %v4373_v48, %v3011_v21  ;;  %v3013_v41 = vpop.f32.mrb[123].mxu1 }
 0x38a   : > { %v4623_v46 = vadd.f32 %v4622_v3, %v4575_v11  ;;  %v4521_v49 = vadd.f32 %v6842_v20, %v4520_v54  ;;  %v4576_v15 = vmul.f32 %v6842_v20, %v6842_v20  ;;  %v6630_v5 = vpack.c.bf16 %v6842_v20, %v6841_v2  ;;  %v4402_v35 = vpop.f32.mrb[136].mxu0 }
 0x38b   : > { %v4404_v36 = vpop.f32.mrb[137].mxu0 }
 0x38c   : > { %v4624_v59 = vadd.f32 %v4623_v46, %v4576_v15  ;;  %6778 = vst [vmem:[#allocation4 + $0x80] sm:$0xff] %v6630_v5   ;;  %v4405_v32 = vpop.f32.mrb[138].mxu0 }
 0x38d   : > { %v3016_v56 = vpop.f32.mrb[124].mxu1  ;;  %v4407_v43 = vpop.f32.mrb[139].mxu0 }
 0x38e   : > { %v6843_v4 = vadd.f32 %v4378_v8, %v3016_v56  ;;  %v3018_v25 = vpop.f32.mrb[125].mxu1 }
 0x38f   : > { %v3019_v19 = vpop.f32.mrb[126].mxu1 }
 0x390   : > { %v4522_v1 = vadd.f32 %v6843_v4, %v4521_v49  ;;  %v4577_v26 = vmul.f32 %v6843_v4, %v6843_v4  ;;  %v6844_v13 = vadd.f32 %v4381_v45, %v3019_v19  ;;  %v3021_v37 = vpop.f32.mrb[127].mxu1 }
 0x392   : > { %v4625_v48 = vadd.f32 %v4624_v59, %v4577_v26  ;;  %v4523_v16 = vadd.f32 %v6844_v13, %v4522_v1  ;;  %v4578_v33 = vmul.f32 %v6844_v13, %v6844_v13  ;;  %v6635_v57 = vpack.c.bf16 %v6844_v13, %v6843_v4  ;;  %v4410_v39 = vpop.f32.mrb[140].mxu0 }
 0x393   : > { %v4412_v28 = vpop.f32.mrb[141].mxu0 }
 0x394   : > { %v4626_v58 = vadd.f32 %v4625_v48, %v4578_v33  ;;  %6779 = vst [vmem:[#allocation4 + $0x88] sm:$0xff] %v6635_v57   ;;  %v4413_v17 = vpop.f32.mrb[142].mxu0 }
 0x395   : > { %v3024_v61 = vpop.f32.mrb[128].mxu1  ;;  %v4415_v8 = vpop.f32.mrb[143].mxu0 }
 0x396   : > { %v6845_v10 = vadd.f32 %v4386_v0, %v3024_v61  ;;  %v3026_v30 = vpop.f32.mrb[129].mxu1 }
 0x397   : > { %v3027_v51 = vpop.f32.mrb[130].mxu1 }
 0x398   : > { %v4524_v31 = vadd.f32 %v6845_v10, %v4523_v16  ;;  %v4579_v47 = vmul.f32 %v6845_v10, %v6845_v10  ;;  %v6846_v24 = vadd.f32 %v4389_v62, %v3027_v51  ;;  %v3029_v50 = vpop.f32.mrb[131].mxu1 }
 0x39a   : > { %v4627_v45 = vadd.f32 %v4626_v58, %v4579_v47  ;;  %v4525_v12 = vadd.f32 %v6846_v24, %v4524_v31  ;;  %v4580_v52 = vmul.f32 %v6846_v24, %v6846_v24  ;;  %v6640_v14 = vpack.c.bf16 %v6846_v24, %v6845_v10  ;;  %v4418_v23 = vpop.f32.mrb[144].mxu0 }
 0x39b   : > { %v4420_v53 = vpop.f32.mrb[145].mxu0 }
 0x39c   : > { %v4628_v40 = vadd.f32 %v4627_v45, %v4580_v52  ;;  %6780 = vst [vmem:[#allocation4 + $0x90] sm:$0xff] %v6640_v14   ;;  %v4421_v27 = vpop.f32.mrb[146].mxu0 }
 0x39d   : > { %v3032_v34 = vpop.f32.mrb[132].mxu1  ;;  %v4423_v0 = vpop.f32.mrb[147].mxu0 }
 0x39e   : > { %v6847_v63 = vadd.f32 %v4394_v6, %v3032_v34  ;;  %v3034_v22 = vpop.f32.mrb[133].mxu1 }
 0x39f   : > { %v3035_v18 = vpop.f32.mrb[134].mxu1 }
 0x3a0   : > { %v4526_v7 = vadd.f32 %v6847_v63, %v4525_v12  ;;  %v4581_v42 = vmul.f32 %v6847_v63, %v6847_v63  ;;  %v6848_v29 = vadd.f32 %v4397_v44, %v3035_v18  ;;  %v3037_v3 = vpop.f32.mrb[135].mxu1 }
 0x3a2   : > { %v4629_v62 = vadd.f32 %v4628_v40, %v4581_v42  ;;  %v4527_v38 = vadd.f32 %v6848_v29, %v4526_v7  ;;  %v4582_v9 = vmul.f32 %v6848_v29, %v6848_v29  ;;  %v6645_v2 = vpack.c.bf16 %v6848_v29, %v6847_v63  ;;  %v4426_v55 = vpop.f32.mrb[148].mxu0 }
 0x3a3   : > { %v4428_v21 = vpop.f32.mrb[149].mxu0 }
 0x3a4   : > { %v4630_v60 = vadd.f32 %v4629_v62, %v4582_v9  ;;  %6781 = vst [vmem:[#allocation4 + $0x98] sm:$0xff] %v6645_v2   ;;  %v4429_v11 = vpop.f32.mrb[150].mxu0 }
 0x3a5   : > { %v3040_v54 = vpop.f32.mrb[136].mxu1  ;;  %v4431_v6 = vpop.f32.mrb[151].mxu0 }
 0x3a6   : > { %v6849_v20 = vadd.f32 %v4402_v35, %v3040_v54  ;;  %v3042_v41 = vpop.f32.mrb[137].mxu1 }
 0x3a7   : > { %v3043_v46 = vpop.f32.mrb[138].mxu1 }
 0x3a8   : > { %v4528_v49 = vadd.f32 %v6849_v20, %v4527_v38  ;;  %v4583_v15 = vmul.f32 %v6849_v20, %v6849_v20  ;;  %v6850_v5 = vadd.f32 %v4405_v32, %v3043_v46  ;;  %v3045_v59 = vpop.f32.mrb[139].mxu1 }
 0x3aa   : > { %v4631_v44 = vadd.f32 %v4630_v60, %v4583_v15  ;;  %v4529_v36 = vadd.f32 %v6850_v5, %v4528_v49  ;;  %v4584_v56 = vmul.f32 %v6850_v5, %v6850_v5  ;;  %v6650_v4 = vpack.c.bf16 %v6850_v5, %v6849_v20  ;;  %v4434_v25 = vpop.f32.mrb[152].mxu0 }
 0x3ab   : > { %v4436_v19 = vpop.f32.mrb[153].mxu0 }
 0x3ac   : > { %v4632_v43 = vadd.f32 %v4631_v44, %v4584_v56  ;;  %6782 = vst [vmem:[#allocation4 + $0xa0] sm:$0xff] %v6650_v4   ;;  %v4437_v26 = vpop.f32.mrb[154].mxu0 }
 0x3ad   : > { %v3048_v1 = vpop.f32.mrb[140].mxu1  ;;  %v4438_v35 = vpop.f32.mrb[155].mxu0 }
 0x3ae   : > { %v6851_v13 = vadd.f32 %v4410_v39, %v3048_v1  ;;  %v3050_v37 = vpop.f32.mrb[141].mxu1 }
 0x3af   : > { %v3051_v48 = vpop.f32.mrb[142].mxu1 }
 0x3b0   : > { %v4530_v16 = vadd.f32 %v6851_v13, %v4529_v36  ;;  %v4585_v33 = vmul.f32 %v6851_v13, %v6851_v13  ;;  %v6852_v57 = vadd.f32 %v4413_v17, %v3051_v48  ;;  %v3053_v58 = vpop.f32.mrb[143].mxu1 }
 0x3b2   : > { %v4633_v32 = vadd.f32 %v4632_v43, %v4585_v33  ;;  %v4531_v28 = vadd.f32 %v6852_v57, %v4530_v16  ;;  %v4586_v61 = vmul.f32 %v6852_v57, %v6852_v57  ;;  %v6655_v10 = vpack.c.bf16 %v6852_v57, %v6851_v13  ;;  %v4646_v43 = vld [vmem:[#allocation5] sm:$0x3] }
 0x3b4   : > { %v4634_v30 = vadd.f32 %v4633_v32, %v4586_v61  ;;  %6783 = vst [vmem:[#allocation4 + $0xa8] sm:$0xff] %v6655_v10  }
 0x3b5   : > { %v3056_v8 = vpop.f32.mrb[144].mxu1 }
 0x3b6   : > { %v6853_v51 = vadd.f32 %v4418_v23, %v3056_v8  ;;  %v3058_v31 = vpop.f32.mrb[145].mxu1 }
 0x3b7   : > { %v3059_v47 = vpop.f32.mrb[146].mxu1 }
 0x3b8   : > { %v4532_v24 = vadd.f32 %v6853_v51, %v4531_v28  ;;  %v4587_v50 = vmul.f32 %v6853_v51, %v6853_v51  ;;  %v6854_v39 = vadd.f32 %v4421_v27, %v3059_v47  ;;  %v3061_v45 = vpop.f32.mrb[147].mxu1 }
 0x3ba   : > { %v4635_v12 = vadd.f32 %v4634_v30, %v4587_v50  ;;  %v4533_v52 = vadd.f32 %v6854_v39, %v4532_v24  ;;  %v4588_v14 = vmul.f32 %v6854_v39, %v6854_v39  ;;  %v6660_v40 = vpack.c.bf16 %v6854_v39, %v6853_v51 }
 0x3bc   : > { %v4636_v17 = vadd.f32 %v4635_v12, %v4588_v14  ;;  %6784 = vst [vmem:[#allocation4 + $0xb0] sm:$0xff] %v6660_v40  }
 0x3bd   : > { %v3064_v53 = vpop.f32.mrb[148].mxu1 }
 0x3be   : > { %v6855_v34 = vadd.f32 %v4426_v55, %v3064_v53  ;;  %v3066_v63 = vpop.f32.mrb[149].mxu1 }
 0x3bf   : > { %v3067_v22 = vpop.f32.mrb[150].mxu1 }
 0x3c0   : > { %v4534_v0 = vadd.f32 %v6855_v34, %v4533_v52  ;;  %v4589_v18 = vmul.f32 %v6855_v34, %v6855_v34  ;;  %v6856_v7 = vadd.f32 %v4429_v11, %v3067_v22  ;;  %v3069_v23 = vpop.f32.mrb[151].mxu1 }
 0x3c2   : > { %v4637_v42 = vadd.f32 %v4636_v17, %v4589_v18  ;;  %v4535_v29 = vadd.f32 %v6856_v7, %v4534_v0  ;;  %v4590_v3 = vmul.f32 %v6856_v7, %v6856_v7  ;;  %v6665_v62 = vpack.c.bf16 %v6856_v7, %v6855_v34 }
 0x3c4   : > { %v4638_v27 = vadd.f32 %v4637_v42, %v4590_v3  ;;  %6785 = vst [vmem:[#allocation4 + $0xb8] sm:$0xff] %v6665_v62  }
 0x3c5   : > { %v3072_v38 = vpop.f32.mrb[152].mxu1 }
 0x3c6   : > { %v6857_v9 = vadd.f32 %v4434_v25, %v3072_v38  ;;  %v3074_v2 = vpop.f32.mrb[153].mxu1 }
 0x3c7   : > { %v3075_v60 = vpop.f32.mrb[154].mxu1 }
 0x3c8   : > { %v4536_v21 = vadd.f32 %v6857_v9, %v4535_v29  ;;  %v4591_v54 = vmul.f32 %v6857_v9, %v6857_v9  ;;  %v6546_v20 = vpack.c.bf16 %v6857_v9, %v6857_v9  ;;  %v3076_v55 = vpop.f32.mrb[155].mxu1 }
 0x3ca   : > { %v4537_v41 = vrot.slane %v4536_v21, 4  ;;  %v4639_v6 = vadd.f32 %v4638_v27, %v4591_v54  ;;  %4899 = vst [vmem:[#allocation4 + $0xc0] sm:$0xf] %v6546_v20 }
 0x3cc   : > { %v4538_v46 = vadd.f32 %v4537_v41, %v4536_v21  ;;  %v4640_v11 = vrot.slane %v4639_v6, 4 }
 0x3ce   : > { %v4539_v49 = vrot.slane %v4538_v46, 2  ;;  %v4641_v15 = vadd.f32 %v4640_v11, %v4639_v6 }
 0x3d0   : > { %v4540_v5 = vadd.f32 %v4539_v49, %v4538_v46  ;;  %v4642_v59 = vrot.slane %v4641_v15, 2 }
 0x3d2   : > { %v4541_v44 = vrot.slane %v4540_v5, 1  ;;  %v4643_v36 = vadd.f32 %v4642_v59, %v4641_v15 }
 0x3d4   : > { %v4644_v56 = vrot.slane %v4643_v36, 1  ;;  %v4542_v4 = vadd.f32 %v4541_v44, %v4540_v5 }
 0x3d6   : > { %v4645_v25 = vadd.f32 %v4644_v56, %v4643_v36 }
 0x3d8   : > { %v4648_v19 = vsel %vm4647_vm0, %v4542_v4, %v4645_v25 }
 0x3d9   : > { %v4649_v1 = vadd.f32 %v4648_v19, %v4646_v43 }
 0x3db   : > { %4650 = vst [vmem:[#allocation5] sm:$0x3] %v4649_v1 }
 0x3dc PF: > { %p6436_p5 = scmp.ne.s32.totalorder %s7321_s21, 1 }
 0x3de   : > { %4903 = sbr.rel (%p6436_p5) target bundleno = 1413 (0x585), region = 56 }
 0x3e5   : > { %v4908_v26 = vld [vmem:[#allocation5] sm:$0x3]  ;;  %v4922_v13 = vlaneseq  ;;  %v7333_v35 = vmov 1966171168   ;;  %v8511_v32 = vld [vmem:[#allocation4 + $0x8] sm:$0xff]   ;;  %v8513_v28 = vld [vmem:[#allocation4 + $0x10] sm:$0xff]  }
 0x3e6   : > { %v8503_v37 = vmul.f32 0.010204081, %v4908_v26  ;;  %v4920_v48 = vunpack.c.l.s4 %v7333_v35  ;;  %v8505_v16 = vld [vmem:[#allocation4] sm:$0xff]   ;;  %v8515_v61 = vld [vmem:[#allocation4 + $0x18] sm:$0xff]   ;;  %v8523_v47 = vld [vmem:[#allocation4 + $0x28] sm:$0xff]   ;;  %vm4945_vm1 = vcmask 1040384  }
 0x3e7   : > { %v8507_v33 = vshrl.u32 %v4922_v13, 7  ;;  %v8521_v31 = vld [vmem:[#allocation4 + $0x20] sm:$0xff]   ;;  %v8525_v24 = vld [vmem:[#allocation4 + $0x30] sm:$0xff]   ;;  %v8533_v52 = vld [vmem:[#allocation4 + $0x38] sm:$0xff]  }
 0x3e8   : > { %v4910_v10 = vmul.f32 %v8503_v37, %v8503_v37  ;;  %v4921_v30 = vunpack.c.0.s8 %v4920_v48  ;;  %v8540_v34 = vld [vmem:[#allocation4 + $0x40] sm:$0xff]   ;;  %v8542_v63 = vld [vmem:[#allocation4 + $0x48] sm:$0xff]   ;;  %v8548_v23 = vld [vmem:[#allocation4 + $0x50] sm:$0xff]  }
 0x3e9   : > { %v8528_v50 = vsub.s32 0, %v8507_v33  ;;  %v8550_v42 = vld [vmem:[#allocation4 + $0x58] sm:$0xff]   ;;  %v8556_v38 = vld [vmem:[#allocation4 + $0x60] sm:$0xff]   ;;  %v8558_v9 = vld [vmem:[#allocation4 + $0x68] sm:$0xff]  }
 0x3ea   : > { %v4912_v14 = vrot.slane %v4910_v10, 7  ;;  %v8536_v40 = vsub.s32 %v4921_v30, %v8507_v33  ;;  %v8564_v20 = vld [vmem:[#allocation4 + $0x70] sm:$0xff]   ;;  %v8569_v11 = vld [vmem:[#allocation4 + $0x78] sm:$0xff]   ;;  %v8571_v49 = vld [vmem:[#allocation4 + $0x80] sm:$0xff]  }
 0x3eb   : > { %9864 = vst [vmem:[#allocation13_spill] sm:$0xff] %v8528_v50  ;;  %v8577_v36 = vld [vmem:[#allocation4 + $0x88] sm:$0xff]   ;;  %v8579_v56 = vld [vmem:[#allocation4 + $0x90] sm:$0xff]   ;;  %v8584_v19 = vld [vmem:[#allocation4 + $0x98] sm:$0xff]  }
 0x3ec   : > { %9865 = vst [vmem:[#allocation14_spill] sm:$0xff] %v8536_v40  ;;  %v4914_v29 = vsub.f32 %v8503_v37, %v4912_v14  ;;  %v8586_v1 = vld [vmem:[#allocation4 + $0xa0] sm:$0xff]   ;;  %v8592_v10 = vld [vmem:[#allocation4 + $0xa8] sm:$0xff]   ;;  %v8594_v30 = vld [vmem:[#allocation4 + $0xb0] sm:$0xff]  }
 0x3ed   : > { %v8600_v25 = vld [vmem:[#allocation4 + $0xb8] sm:$0xff]   ;;  %v8602_v26 = vld [vmem:[#allocation4 + $0xc0] sm:$0xf]  ;;  %v5255_v43 = vld [vmem:[%s9682_s3 + $0x8] sm:$0xff] }
 0x3ee   : > { %v4916_v55 = vadd.f32 1e-05, %v4914_v29  ;;  %v5254_v29 = vld [vmem:[%s9682_s3] sm:$0xff]  ;;  %v5256_v4 = vld [vmem:[%s9682_s3 + $0x10] sm:$0xff]  ;;  %v5257_v13 = vld [vmem:[%s9682_s3 + $0x18] sm:$0xff]  ;;  %v5317_v48 = vcombine.high %v5255_v43, %v5255_v43  ;;  %v5324_v15 = vrot.slane %v5255_v43, %v8536_v40 }
 0x3ef   : > { %v5268_v5 = vcombine.high %v5254_v29, %v5254_v29  ;;  %v5275_v35 = vrot.slane %v5254_v29, %v8536_v40  ;;  %v5366_v46 = vcombine.high %v5256_v4, %v5256_v4  ;;  %v5373_v6 = vrot.slane %v5256_v4, %v8536_v40  ;;  %v5258_v39 = vld [vmem:[%s9682_s3 + $0x20] sm:$0xff] }
 0x3f0   : > { %7291 = vrsqrt.f32 %v4916_v55  ;;  %v5415_v41 = vcombine.high %v5257_v13, %v5257_v13  ;;  %v5422_v54 = vrot.slane %v5257_v13, %v8536_v40  ;;  %v5331_v55 = vrot.slane %v5317_v48, %v8536_v40 }
 0x3f1   : > { %v5282_v44 = vrot.slane %v5268_v5, %v8536_v40  ;;  %v5283_v21 = vcombine.high %v5275_v35, %v5275_v35  ;;  %v8634_v59 = vrot.slane %v5275_v35, %v8536_v40  ;;  %v5332_v60 = vcombine.high %v5324_v15, %v5324_v15 }
 0x3f2   : > { %v8638_v29 = vrot.slane %v5324_v15, %v8536_v40  ;;  %v5380_v43 = vrot.slane %v5366_v46, %v8536_v40  ;;  %v5381_v2 = vcombine.high %v5373_v6, %v5373_v6  ;;  %v5333_v48 = vcombine.high %v5331_v55, %v5331_v55 }
 0x3f3   : > { %9866 = vst [vmem:[#allocation15_spill] sm:$0xff] %v8634_v59  ;;  %v5284_v4 = vcombine.high %v5282_v44, %v5282_v44  ;;  %v8642_v62 = vrot.slane %v5282_v44, %v8536_v40  ;;  %v8645_v5 = vrot.slane %v5283_v21, %v8536_v40  ;;  %v5313_v13 = vcombine.high %v8634_v59, %v8634_v59 }
 0x3f4   : > { %9867 = vst [vmem:[#allocation16_spill] sm:$0xff] %v8638_v29  ;;  %v8651_v15 = vrot.slane %v5331_v55, %v8536_v40  ;;  %v8654_v46 = vrot.slane %v5332_v60, %v8536_v40  ;;  %v8666_v18 = vrot.slane %v5333_v48, %v8536_v40  ;;  %v5382_v22 = vcombine.high %v5380_v43, %v5380_v43 }
 0x3f5   : > { %9868 = vst [vmem:[#allocation17_spill] sm:$0xff] %v8642_v62  ;;  %9869 = vst [vmem:[#allocation18_spill] sm:$0xff] %v8645_v5  ;;  %v8657_v3 = vrot.slane %v5284_v4, %v8536_v40  ;;  %v4915_v4 = vld [vmem:[%s9683_s4] sm:$0x1]  ;;  %v8681_v48 = vrot.slane %v5380_v43, %v8536_v40  ;;  %v8687_v12 = vrot.slane %v5381_v2, %v8536_v40 }
 0x3f6   : > { %9870 = vst [vmem:[#allocation19_spill] sm:$0xff] %v8651_v15  ;;  %9871 = vst [vmem:[#allocation20_spill] sm:$0xff] %v8654_v46  ;;  %v5429_v45 = vrot.slane %v5415_v41, %v8536_v40  ;;  %v5430_v51 = vcombine.high %v5422_v54, %v5422_v54  ;;  %v8703_v41 = vrot.slane %v5422_v54, %v8536_v40  ;;  %v5259_v54 = vld [vmem:[%s9682_s3 + $0x28] sm:$0xff] }
 0x3f7   : > { %9872 = vst [vmem:[#allocation21_spill] sm:$0xff] %v8657_v3  ;;  %9873 = vst [vmem:[#allocation22_spill] sm:$0xff] %v8666_v18  ;;  %v5471_v57 = vrot.slane %v5258_v39, %v8536_v40 }
 0x3f8   : > { %9875 = vst [vmem:[#allocation24_spill] sm:$0xff] %v8681_v48  ;;  %9876 = vst [vmem:[#allocation25_spill] sm:$0xff] %v8687_v12  ;;  %v5431_v58 = vcombine.high %v5429_v45, %v5429_v45  ;;  %v8711_v14 = vrot.slane %v5429_v45, %v8536_v40 }
 0x3f9   : > { %9878 = vst [vmem:[#allocation27_spill] sm:$0xff] %v8703_v41  ;;  %v5479_v55 = vcombine.high %v5471_v57, %v5471_v57 }
 0x3fa   : > { %v7292_v27 = vpop.eup %7291  ;;  %9879 = vst [vmem:[#allocation28_spill] sm:$0xff] %v8711_v14  ;;  %v8721_v2 = vrot.slane %v5431_v58, %v8536_v40  ;;  %v5513_v58 = vcombine.high %v5259_v54, %v5259_v54 }
 0x3fb   : > { %v4925_v35 = vrot.slane %v7292_v27, %v8536_v40 }
 0x3fc   : > { %9881 = vst [vmem:[#allocation30_spill] sm:$0xff] %v8721_v2  ;;  %v5527_v44 = vrot.slane %v5513_v58, %v8536_v40 }
 0x3fd   : > { %v4926_v27 = vcombine.high %v4925_v35, %v4925_v35  ;;  %v8678_v35 = vrot.slane %v5373_v6, %v8536_v40  ;;  %v8694_v6 = vrot.slane %v5382_v22, %v8536_v40  ;;  %v4936_v22 = vld [vmem:[%s9684_s5] sm:$0x1] }
 0x3fe   : > { %v5529_v43 = vcombine.high %v5527_v44, %v5527_v44 }
 0x3ff   : > { %9874 = vst [vmem:[#allocation23_spill] sm:$0xff] %v8678_v35  ;;  %v4933_v53 = vrot.slane %v4926_v27, %v8536_v40  ;;  %9877 = vst [vmem:[#allocation26_spill] sm:$0xff] %v8694_v6  ;;  %v8714_v27 = vrot.slane %v5430_v51, %v8536_v40  ;;  %v8729_v51 = vld.sshfl [vmem:[%s9682_s3 + $0x30] sm:$0x1 pattern:$0x75316420] }
 0x400   : > { %9882 = vst [vmem:[#allocation31_spill] sm:$0xff] %v8729_v51 }
 0x401   : > { %v4935_v8 = vmul.f32 %v4933_v53, %v4915_v4  ;;  %9880 = vst [vmem:[#allocation29_spill] sm:$0xff] %v8714_v27  ;;  %v5464_v53 = vcombine.high %v5258_v39, %v5258_v39  ;;  %v5462_v45 = vcombine.high %v8714_v27, %v8714_v27  ;;  %v8739_v39 = vrot.slane %v5471_v57, %v8536_v40 }
 0x403   : > { %v4937_v4 = vmul.f32 %v4935_v8, %v8503_v37  ;;  %v5478_v17 = vrot.slane %v5464_v53, %v8536_v40  ;;  %9883 = vst [vmem:[#allocation32_spill] sm:$0xff] %v8739_v39  ;;  %v5520_v37 = vrot.slane %v5259_v54, %v8536_v40  ;;  %v8748_v53 = vrot.slane %v5479_v55, %v8536_v40 }
 0x405   : > { %v4938_v60 = vsub.f32 %v4936_v22, %v4937_v4  ;;  %v5480_v7 = vcombine.high %v5478_v17, %v5478_v17  ;;  %v8742_v0 = vrot.slane %v5478_v17, %v8536_v40  ;;  %9885 = vst [vmem:[#allocation34_spill] sm:$0xff] %v8748_v53  ;;  %v5528_v54 = vcombine.high %v5520_v37, %v5520_v37 }
 0x406   : > { %v8763_v55 = vrot.slane %v5520_v37, %v8536_v40  ;;  %v8766_v22 = vrot.slane %v5527_v44, %v8536_v40  ;;  %v8774_v17 = vrot.slane %v5529_v43, %v8536_v40  ;;  %v9902_v37 = vcombine.high %v8651_v15, %v8651_v15 }
 0x407   : > { %9884 = vst [vmem:[#allocation33_spill] sm:$0xff] %v8742_v0  ;;  %v4943_v21 = vrot.slane %v4938_v60, %v8528_v50  ;;  %v8755_v4 = vrot.slane %v5480_v7, %v8536_v40  ;;  %v8771_v57 = vrot.slane %v5528_v54, %v8536_v40  ;;  %v8788_v54 = vrot.slane %v5313_v13, %v8528_v50 }
 0x408   : > { %9887 = vst [vmem:[#allocation36_spill] sm:$0xff] %v8763_v55  ;;  %9888 = vst [vmem:[#allocation37_spill] sm:$0xff] %v8766_v22  ;;  %v9894_v13 = vcombine.high %v8642_v62, %v8642_v62 }
 0x409   : > { %9886 = vst [vmem:[#allocation35_spill] sm:$0xff] %v8755_v4  ;;  %v4946_v58 = vsel %vm4945_vm1, %v4935_v8, %v4943_v21  ;;  %9889 = vst [vmem:[#allocation38_spill] sm:$0xff] %v8771_v57  ;;  %v9892_v8 = vcombine.high %v8645_v5, %v8645_v5  ;;  %v9898_v21 = vcombine.high %v8638_v29, %v8638_v29 }
 0x40a   : > { %4947 = vst [vmem:[#allocation5] sm:$0x3] %v4946_v58  ;;  %9890 = vst [vmem:[#allocation39_spill] sm:$0xff] %v8774_v17  ;;  %v8808_v43 = vrot.slane %v9894_v13, %v8528_v50  ;;  %v9896_v58 = vcombine.high %v8657_v3, %v8657_v3  ;;  %v9900_v13 = vcombine.high %v8654_v46, %v8654_v46 }
 0x40b   : > { %9891 = vst [vmem:[#allocation40_spill] sm:$0xff] %v8788_v54  ;;  %v8798_v44 = vrot.slane %v9892_v8, %v8528_v50  ;;  %v8824_v60 = vrot.slane %v9898_v21, %v8528_v50  ;;  %v9904_v21 = vcombine.high %v8666_v18, %v8666_v18  ;;  %v9906_v8 = vcombine.high %v8678_v35, %v8678_v35 }
 0x40c   : > { %9895 = vst [vmem:[#allocation42_spill] sm:$0xff] %v8808_v43  ;;  %v8814_v7 = vrot.slane %v9896_v58, %v8528_v50  ;;  %v8830_v43 = vrot.slane %v9900_v13, %v8528_v50  ;;  %v9910_v58 = vcombine.high %v8681_v48, %v8681_v48  ;;  %v9920_v48 = vunpack.c.l.bf16 %v8505_v16 }
 0x40d   : > { %9893 = vst [vmem:[#allocation41_spill] sm:$0xff] %v8798_v44  ;;  %9899 = vst [vmem:[#allocation44_spill] sm:$0xff] %v8824_v60  ;;  %v8846_v60 = vrot.slane %v9904_v21, %v8528_v50 }
 0x40e   : > { %9897 = vst [vmem:[#allocation43_spill] sm:$0xff] %v8814_v7  ;;  %9901 = vst [vmem:[#allocation45_spill] sm:$0xff] %v8830_v43  ;;  %v8840_v7 = vrot.slane %v9902_v37, %v8528_v50  ;;  %v8856_v43 = vrot.slane %v9906_v8, %v8528_v50  ;;  %v9908_v37 = vcombine.high %v8687_v12, %v8687_v12 }
 0x40f   : > { %9905 = vst [vmem:[#allocation47_spill] sm:$0xff] %v8846_v60  ;;  %v8872_v35 = vrot.slane %v9910_v58, %v8528_v50  ;;  %v9912_v8 = vcombine.high %v8694_v6, %v8694_v6  ;;  %v9915_v58 = vcombine.high %v8703_v41, %v8703_v41  ;;  %v9925_v6 = vunpack.c.h.bf16 %v8513_v28 }
 0x410   : > { %9903 = vst [vmem:[#allocation46_spill] sm:$0xff] %v8840_v7  ;;  %9907 = vst [vmem:[#allocation48_spill] sm:$0xff] %v8856_v43  ;;  %v8862_v7 = vrot.slane %v9908_v37, %v8528_v50  ;;  %v9923_v37 = vunpack.c.h.bf16 %v8511_v32 }
 0x411   : > { %v4948_v60 = vld [vmem:[#allocation5] sm:$0x3]  ;;  %9911 = vst [vmem:[#allocation50_spill] sm:$0xff] %v8872_v35  ;;  %v8878_v43 = vrot.slane %v9912_v8, %v8528_v50  ;;  %v8893_v35 = vrot.slane %v9915_v58, %v8528_v50  ;;  %v8896_v8 = vrot.slane %v5462_v45, %v8528_v50  ;;  %v9921_v58 = vunpack.c.h.bf16 %v8505_v16 }
 0x412   : > { %9909 = vst [vmem:[#allocation49_spill] sm:$0xff] %v8862_v7  ;;  %v5053_v21 = vrot.slane %v4948_v60, %v8528_v50  ;;  %v9914_v7 = vsub.s32 1, %v8507_v33  ;;  %v9922_v45 = vunpack.c.l.bf16 %v8511_v32  ;;  %v9924_v33 = vunpack.c.l.bf16 %v8513_v28 }
 0x413   : > { %9913 = vst [vmem:[#allocation51_spill] sm:$0xff] %v8878_v43  ;;  %9916 = vst [vmem:[#allocation52_spill] sm:$0xff] %v8893_v35  ;;  %v9928_v16 = vunpack.c.l.bf16 %v8521_v31  ;;  %v9930_v32 = vunpack.c.l.bf16 %v8523_v47  ;;  %v9932_v28 = vunpack.c.l.bf16 %v8525_v24 }
 0x414   : > { %v8885_v13 = vrot.slane %v4948_v60, %v9914_v7  ;;  %9917 = vst [vmem:[#allocation53_spill] sm:$0xff] %v8896_v8  ;;  %v9918_v60 = vcombine.high %v8711_v14, %v8711_v14  ;;  %v5054_v27 = vmul.f32 %v9920_v48, %v5053_v21  ;;  %v5055_v35 = vmul.f32 %v9921_v58, %v5053_v21 }
 0x415   : > { %v5056_v8 = vmul.f32 %v9922_v45, %v5053_v21  ;;  %v5057_v41 = vmul.f32 %v9923_v37, %v5053_v21  ;;  %v5058_v43 = vmul.f32 %v9924_v33, %v5053_v21  ;;  %v5059_v14 = vmul.f32 %v9925_v6, %v5053_v21 }
 0x416   : > { %v8906_v7 = vrot.slane %v9918_v60, %v8528_v50  ;;  %v9926_v60 = vunpack.c.l.bf16 %v8515_v61  ;;  %v9927_v48 = vunpack.c.h.bf16 %v8515_v61  ;;  %v5062_v58 = vmul.f32 %v9928_v16, %v5053_v21 }
 0x417   : > { %v9929_v45 = vunpack.c.h.bf16 %v8521_v31  ;;  %v5064_v37 = vmul.f32 %v9930_v32, %v5053_v21  ;;  %v9931_v33 = vunpack.c.h.bf16 %v8523_v47  ;;  %v5066_v6 = vmul.f32 %v9932_v28, %v5053_v21 }
 0x418   : > { %9919 = vst [vmem:[#allocation54_spill] sm:$0xff] %v8906_v7  ;;  %v5060_v7 = vmul.f32 %v9926_v60, %v5053_v21  ;;  %v5061_v12 = vmul.f32 %v9927_v48, %v5053_v21  ;;  %v9933_v60 = vunpack.c.h.bf16 %v8525_v24  ;;  %v9934_v61 = vunpack.c.l.bf16 %v8533_v52 }
 0x419   : > { %v5063_v18 = vmul.f32 %v9929_v45, %v5053_v21  ;;  %v5065_v15 = vmul.f32 %v9931_v33, %v5053_v21  ;;  %v9935_v16 = vunpack.c.h.bf16 %v8533_v52  ;;  %v9936_v31 = vunpack.c.l.bf16 %v8540_v34 }
 0x41a   : > { %v5067_v46 = vmul.f32 %v9933_v60, %v5053_v21  ;;  %v5068_v48 = vmul.f32 %v9934_v61, %v5053_v21  ;;  %v9937_v32 = vunpack.c.h.bf16 %v8540_v34  ;;  %v9938_v47 = vunpack.c.l.bf16 %v8542_v63 }
 0x41b   : > { %v5069_v29 = vmul.f32 %v9935_v16, %v5053_v21  ;;  %v5070_v45 = vmul.f32 %v9936_v31, %v5053_v21  ;;  %v9939_v28 = vunpack.c.h.bf16 %v8542_v63  ;;  %v9940_v24 = vunpack.c.l.bf16 %v8548_v23 }
 0x41c   : > { %v5071_v3 = vmul.f32 %v9937_v32, %v5053_v21  ;;  %v5072_v33 = vmul.f32 %v9938_v47, %v5053_v21  ;;  %v9941_v61 = vunpack.c.h.bf16 %v8548_v23  ;;  %v9942_v52 = vunpack.c.l.bf16 %v8550_v42 }
 0x41d   : > { %v5073_v62 = vmul.f32 %v9939_v28, %v5053_v21  ;;  %v5074_v60 = vmul.f32 %v9940_v24, %v5053_v21  ;;  %v9943_v31 = vunpack.c.h.bf16 %v8550_v42  ;;  %v9944_v34 = vunpack.c.l.bf16 %v8556_v38 }
 0x41e   : > { %v5075_v44 = vmul.f32 %v9941_v61, %v5053_v21  ;;  %v5076_v16 = vmul.f32 %v9942_v52, %v5053_v21  ;;  %v9945_v47 = vunpack.c.h.bf16 %v8556_v38  ;;  %v9946_v63 = vunpack.c.l.bf16 %v8558_v9 }
 0x41f   : > { %v5077_v54 = vmul.f32 %v9943_v31, %v5053_v21  ;;  %v5078_v32 = vmul.f32 %v9944_v34, %v5053_v21  ;;  %v9947_v24 = vunpack.c.h.bf16 %v8558_v9  ;;  %v9948_v23 = vunpack.c.l.bf16 %v8564_v20 }
 0x420   : > { %v5079_v5 = vmul.f32 %v9945_v47, %v5053_v21  ;;  %v5080_v28 = vmul.f32 %v9946_v63, %v5053_v21  ;;  %v9949_v52 = vunpack.c.h.bf16 %v8564_v20  ;;  %v9950_v42 = vunpack.c.l.bf16 %v8569_v11 }
 0x421   : > { %v5081_v59 = vmul.f32 %v9947_v24, %v5053_v21  ;;  %v5082_v61 = vmul.f32 %v9948_v23, %v5053_v21  ;;  %v9951_v34 = vunpack.c.h.bf16 %v8569_v11  ;;  %v9952_v38 = vunpack.c.l.bf16 %v8571_v49 }
 0x422   : > { %v5083_v40 = vmul.f32 %v9949_v52, %v5053_v21  ;;  %v5084_v31 = vmul.f32 %v9950_v42, %v5053_v21  ;;  %v9953_v63 = vunpack.c.h.bf16 %v8571_v49  ;;  %v9954_v9 = vunpack.c.l.bf16 %v8577_v36 }
 0x423   : > { %v5085_v51 = vmul.f32 %v9951_v34, %v5053_v21  ;;  %v5086_v47 = vmul.f32 %v9952_v38, %v5053_v21  ;;  %v9955_v23 = vunpack.c.h.bf16 %v8577_v36  ;;  %v9956_v20 = vunpack.c.l.bf16 %v8579_v56 }
 0x424   : > { %v5087_v17 = vmul.f32 %v9953_v63, %v5053_v21  ;;  %v5088_v24 = vmul.f32 %v9954_v9, %v5053_v21  ;;  %v9957_v42 = vunpack.c.h.bf16 %v8579_v56  ;;  %v9958_v11 = vunpack.c.l.bf16 %v8584_v19 }
 0x425   : > { %v5089_v22 = vmul.f32 %v9955_v23, %v5053_v21  ;;  %v5090_v52 = vmul.f32 %v9956_v20, %v5053_v21  ;;  %v9959_v38 = vunpack.c.h.bf16 %v8584_v19  ;;  %v9960_v49 = vunpack.c.l.bf16 %v8586_v1 }
 0x426   : > { %v5091_v57 = vmul.f32 %v9957_v42, %v5053_v21  ;;  %v5092_v34 = vmul.f32 %v9958_v11, %v5053_v21  ;;  %v9961_v9 = vunpack.c.h.bf16 %v8586_v1  ;;  %v9962_v36 = vunpack.c.l.bf16 %v8592_v10 }
 0x427   : > { %v5093_v55 = vmul.f32 %v9959_v38, %v5053_v21  ;;  %v5094_v63 = vmul.f32 %v9960_v49, %v5053_v21  ;;  %v9963_v20 = vunpack.c.h.bf16 %v8592_v10  ;;  %v9964_v56 = vunpack.c.l.bf16 %v8594_v30 }
 0x428   : > { %v5095_v4 = vmul.f32 %v9961_v9, %v5053_v21  ;;  %v5096_v23 = vmul.f32 %v9962_v36, %v5053_v21  ;;  %v9965_v11 = vunpack.c.h.bf16 %v8594_v30  ;;  %v9966_v19 = vunpack.c.l.bf16 %v8600_v25 }
 0x429   : > { %v5097_v0 = vmul.f32 %v9963_v20, %v5053_v21  ;;  %v5098_v42 = vmul.f32 %v9964_v56, %v5053_v21  ;;  %v9967_v49 = vunpack.c.h.bf16 %v8600_v25  ;;  %v9968_v1 = vunpack.c.l.bf16 %v8602_v26 }
 0x42a   : > { %v5099_v53 = vmul.f32 %v9965_v11, %v5053_v21  ;;  %v5100_v38 = vmul.f32 %v9966_v19, %v5053_v21  ;;  %v9007_v36 = vadd.f32 %v8885_v13, %v5054_v27  ;;  %v9010_v10 = vadd.f32 %v8885_v13, %v5055_v35 }
 0x42b   : > { %v5101_v39 = vmul.f32 %v9967_v49, %v5053_v21  ;;  %v5102_v9 = vmul.f32 %v5053_v21, %v9968_v1  ;;  %v9013_v20 = vadd.f32 %v8885_v13, %v5056_v8  ;;  %v9016_v30 = vadd.f32 %v8885_v13, %v5057_v41 }
 0x42c   : > { %9969 = vst [vmem:[#allocation55_spill] sm:$0xff] %v9007_v36  ;;  %9970 = vst [vmem:[#allocation56_spill] sm:$0xff] %v9010_v10  ;;  %v9019_v56 = vadd.f32 %v8885_v13, %v5058_v43  ;;  %v9022_v25 = vadd.f32 %v8885_v13, %v5059_v14  ;;  %v9025_v26 = vadd.f32 %v8885_v13, %v5060_v7 }
 0x42d   : > { %9971 = vst [vmem:[#allocation57_spill] sm:$0xff] %v9013_v20  ;;  %9972 = vst [vmem:[#allocation58_spill] sm:$0xff] %v9016_v30  ;;  %v9028_v27 = vadd.f32 %v8885_v13, %v5061_v12  ;;  %v9031_v35 = vadd.f32 %v8885_v13, %v5062_v58  ;;  %v9034_v21 = vadd.f32 %v8885_v13, %v5063_v18 }
 0x42e   : > { %9973 = vst [vmem:[#allocation59_spill] sm:$0xff] %v9019_v56  ;;  %9974 = vst [vmem:[#allocation60_spill] sm:$0xff] %v9022_v25  ;;  %v9037_v41 = vadd.f32 %v8885_v13, %v5064_v37  ;;  %v9040_v43 = vadd.f32 %v8885_v13, %v5065_v15  ;;  %v9043_v14 = vadd.f32 %v8885_v13, %v5066_v6  ;;  %v9175_v11 = vmul.f32 0.2, %v9022_v25 }
 0x42f   : > { %9975 = vst [vmem:[#allocation61_spill] sm:$0xff] %v9025_v26  ;;  %9976 = vst [vmem:[#allocation62_spill] sm:$0xff] %v9028_v27  ;;  %v9046_v8 = vadd.f32 %v8885_v13, %v5067_v46  ;;  %v9049_v12 = vadd.f32 %v8885_v13, %v5068_v48  ;;  %v9052_v7 = vadd.f32 %v8885_v13, %v5069_v29  ;;  %v9178_v19 = vmul.f32 0.2, %v9025_v26 }
 0x430   : > { %9977 = vst [vmem:[#allocation63_spill] sm:$0xff] %v9031_v35  ;;  %9978 = vst [vmem:[#allocation64_spill] sm:$0xff] %v9034_v21  ;;  %v9055_v18 = vadd.f32 %v8885_v13, %v5070_v45  ;;  %v9058_v58 = vadd.f32 %v8885_v13, %v5071_v3  ;;  %v9061_v15 = vadd.f32 %v8885_v13, %v5072_v33  ;;  %v9186_v1 = vmul.f32 0.2, %v9031_v35 }
 0x431   : > { %9979 = vst [vmem:[#allocation65_spill] sm:$0xff] %v9037_v41  ;;  %9980 = vst [vmem:[#allocation66_spill] sm:$0xff] %v9040_v43  ;;  %v9064_v37 = vadd.f32 %v8885_v13, %v5073_v62  ;;  %v9067_v46 = vadd.f32 %v8885_v13, %v5074_v60  ;;  %v9070_v6 = vadd.f32 %v8885_v13, %v5075_v44  ;;  %v9203_v49 = vmul.f32 0.2, %v9046_v8 }
 0x432   : > { %9981 = vst [vmem:[#allocation67_spill] sm:$0xff] %v9043_v14  ;;  %9982 = vst [vmem:[#allocation68_spill] sm:$0xff] %v9046_v8  ;;  %v9073_v29 = vadd.f32 %v8885_v13, %v5076_v16  ;;  %v9076_v48 = vadd.f32 %v8885_v13, %v5077_v54  ;;  %v9079_v3 = vadd.f32 %v8885_v13, %v5078_v32  ;;  %v10090_v8 = vld [vmem:[#allocation31_spill] sm:$0xff] }
 0x433   : > { %9983 = vst [vmem:[#allocation69_spill] sm:$0xff] %v9055_v18  ;;  %9984 = vst [vmem:[#allocation70_spill] sm:$0xff] %v9064_v37  ;;  %v9082_v45 = vadd.f32 %v8885_v13, %v5079_v5  ;;  %v9085_v62 = vadd.f32 %v8885_v13, %v5080_v28  ;;  %v9088_v33 = vadd.f32 %v8885_v13, %v5081_v59 }
 0x434   : > { %9985 = vst [vmem:[#allocation71_spill] sm:$0xff] %v9073_v29  ;;  %9986 = vst [vmem:[#allocation72_spill] sm:$0xff] %v9079_v3  ;;  %v9091_v44 = vadd.f32 %v8885_v13, %v5082_v61  ;;  %v9094_v60 = vadd.f32 %v8885_v13, %v5083_v40  ;;  %v9097_v54 = vadd.f32 %v8885_v13, %v5084_v31 }
 0x435   : > { %9987 = vst [vmem:[#allocation73_spill] sm:$0xff] %v9082_v45  ;;  %9988 = vst [vmem:[#allocation74_spill] sm:$0xff] %v9085_v62  ;;  %v9100_v16 = vadd.f32 %v8885_v13, %v5085_v51  ;;  %v9103_v5 = vadd.f32 %v8885_v13, %v5086_v47  ;;  %v9106_v32 = vadd.f32 %v8885_v13, %v5087_v17 }
 0x436   : > { %9989 = vst [vmem:[#allocation75_spill] sm:$0xff] %v9088_v33  ;;  %9990 = vst [vmem:[#allocation76_spill] sm:$0xff] %v9091_v44  ;;  %v9109_v59 = vadd.f32 %v8885_v13, %v5088_v24  ;;  %v9112_v28 = vadd.f32 %v8885_v13, %v5089_v22  ;;  %v9115_v40 = vadd.f32 %v8885_v13, %v5090_v52  ;;  %v9263_v25 = vmul.f32 0.2, %v9094_v60 }
 0x437   : > { %9991 = vst [vmem:[#allocation77_spill] sm:$0xff] %v9094_v60  ;;  %9992 = vst [vmem:[#allocation78_spill] sm:$0xff] %v9097_v54  ;;  %v9118_v61 = vadd.f32 %v8885_v13, %v5091_v57  ;;  %v9121_v51 = vadd.f32 %v8885_v13, %v5092_v34  ;;  %v9124_v31 = vadd.f32 %v8885_v13, %v5093_v55  ;;  %v9274_v26 = vmul.f32 0.2, %v9103_v5  ;;  %v10111_v60 = vld [vmem:[#allocation59_spill] sm:$0xff] }
 0x438   : > { %9993 = vst [vmem:[#allocation79_spill] sm:$0xff] %v9100_v16  ;;  %9994 = vst [vmem:[#allocation80_spill] sm:$0xff] %v9103_v5  ;;  %v9127_v17 = vadd.f32 %v8885_v13, %v5094_v63  ;;  %v9130_v47 = vadd.f32 %v8885_v13, %v5095_v4  ;;  %v9133_v22 = vadd.f32 %v8885_v13, %v5096_v23  ;;  %v9154_v63 = vmul.f32 0.2, %v9007_v36 }
 0x439   : > { %9995 = vst [vmem:[#allocation81_spill] sm:$0xff] %v9106_v32  ;;  %9996 = vst [vmem:[#allocation82_spill] sm:$0xff] %v9109_v59  ;;  %v9136_v24 = vadd.f32 %v8885_v13, %v5097_v0  ;;  %v9139_v57 = vadd.f32 %v8885_v13, %v5098_v42  ;;  %v9142_v52 = vadd.f32 %v8885_v13, %v5099_v53  ;;  %v9157_v0 = vmul.f32 0.2, %v9010_v10 }
 0x43a   : > { %9997 = vst [vmem:[#allocation83_spill] sm:$0xff] %v9112_v28  ;;  %9998 = vst [vmem:[#allocation84_spill] sm:$0xff] %v9115_v40  ;;  %v9145_v55 = vadd.f32 %v8885_v13, %v5100_v38  ;;  %v9148_v34 = vadd.f32 %v8885_v13, %v5101_v39  ;;  %v9151_v4 = vadd.f32 %v8885_v13, %v5102_v9  ;;  %v9160_v23 = vmul.f32 0.2, %v9013_v20 }
 0x43b   : > { %9999 = vst [vmem:[#allocation85_spill] sm:$0xff] %v9118_v61  ;;  %10000 = vst [vmem:[#allocation86_spill] sm:$0xff] %v9121_v51  ;;  %v9163_v53 = vmul.f32 0.2, %v9016_v30  ;;  %v9166_v42 = vmul.f32 0.2, %v9019_v56  ;;  %v10016_v39 = vcombine.high %v8721_v2, %v8721_v2 }
 0x43c   : > { %10001 = vst [vmem:[#allocation87_spill] sm:$0xff] %v9124_v31  ;;  %10002 = vst [vmem:[#allocation88_spill] sm:$0xff] %v9127_v17  ;;  %v9181_v38 = vmul.f32 0.2, %v9028_v27  ;;  %v9189_v9 = vmul.f32 0.2, %v9034_v21 }
 0x43d   : > { %10003 = vst [vmem:[#allocation89_spill] sm:$0xff] %v9130_v47  ;;  %10004 = vst [vmem:[#allocation90_spill] sm:$0xff] %v9133_v22  ;;  %v9172_v13 = vrot.slane %v10016_v39, %v8528_v50  ;;  %v9192_v39 = vmul.f32 0.2, %v9037_v41  ;;  %v9197_v2 = vmul.f32 0.2, %v9040_v43 }
 0x43e   : > { %10005 = vst [vmem:[#allocation91_spill] sm:$0xff] %v9136_v24  ;;  %10006 = vst [vmem:[#allocation92_spill] sm:$0xff] %v9139_v57  ;;  %v9200_v50 = vmul.f32 0.2, %v9043_v14  ;;  %v9208_v36 = vmul.f32 0.2, %v9049_v12 }
 0x43f   : > { %10007 = vst [vmem:[#allocation93_spill] sm:$0xff] %v9142_v52  ;;  %10008 = vst [vmem:[#allocation94_spill] sm:$0xff] %v9145_v55  ;;  %v9219_v10 = vmul.f32 0.2, %v9058_v58  ;;  %v9230_v20 = vmul.f32 0.2, %v9067_v46 }
 0x440   : > { %10009 = vst [vmem:[#allocation95_spill] sm:$0xff] %v9148_v34  ;;  %10010 = vst [vmem:[#allocation96_spill] sm:$0xff] %v9151_v4  ;;  %v9211_v4 = vmul.f32 0.2, %v9052_v7  ;;  %v9222_v34 = vmul.f32 0.2, %v9061_v15 }
 0x441   : > { %10011 = vst [vmem:[#allocation97_spill] sm:$0xff] %v9154_v63  ;;  %10012 = vst [vmem:[#allocation98_spill] sm:$0xff] %v9157_v0  ;;  %v9225_v63 = vmul.f32 0.2, %v9064_v37  ;;  %v9236_v0 = vmul.f32 0.2, %v9073_v29 }
 0x442   : > { %10013 = vst [vmem:[#allocation99_spill] sm:$0xff] %v9160_v23  ;;  %10014 = vst [vmem:[#allocation100_spill] sm:$0xff] %v9163_v53  ;;  %v9241_v30 = vmul.f32 0.2, %v9076_v48  ;;  %v9244_v37 = vmul.f32 0.2, %v9079_v3 }
 0x443   : > { %10015 = vst [vmem:[#allocation101_spill] sm:$0xff] %v9166_v42  ;;  %10017 = vst [vmem:[#allocation102_spill] sm:$0xff] %v9172_v13  ;;  %v9214_v13 = vmul.f32 0.2, %v9055_v18  ;;  %v9233_v18 = vmul.f32 0.2, %v9070_v6 }
 0x444   : > { %10018 = vst [vmem:[#allocation103_spill] sm:$0xff] %v9175_v11  ;;  %10019 = vst [vmem:[#allocation104_spill] sm:$0xff] %v9178_v19  ;;  %v9247_v23 = vmul.f32 0.2, %v9082_v45  ;;  %v9252_v56 = vmul.f32 0.2, %v9085_v62 }
 0x445   : > { %10020 = vst [vmem:[#allocation105_spill] sm:$0xff] %v9181_v38  ;;  %10021 = vst [vmem:[#allocation106_spill] sm:$0xff] %v9186_v1  ;;  %v9255_v29 = vmul.f32 0.2, %v9088_v33  ;;  %v9258_v53 = vmul.f32 0.2, %v9091_v44 }
 0x446   : > { %10022 = vst [vmem:[#allocation107_spill] sm:$0xff] %v9189_v9  ;;  %10023 = vst [vmem:[#allocation108_spill] sm:$0xff] %v9192_v39  ;;  %v9266_v45 = vmul.f32 0.2, %v9097_v54  ;;  %v9269_v42 = vmul.f32 0.2, %v9100_v16 }
 0x447   : > { %10024 = vst [vmem:[#allocation109_spill] sm:$0xff] %v9197_v2  ;;  %10025 = vst [vmem:[#allocation110_spill] sm:$0xff] %v9200_v50  ;;  %v9277_v44 = vmul.f32 0.2, %v9106_v32  ;;  %v9280_v11 = vmul.f32 0.2, %v9109_v59 }
 0x448   : > { %10026 = vst [vmem:[#allocation111_spill] sm:$0xff] %v9203_v49  ;;  %10027 = vst [vmem:[#allocation112_spill] sm:$0xff] %v9211_v4  ;;  %v9285_v27 = vmul.f32 0.2, %v9112_v28  ;;  %v9288_v16 = vmul.f32 0.2, %v9115_v40 }
 0x449   : > { %10028 = vst [vmem:[#allocation113_spill] sm:$0xff] %v9222_v34  ;;  %10029 = vst [vmem:[#allocation114_spill] sm:$0xff] %v9233_v18  ;;  %v9291_v19 = vmul.f32 0.2, %v9118_v61  ;;  %v9296_v35 = vmul.f32 0.2, %v9121_v51 }
 0x44a   : > { %10030 = vst [vmem:[#allocation115_spill] sm:$0xff] %v9241_v30  ;;  %10031 = vst [vmem:[#allocation116_spill] sm:$0xff] %v9244_v37  ;;  %v9299_v59 = vmul.f32 0.2, %v9124_v31  ;;  %v9302_v38 = vmul.f32 0.2, %v9127_v17 }
 0x44b   : > { %10032 = vst [vmem:[#allocation117_spill] sm:$0xff] %v9247_v23  ;;  %10033 = vst [vmem:[#allocation118_spill] sm:$0xff] %v9252_v56  ;;  %v9307_v21 = vmul.f32 0.2, %v9130_v47  ;;  %v9310_v61 = vmul.f32 0.2, %v9133_v22 }
 0x44c   : > { %10034 = vst [vmem:[#allocation119_spill] sm:$0xff] %v9255_v29  ;;  %10035 = vst [vmem:[#allocation120_spill] sm:$0xff] %v9258_v53  ;;  %v9313_v1 = vmul.f32 0.2, %v9136_v24  ;;  %v9318_v41 = vmul.f32 0.2, %v9139_v57 }
 0x44d   : > { %10036 = vst [vmem:[#allocation121_spill] sm:$0xff] %v9263_v25  ;;  %10037 = vst [vmem:[#allocation122_spill] sm:$0xff] %v9266_v45  ;;  %v9321_v17 = vmul.f32 0.2, %v9142_v52  ;;  %v9324_v9 = vmul.f32 0.2, %v9145_v55 }
 0x44e   : > { %10038 = vst [vmem:[#allocation123_spill] sm:$0xff] %v9269_v42  ;;  %10039 = vst [vmem:[#allocation124_spill] sm:$0xff] %v9274_v26  ;;  %v10054_v43 = vld [vmem:[#allocation95_spill] sm:$0xff]  ;;  %v10056_v24 = vld [vmem:[#allocation96_spill] sm:$0xff] }
 0x44f   : > { %10040 = vst [vmem:[#allocation125_spill] sm:$0xff] %v9277_v44  ;;  %10041 = vst [vmem:[#allocation126_spill] sm:$0xff] %v9280_v11  ;;  %v9329_v22 = vmul.f32 0.2, %v10054_v43  ;;  %v10058_v14 = vld [vmem:[#allocation69_spill] sm:$0xff]  ;;  %v10059_v49 = vld [vmem:[#allocation70_spill] sm:$0xff] }
 0x450   : > { %10042 = vst [vmem:[#allocation127_spill] sm:$0xff] %v9285_v27  ;;  %10043 = vst [vmem:[#allocation128_spill] sm:$0xff] %v9288_v16  ;;  %v10060_v50 = vld [vmem:[#allocation71_spill] sm:$0xff]  ;;  %v10073_v47 = vld [vmem:[#allocation13_spill] sm:$0xff] }
 0x451   : > { %10044 = vst [vmem:[#allocation129_spill] sm:$0xff] %v9291_v19  ;;  %10045 = vst [vmem:[#allocation130_spill] sm:$0xff] %v9296_v35  ;;  %v10074_v27 = vld [vmem:[#allocation32_spill] sm:$0xff]  ;;  %v10075_v16 = vld [vmem:[#allocation34_spill] sm:$0xff] }
 0x452   : > { %10046 = vst [vmem:[#allocation131_spill] sm:$0xff] %v9299_v59  ;;  %10047 = vst [vmem:[#allocation132_spill] sm:$0xff] %v9302_v38  ;;  %v5711_v28 = vrot.slane %v10075_v16, %v10073_v47  ;;  %v10076_v45 = vcombine.high %v10074_v27, %v10074_v27  ;;  %v10077_v59 = vcombine.high %v10075_v16, %v10075_v16  ;;  %v10078_v44 = vld [vmem:[#allocation33_spill] sm:$0xff]  ;;  %v10082_v34 = vld [vmem:[#allocation36_spill] sm:$0xff] }
 0x453   : > { %10048 = vst [vmem:[#allocation133_spill] sm:$0xff] %v9307_v21  ;;  %10049 = vst [vmem:[#allocation134_spill] sm:$0xff] %v9310_v61  ;;  %v5707_v61 = vrot.slane %v10074_v27, %v10073_v47  ;;  %v10079_v21 = vld [vmem:[#allocation35_spill] sm:$0xff]  ;;  %v10080_v29 = vcombine.high %v10078_v44, %v10078_v44  ;;  %v5739_v16 = vrot.slane %v10082_v34, %v10073_v47  ;;  %v10086_v57 = vld [vmem:[#allocation37_spill] sm:$0xff] }
 0x454   : > { %10050 = vst [vmem:[#allocation135_spill] sm:$0xff] %v9313_v1  ;;  %10051 = vst [vmem:[#allocation136_spill] sm:$0xff] %v9318_v41  ;;  %v9332_v1 = vmul.f32 0.2, %v10056_v24  ;;  %v5715_v35 = vrot.slane %v10076_v45, %v10073_v47  ;;  %v10081_v27 = vcombine.high %v10079_v21, %v10079_v21  ;;  %v10084_v37 = vcombine.high %v10082_v34, %v10082_v34  ;;  %v10093_v51 = vld [vmem:[#allocation55_spill] sm:$0xff]  ;;  %v10094_v19 = vld [vmem:[#allocation97_spill] sm:$0xff] }
 0x455   : > { %10052 = vst [vmem:[#allocation137_spill] sm:$0xff] %v9321_v17  ;;  %10053 = vst [vmem:[#allocation138_spill] sm:$0xff] %v9324_v9  ;;  %v5719_v9 = vrot.slane %v10077_v59, %v10073_v47  ;;  %v5731_v43 = vrot.slane %v10080_v29, %v10073_v47  ;;  %v10083_v59 = vld [vmem:[#allocation38_spill] sm:$0xff]  ;;  %v10088_v18 = vcombine.high %v10086_v57, %v10086_v57  ;;  %v10096_v40 = vld [vmem:[#allocation15_spill] sm:$0xff] }
 0x456   : > { %10055 = vst [vmem:[#allocation139_spill] sm:$0xff] %v9329_v22  ;;  %10057 = vst [vmem:[#allocation140_spill] sm:$0xff] %v9332_v1  ;;  %v5723_v22 = vrot.slane %v10078_v44, %v10073_v47  ;;  %v5727_v1 = vrot.slane %v10079_v21, %v10073_v47  ;;  %v5735_v45 = vrot.slane %v10081_v27, %v10073_v47  ;;  %v10087_v27 = vld [vmem:[#allocation39_spill] sm:$0xff]  ;;  %v10098_v32 = vld [vmem:[#allocation56_spill] sm:$0xff] }
 0x457   : > { %v5743_v17 = vrot.slane %v10083_v59, %v10073_v47  ;;  %v5747_v41 = vrot.slane %v10084_v37, %v10073_v47  ;;  %v10085_v29 = vcombine.high %v10083_v59, %v10083_v59  ;;  %v5755_v21 = vrot.slane %v10086_v57, %v10073_v47  ;;  %v10091_v59 = vld [vmem:[#allocation14_spill] sm:$0xff]  ;;  %v10104_v42 = vld [vmem:[#allocation99_spill] sm:$0xff]  ;;  %v10106_v54 = vld [vmem:[#allocation40_spill] sm:$0xff] }
 0x458   : > { %v5759_v4 = vrot.slane %v10087_v27, %v10073_v47  ;;  %v5763_v38 = vrot.slane %v10088_v18, %v10073_v47  ;;  %v10089_v37 = vcombine.high %v10087_v27, %v10087_v27  ;;  %v10095_v52 = vmax.f32 %v10093_v51, %v10094_v19  ;;  %v10099_v57 = vld [vmem:[#allocation98_spill] sm:$0xff]  ;;  %v10110_v51 = vld [vmem:[#allocation41_spill] sm:$0xff]  ;;  %v10116_v53 = vld [vmem:[#allocation60_spill] sm:$0xff] }
 0x459   : > { %v5751_v44 = vrot.slane %v10085_v29, %v10073_v47  ;;  %v10092_v29 = vrot.slane %v10090_v8, %v10091_v59  ;;  %v10097_v11 = vrot.slane %v10096_v40, %v10073_v47  ;;  %v10100_v18 = vmax.f32 %v10098_v32, %v10099_v57  ;;  %v10101_v26 = vld [vmem:[#allocation18_spill] sm:$0xff]  ;;  %v10112_v40 = vld [vmem:[#allocation101_spill] sm:$0xff]  ;;  %v10129_v56 = vld [vmem:[#allocation63_spill] sm:$0xff] }
 0x45a   : > { %v5767_v34 = vrot.slane %v10089_v37, %v10073_v47  ;;  %v10102_v5 = vrot.slane %v10101_v26, %v10073_v47  ;;  %v10103_v37 = vld [vmem:[#allocation57_spill] sm:$0xff]  ;;  %v10107_v59 = vld [vmem:[#allocation58_spill] sm:$0xff]  ;;  %v10117_v26 = vld [vmem:[#allocation103_spill] sm:$0xff] }
 0x45b   : > { %v5771_v31 = vrot.slane %v10092_v29, %v10073_v47  ;;  %v5821_v24 = vmul.f32 %v10097_v11, %v10095_v52  ;;  %v10105_v55 = vmax.f32 %v10103_v37, %v10104_v42  ;;  %v10108_v29 = vld [vmem:[#allocation100_spill] sm:$0xff]  ;;  %v10113_v52 = vmax.f32 %v10111_v60, %v10112_v40  ;;  %v10114_v11 = vld [vmem:[#allocation17_spill] sm:$0xff]  ;;  %v10128_v60 = vld [vmem:[#allocation43_spill] sm:$0xff] }
 0x45c   : > { %v5822_v27 = vmul.f32 %v10102_v5, %v10100_v18  ;;  %v10109_v25 = vmax.f32 %v10107_v59, %v10108_v29  ;;  %v10115_v32 = vrot.slane %v10114_v11, %v10073_v47  ;;  %v10118_v5 = vmax.f32 %v10116_v53, %v10117_v26  ;;  %v10119_v18 = vld [vmem:[#allocation21_spill] sm:$0xff]  ;;  %v10124_v59 = vld [vmem:[#allocation42_spill] sm:$0xff]  ;;  %v10134_v62 = vld [vmem:[#allocation64_spill] sm:$0xff] }
 0x45d   : > { %v5823_v8 = vmul.f32 %v10106_v54, %v10105_v55  ;;  %v10120_v42 = vrot.slane %v10119_v18, %v10073_v47  ;;  %v10121_v54 = vld [vmem:[#allocation61_spill] sm:$0xff]  ;;  %v10122_v55 = vld [vmem:[#allocation104_spill] sm:$0xff]  ;;  %v10130_v11 = vld [vmem:[#allocation106_spill] sm:$0xff] }
 0x45e   : > { %v5824_v19 = vmul.f32 %v10110_v51, %v10109_v25  ;;  %v5825_v57 = vmul.f32 %v10115_v32, %v10113_v52  ;;  %v10123_v39 = vmax.f32 %v10121_v54, %v10122_v55  ;;  %v10125_v25 = vld [vmem:[#allocation62_spill] sm:$0xff]  ;;  %v10126_v51 = vld [vmem:[#allocation105_spill] sm:$0xff]  ;;  %v10131_v52 = vmax.f32 %v10129_v56, %v10130_v11  ;;  %v10132_v32 = vld [vmem:[#allocation16_spill] sm:$0xff] }
 0x45f   : > { %v5826_v37 = vmul.f32 %v10120_v42, %v10118_v5  ;;  %v10127_v33 = vmax.f32 %v10125_v25, %v10126_v51  ;;  %v10133_v53 = vrot.slane %v10132_v32, %v10073_v47  ;;  %v10135_v18 = vld [vmem:[#allocation107_spill] sm:$0xff]  ;;  %v10137_v42 = vld [vmem:[#allocation20_spill] sm:$0xff]  ;;  %v10146_v56 = vld [vmem:[#allocation45_spill] sm:$0xff] }
 0x460   : > { %v5827_v29 = vmul.f32 %v10124_v59, %v10123_v39  ;;  %v10136_v5 = vmax.f32 %v10134_v62, %v10135_v18  ;;  %v10138_v54 = vrot.slane %v10137_v42, %v10073_v47  ;;  %v10139_v39 = vld [vmem:[#allocation65_spill] sm:$0xff]  ;;  %v10140_v59 = vld [vmem:[#allocation108_spill] sm:$0xff]  ;;  %v10147_v3 = vld [vmem:[#allocation67_spill] sm:$0xff] }
 0x461   : > { %v5828_v40 = vmul.f32 %v10128_v60, %v10127_v33  ;;  %v5829_v26 = vmul.f32 %v10133_v53, %v10131_v52  ;;  %v10141_v23 = vmax.f32 %v10139_v39, %v10140_v59  ;;  %v10142_v25 = vld [vmem:[#allocation44_spill] sm:$0xff]  ;;  %v10143_v33 = vld [vmem:[#allocation66_spill] sm:$0xff]  ;;  %v10144_v60 = vld [vmem:[#allocation109_spill] sm:$0xff] }
 0x462   : > { %v5830_v55 = vmul.f32 %v10138_v54, %v10136_v5  ;;  %v10145_v2 = vmax.f32 %v10143_v33, %v10144_v60  ;;  %v10148_v32 = vld [vmem:[#allocation110_spill] sm:$0xff]  ;;  %v10150_v53 = vld [vmem:[#allocation19_spill] sm:$0xff]  ;;  %v10152_v30 = vld [vmem:[#allocation68_spill] sm:$0xff] }
 0x463   : > { %v5831_v51 = vmul.f32 %v10142_v25, %v10141_v23  ;;  %v10149_v52 = vmax.f32 %v10147_v3, %v10148_v32  ;;  %v10151_v62 = vrot.slane %v10150_v53, %v10073_v47  ;;  %v10153_v42 = vld [vmem:[#allocation111_spill] sm:$0xff]  ;;  %v10155_v54 = vld [vmem:[#allocation22_spill] sm:$0xff]  ;;  %v10157_v23 = vmax.f32 %v9049_v12, %v9208_v36 }
 0x464   : > { %v5832_v11 = vmul.f32 %v10146_v56, %v10145_v2  ;;  %v10154_v5 = vmax.f32 %v10152_v30, %v10153_v42  ;;  %v10156_v39 = vrot.slane %v10155_v54, %v10073_v47  ;;  %v10158_v25 = vld [vmem:[#allocation46_spill] sm:$0xff]  ;;  %v10159_v2 = vld [vmem:[#allocation112_spill] sm:$0xff]  ;;  %v10161_v3 = vld [vmem:[#allocation47_spill] sm:$0xff]  ;;  %v10162_v32 = vmax.f32 %v10058_v14, %v9214_v13 }
 0x465   : > { %v5833_v18 = vmul.f32 %v10151_v62, %v10149_v52  ;;  %v5835_v33 = vmul.f32 %v10158_v25, %v10157_v23  ;;  %v10160_v60 = vmax.f32 %v9052_v7, %v10159_v2  ;;  %v10163_v52 = vld [vmem:[#allocation23_spill] sm:$0xff]  ;;  %v10165_v62 = vmax.f32 %v9058_v58, %v9219_v10  ;;  %v10166_v42 = vld [vmem:[#allocation25_spill] sm:$0xff]  ;;  %v10170_v7 = vld [vmem:[#allocation48_spill] sm:$0xff] }
 0x466   : > { %v5834_v59 = vmul.f32 %v10156_v39, %v10154_v5  ;;  %v10164_v30 = vrot.slane %v10163_v52, %v10073_v47  ;;  %v10167_v36 = vrot.slane %v10166_v42, %v10073_v47  ;;  %v10168_v5 = vld [vmem:[#allocation113_spill] sm:$0xff]  ;;  %v10171_v23 = vmax.f32 %v10059_v49, %v9225_v63  ;;  %v10174_v2 = vld [vmem:[#allocation24_spill] sm:$0xff]  ;;  %v10181_v63 = vld [vmem:[#allocation50_spill] sm:$0xff] }
 0x467   : > { %v5836_v56 = vmul.f32 %v10161_v3, %v10160_v60  ;;  %v10169_v54 = vmax.f32 %v9061_v15, %v10168_v5  ;;  %v10172_v14 = vld [vmem:[#allocation49_spill] sm:$0xff]  ;;  %v10173_v25 = vmax.f32 %v9067_v46, %v9230_v20  ;;  %v10175_v10 = vrot.slane %v10174_v2, %v10073_v47  ;;  %v10176_v60 = vld [vmem:[#allocation114_spill] sm:$0xff]  ;;  %v10184_v20 = vld [vmem:[#allocation51_spill] sm:$0xff] }
 0x468   : > { %v5837_v53 = vmul.f32 %v10164_v30, %v10162_v32  ;;  %v5838_v12 = vmul.f32 %v10167_v36, %v10165_v62  ;;  %v5840_v13 = vmul.f32 %v10172_v14, %v10171_v23  ;;  %v10177_v3 = vmax.f32 %v9070_v6, %v10176_v60  ;;  %v10178_v32 = vld [vmem:[#allocation26_spill] sm:$0xff]  ;;  %v10182_v62 = vld [vmem:[#allocation115_spill] sm:$0xff]  ;;  %v10185_v36 = vld [vmem:[#allocation72_spill] sm:$0xff] }
 0x469   : > { %v5839_v39 = vmul.f32 %v10170_v7, %v10169_v54  ;;  %v5841_v58 = vmul.f32 %v10175_v10, %v10173_v25  ;;  %v10179_v15 = vrot.slane %v10178_v32, %v10073_v47  ;;  %v10180_v30 = vmax.f32 %v10060_v50, %v9236_v0  ;;  %v10186_v5 = vld [vmem:[#allocation116_spill] sm:$0xff]  ;;  %v10188_v7 = vld [vmem:[#allocation27_spill] sm:$0xff]  ;;  %v10190_v14 = vld [vmem:[#allocation73_spill] sm:$0xff] }
 0x46a   : > { %v10183_v42 = vmax.f32 %v9076_v48, %v10182_v62  ;;  %v10187_v54 = vmax.f32 %v10185_v36, %v10186_v5  ;;  %v10189_v6 = vrot.slane %v10188_v7, %v10073_v47  ;;  %v10191_v25 = vld [vmem:[#allocation117_spill] sm:$0xff]  ;;  %v10195_v60 = vld [vmem:[#allocation74_spill] sm:$0xff]  ;;  %v10198_v48 = vld [vmem:[#allocation52_spill] sm:$0xff] }
 0x46b   : > { %v5842_v52 = vmul.f32 %v10179_v15, %v10177_v3  ;;  %v5843_v49 = vmul.f32 %v10181_v63, %v10180_v30  ;;  %v10192_v2 = vmax.f32 %v10190_v14, %v10191_v25  ;;  %v10193_v10 = vld [vmem:[#allocation29_spill] sm:$0xff]  ;;  %v10196_v3 = vld [vmem:[#allocation118_spill] sm:$0xff]  ;;  %v10199_v30 = vld [vmem:[#allocation75_spill] sm:$0xff] }
 0x46c   : > { %v5844_v46 = vmul.f32 %v10184_v20, %v10183_v42  ;;  %v5845_v23 = vmul.f32 %v10189_v6, %v10187_v54  ;;  %v10194_v50 = vrot.slane %v10193_v10, %v10073_v47  ;;  %v10197_v32 = vmax.f32 %v10195_v60, %v10196_v3  ;;  %v10200_v63 = vld [vmem:[#allocation119_spill] sm:$0xff]  ;;  %v10202_v42 = vld [vmem:[#allocation53_spill] sm:$0xff]  ;;  %v10203_v36 = vld [vmem:[#allocation76_spill] sm:$0xff] }
 0x46d   : > { %v10201_v62 = vmax.f32 %v10199_v30, %v10200_v63  ;;  %v10204_v5 = vld [vmem:[#allocation120_spill] sm:$0xff]  ;;  %v10208_v25 = vld [vmem:[#allocation77_spill] sm:$0xff]  ;;  %v10216_v63 = vld [vmem:[#allocation54_spill] sm:$0xff] }
 0x46e   : > { %v5846_v0 = vmul.f32 %v10194_v50, %v10192_v2  ;;  %v5847_v15 = vmul.f32 %v10198_v48, %v10197_v32  ;;  %v10205_v54 = vmax.f32 %v10203_v36, %v10204_v5  ;;  %v10206_v7 = vld [vmem:[#allocation28_spill] sm:$0xff]  ;;  %v10209_v10 = vld [vmem:[#allocation121_spill] sm:$0xff]  ;;  %v10211_v50 = vld [vmem:[#allocation30_spill] sm:$0xff] }
 0x46f   : > { %v5848_v20 = vmul.f32 %v10202_v42, %v10201_v62  ;;  %v10207_v6 = vrot.slane %v10206_v7, %v10073_v47  ;;  %v10210_v2 = vmax.f32 %v10208_v25, %v10209_v10  ;;  %v10212_v60 = vrot.slane %v10211_v50, %v10073_v47  ;;  %v10213_v32 = vld [vmem:[#allocation78_spill] sm:$0xff]  ;;  %v10217_v62 = vld [vmem:[#allocation79_spill] sm:$0xff]  ;;  %v10222_v10 = vld [vmem:[#allocation124_spill] sm:$0xff] }
 0x470   : > { %v10214_v48 = vld [vmem:[#allocation122_spill] sm:$0xff]  ;;  %v10218_v5 = vld [vmem:[#allocation123_spill] sm:$0xff]  ;;  %v10224_v50 = vld [vmem:[#allocation81_spill] sm:$0xff] }
 0x471   : > { %v5849_v14 = vmul.f32 %v10207_v6, %v10205_v54  ;;  %v5850_v3 = vmul.f32 %v10212_v60, %v10210_v2  ;;  %v10215_v30 = vmax.f32 %v10213_v32, %v10214_v48  ;;  %v10219_v36 = vmax.f32 %v10217_v62, %v10218_v5  ;;  %v10220_v7 = vld [vmem:[#allocation102_spill] sm:$0xff]  ;;  %v10221_v54 = vld [vmem:[#allocation80_spill] sm:$0xff]  ;;  %v10225_v2 = vld [vmem:[#allocation125_spill] sm:$0xff] }
 0x472   : > { %v10223_v25 = vmax.f32 %v10221_v54, %v10222_v10  ;;  %v10226_v60 = vmax.f32 %v10224_v50, %v10225_v2  ;;  %v10227_v48 = vld [vmem:[#allocation82_spill] sm:$0xff]  ;;  %v10230_v62 = vld [vmem:[#allocation83_spill] sm:$0xff]  ;;  %v10233_v54 = vld [vmem:[#allocation84_spill] sm:$0xff] }
 0x473   : > { %v5851_v42 = vmul.f32 %v10216_v63, %v10215_v30  ;;  %v5852_v6 = vmul.f32 %v10220_v7, %v10219_v36  ;;  %v10228_v30 = vld [vmem:[#allocation126_spill] sm:$0xff]  ;;  %v10231_v7 = vld [vmem:[#allocation127_spill] sm:$0xff]  ;;  %v10236_v50 = vld [vmem:[#allocation85_spill] sm:$0xff] }
 0x474   : > { %v5853_v47 = vmul.f32 %v5707_v61, %v10223_v25  ;;  %v5854_v32 = vmul.f32 %v5711_v28, %v10226_v60  ;;  %v10229_v63 = vmax.f32 %v10227_v48, %v10228_v30  ;;  %v10232_v36 = vmax.f32 %v10230_v62, %v10231_v7  ;;  %v10234_v25 = vld [vmem:[#allocation128_spill] sm:$0xff]  ;;  %v10237_v28 = vld [vmem:[#allocation129_spill] sm:$0xff]  ;;  %v10239_v48 = vld [vmem:[#allocation86_spill] sm:$0xff] }
 0x475   : > { %v10235_v61 = vmax.f32 %v10233_v54, %v10234_v25  ;;  %v10238_v60 = vmax.f32 %v10236_v50, %v10237_v28  ;;  %v10242_v62 = vld [vmem:[#allocation87_spill] sm:$0xff]  ;;  %v10245_v54 = vld [vmem:[#allocation88_spill] sm:$0xff]  ;;  %v10248_v50 = vld [vmem:[#allocation89_spill] sm:$0xff] }
 0x476   : > { %v5855_v5 = vmul.f32 %v5715_v35, %v10229_v63  ;;  %v5856_v10 = vmul.f32 %v5719_v9, %v10232_v36  ;;  %v10240_v35 = vld [vmem:[#allocation130_spill] sm:$0xff]  ;;  %v10243_v9 = vld [vmem:[#allocation131_spill] sm:$0xff] }
 0x477   : > { %v5857_v2 = vmul.f32 %v5723_v22, %v10235_v61  ;;  %v5858_v30 = vmul.f32 %v5727_v1, %v10238_v60  ;;  %v10241_v63 = vmax.f32 %v10239_v48, %v10240_v35  ;;  %v10244_v36 = vmax.f32 %v10242_v62, %v10243_v9  ;;  %v10246_v22 = vld [vmem:[#allocation132_spill] sm:$0xff]  ;;  %v10249_v1 = vld [vmem:[#allocation133_spill] sm:$0xff]  ;;  %v10251_v48 = vld [vmem:[#allocation90_spill] sm:$0xff] }
 0x478   : > { %v10247_v61 = vmax.f32 %v10245_v54, %v10246_v22  ;;  %v10250_v60 = vmax.f32 %v10248_v50, %v10249_v1  ;;  %v10254_v62 = vld [vmem:[#allocation91_spill] sm:$0xff]  ;;  %v10257_v54 = vld [vmem:[#allocation92_spill] sm:$0xff]  ;;  %v10260_v50 = vld [vmem:[#allocation93_spill] sm:$0xff] }
 0x479   : > { %v5859_v7 = vmul.f32 %v5731_v43, %v10241_v63  ;;  %v5860_v25 = vmul.f32 %v5735_v45, %v10244_v36  ;;  %v10252_v43 = vld [vmem:[#allocation134_spill] sm:$0xff]  ;;  %v10255_v36 = vld [vmem:[#allocation135_spill] sm:$0xff] }
 0x47a   : > { %v5861_v28 = vmul.f32 %v5739_v16, %v10247_v61  ;;  %v5862_v35 = vmul.f32 %v5743_v17, %v10250_v60  ;;  %v10253_v63 = vmax.f32 %v10251_v48, %v10252_v43  ;;  %v10256_v45 = vmax.f32 %v10254_v62, %v10255_v36  ;;  %v10258_v16 = vld [vmem:[#allocation136_spill] sm:$0xff]  ;;  %v10261_v17 = vld [vmem:[#allocation137_spill] sm:$0xff]  ;;  %v10263_v48 = vld [vmem:[#allocation94_spill] sm:$0xff] }
 0x47b   : > { %v10259_v61 = vmax.f32 %v10257_v54, %v10258_v16  ;;  %v10262_v60 = vmax.f32 %v10260_v50, %v10261_v17  ;;  %v10266_v62 = vld [vmem:[#allocation95_spill] sm:$0xff]  ;;  %v10269_v54 = vld [vmem:[#allocation96_spill] sm:$0xff]  ;;  %v5870_v50 = vadd.f32 %v5822_v27, %v5821_v24 }
 0x47c   : > { %v5863_v9 = vmul.f32 %v5747_v41, %v10253_v63  ;;  %v5864_v22 = vmul.f32 %v5751_v44, %v10256_v45  ;;  %v10264_v41 = vld [vmem:[#allocation138_spill] sm:$0xff]  ;;  %v10267_v44 = vld [vmem:[#allocation139_spill] sm:$0xff] }
 0x47d   : > { %v5865_v1 = vmul.f32 %v5755_v21, %v10259_v61  ;;  %v5866_v43 = vmul.f32 %v5759_v4, %v10262_v60  ;;  %v10265_v63 = vmax.f32 %v10263_v48, %v10264_v41  ;;  %v10268_v45 = vmax.f32 %v10266_v62, %v10267_v44  ;;  %v10270_v21 = vld [vmem:[#allocation140_spill] sm:$0xff] }
 0x47e   : > { %v10271_v61 = vmax.f32 %v10269_v54, %v10270_v21  ;;  %v5871_v4 = vadd.f32 %v5870_v50, %v5823_v8 }
 0x47f   : > { %v5867_v36 = vmul.f32 %v5763_v38, %v10265_v63  ;;  %v5868_v16 = vmul.f32 %v5767_v34, %v10268_v45 }
 0x480   : > { %v5869_v17 = vmul.f32 %v5771_v31, %v10271_v61  ;;  %v5872_v60 = vadd.f32 %v5871_v4, %v5824_v19 }
 0x482   : > { %v5873_v41 = vadd.f32 %v5872_v60, %v5825_v57 }
 0x484   : > { %v5874_v48 = vadd.f32 %v5873_v41, %v5826_v37 }
 0x486   : > { %v5875_v38 = vadd.f32 %v5874_v48, %v5827_v29 }
 0x488   : > { %v5876_v63 = vadd.f32 %v5875_v38, %v5828_v40 }
 0x48a   : > { %v5877_v44 = vadd.f32 %v5876_v63, %v5829_v26 }
 0x48c   : > { %v5878_v62 = vadd.f32 %v5877_v44, %v5830_v55 }
 0x48e   : > { %v5879_v34 = vadd.f32 %v5878_v62, %v5831_v51 }
 0x490   : > { %v5880_v45 = vadd.f32 %v5879_v34, %v5832_v11 }
 0x492   : > { %v5881_v21 = vadd.f32 %v5880_v45, %v5833_v18 }
 0x494   : > { %v5882_v54 = vadd.f32 %v5881_v21, %v5834_v59 }
 0x496   : > { %v5883_v31 = vadd.f32 %v5882_v54, %v5835_v33 }
 0x498   : > { %v5884_v61 = vadd.f32 %v5883_v31, %v5836_v56 }
 0x49a   : > { %v5885_v24 = vadd.f32 %v5884_v61, %v5837_v53 }
 0x49c   : > { %v5886_v27 = vadd.f32 %v5885_v24, %v5838_v12 }
 0x49e   : > { %v5887_v8 = vadd.f32 %v5886_v27, %v5839_v39 }
 0x4a0   : > { %v5888_v50 = vadd.f32 %v5887_v8, %v5840_v13 }
 0x4a2   : > { %v5889_v4 = vadd.f32 %v5888_v50, %v5841_v58 }
 0x4a4   : > { %v5890_v19 = vadd.f32 %v5889_v4, %v5842_v52 }
 0x4a6   : > { %v5891_v57 = vadd.f32 %v5890_v19, %v5843_v49 }
 0x4a8   : > { %v5892_v60 = vadd.f32 %v5891_v57, %v5844_v46 }
 0x4aa   : > { %v5893_v37 = vadd.f32 %v5892_v60, %v5845_v23 }
 0x4ac   : > { %v5894_v41 = vadd.f32 %v5893_v37, %v5846_v0 }
 0x4ae   : > { %v5895_v29 = vadd.f32 %v5894_v41, %v5847_v15 }
 0x4b0   : > { %v5896_v40 = vadd.f32 %v5895_v29, %v5848_v20 }
 0x4b2   : > { %v5897_v26 = vadd.f32 %v5896_v40, %v5849_v14 }
 0x4b4   : > { %v5898_v55 = vadd.f32 %v5897_v26, %v5850_v3 }
 0x4b6   : > { %v5899_v51 = vadd.f32 %v5898_v55, %v5851_v42 }
 0x4b8   : > { %v5900_v11 = vadd.f32 %v5899_v51, %v5852_v6 }
 0x4ba   : > { %v5901_v18 = vadd.f32 %v5900_v11, %v5853_v47 }
 0x4bc   : > { %v5902_v59 = vadd.f32 %v5901_v18, %v5854_v32 }
 0x4be   : > { %v5903_v33 = vadd.f32 %v5902_v59, %v5855_v5 }
 0x4c0   : > { %v5904_v56 = vadd.f32 %v5903_v33, %v5856_v10 }
 0x4c2   : > { %v5905_v53 = vadd.f32 %v5904_v56, %v5857_v2 }
 0x4c4   : > { %v5906_v12 = vadd.f32 %v5905_v53, %v5858_v30 }
 0x4c6   : > { %v5907_v39 = vadd.f32 %v5906_v12, %v5859_v7 }
 0x4c8   : > { %v5908_v13 = vadd.f32 %v5907_v39, %v5860_v25 }
 0x4ca   : > { %v5909_v58 = vadd.f32 %v5908_v13, %v5861_v28 }
 0x4cc   : > { %v5910_v52 = vadd.f32 %v5909_v58, %v5862_v35 }
 0x4ce   : > { %v5911_v49 = vadd.f32 %v5910_v52, %v5863_v9 }
 0x4d0   : > { %v5912_v46 = vadd.f32 %v5911_v49, %v5864_v22 }
 0x4d2   : > { %v5913_v23 = vadd.f32 %v5912_v46, %v5865_v1 }
 0x4d4   : > { %v5914_v0 = vadd.f32 %v5913_v23, %v5866_v43 }
 0x4d6   : > { %v5915_v15 = vadd.f32 %v5914_v0, %v5867_v36 }
 0x4d8   : > { %v5916_v20 = vadd.f32 %v5915_v15, %v5868_v16 }
 0x4da   : > { %v5917_v14 = vadd.f32 %v5916_v20, %v5869_v17 }
 0x4dc   : > { %5918 = vadd.xlane.f32.xlu0 %v5917_v14 }
 0x569   : > { %v5919_v3 = vpop.xlane.xlu0 %5918 }
 0x56a   : > { %v6438_v42 = vmul.f32 -1.442695, %v5919_v3 }
 0x56c   : > { %7293 = vpow2.f32 %v6438_v42 }
 0x576   : > { %v7294_v6 = vpop.eup %7293 }
 0x577   : > { %v5923_v47 = vadd.f32 1.0, %v7294_v6 }
 0x579   : > { %7295 = vrcp.f32 %v5923_v47 }
 0x583   : > { %v7296_v32 = vpop.eup %7295 }
 0x584   : > { %5926 = vst [vmem:[%s9685_s6] sm:$0xff] %v7296_v32 }
 0x585 PF: > { %s16_s23 = sadd.s32 1, %s7329_s23   ;;  %s10272_s21 = smov %s7325_s22 }
 0x586   : > { %p13_p6 = scmp.ge.s32.totalorder %s16_s23, 4   ;;  %s10273_s22 = smov %s10275_s24 }
 0x588   :  { %15 = sbr.rel (!%p13_p6) target bundleno = 2 (0x2), region = 95 }

</bundles_post_ra>
